<compile_context>
chip_gen: v7x
topology: tpu7x:2x2x1
jax: 0.10.0
libtpu: 0.0.40
codegen_flags: <defaults>
</compile_context>

<pallas_src>
import jax
import jax.numpy as jnp
from jax.experimental import pallas as pl
from jax.experimental.pallas import tpu as pltpu

X_DIM = 784
N_HID = 1000
N_HID_PAD = 1024          # padded hidden width (multiple of 128)
Z_DIM = 2
N_CLASSES = 10
N_HEAD = Z_DIM + N_CLASSES  # fused gauss|cat head width


def qnet_kernel(x_ref, w1_ref, b1_ref, w2_ref, b2_ref, wh_ref, bh_ref, out_ref):
    # lin1 + (eval) dropout + relu   -- bf16 operands, f32 accumulation
    h1 = jnp.dot(x_ref[...], w1_ref[...],
                 preferred_element_type=jnp.float32) + b1_ref[...]
    h1 = jnp.maximum(h1, 0.0)

    # lin2 + (eval) dropout + relu
    h2 = jnp.dot(h1.astype(jnp.bfloat16), w2_ref[...],
                 preferred_element_type=jnp.float32) + b2_ref[...]
    h2 = jnp.maximum(h2, 0.0)

    # fused head: columns [0:Z_DIM] = lin3gauss, [Z_DIM:] = lin3cat logits
    head = jnp.dot(h2.astype(jnp.bfloat16), wh_ref[...],
                   preferred_element_type=jnp.float32) + bh_ref[...]

    gauss = head[:, :Z_DIM]
    logits = head[:, Z_DIM:]
    m = jnp.max(logits, axis=-1, keepdims=True)
    e = jnp.exp(logits - m)
    denom = jnp.sum(e, axis=-1, keepdims=True)
    cat = e / denom  # exact reciprocal on a (tile_b, 1) vector: essentially free

    # single fused output slab: [gauss | softmax(cat)]
    out_ref[...] = jnp.concatenate([gauss, cat], axis=-1)


def qnet_forward(x, kernel_params):
    """x: (B, X_DIM) float32 (or bf16). kernel_params from prepare_kernel_params()."""
    (w1, b1, w2, b2, wh, bh) = kernel_params
    B = x.shape[0]

    # Batch tile: multiple of 16 (bf16 sublane pack), capped at 256 (MXU M dim
    # on v6e/v7x; also fine on v5e, just amortizes per-step overhead).
    tile_b = min(256, ((B + 15) // 16) * 16)
    nb = pl.cdiv(B, tile_b)
    b_pad = nb * tile_b

    # Feed x in bf16: halves the dominant per-row HBM traffic; MXU eats bf16 anyway.
    x = x.astype(jnp.bfloat16)
    if b_pad != B:
        x = jnp.pad(x, ((0, b_pad - B), (0, 0)))

    def resident(shape):
        # weights/biases: same block every grid step -> loaded once, stay in VMEM
        return pl.BlockSpec(shape, lambda i: (0,) * len(shape))

    # Megacore only pays off when the batch is big enough to amortize each
    # TensorCore DMAing its own copy of the resident weights (v7x).
    semantics = ("parallel",) if (nb >= 2 and b_pad >= 2048) else ("arbitrary",)

    out_shape = jax.ShapeDtypeStruct((b_pad, N_HEAD), jnp.float32)

    fn = pl.pallas_call(
        qnet_kernel,
        out_shape=out_shape,
        grid=(nb,),
        in_specs=[
            pl.BlockSpec((tile_b, X_DIM), lambda i: (i, 0)),   # x tile (pipelined)
            resident(w1.shape), resident(b1.shape),
            resident(w2.shape), resident(b2.shape),
            resident(wh.shape), resident(bh.shape),
        ],
        out_specs=pl.BlockSpec((tile_b, N_HEAD), lambda i: (i, 0)),
        compiler_params=pltpu.CompilerParams(
            dimension_semantics=semantics,
            vmem_limit_bytes=32 * 1024 * 1024,
        ),
    )
    out = fn(x, w1, b1, w2, b2, wh, bh)

    xgauss = out[:B, :Z_DIM]
    xcat = out[:B, Z_DIM:]
    return xcat, xgauss


def init_params(key):
    """Deterministic init mimicking PyTorch nn.Linear (uniform +-1/sqrt(fan_in)).
    Weights stored as (in_features, out_features), float32, unpadded."""
    def linear(k, fan_in, fan_out):
        kw, kb = jax.random.split(k)
        bound = 1.0 / jnp.sqrt(jnp.float32(fan_in))
        w = jax.random.uniform(kw, (fan_in, fan_out), jnp.float32, -bound, bound)
        b = jax.random.uniform(kb, (1, fan_out), jnp.float32, -bound, bound)
        return w, b

    k1, k2, k3, k4 = jax.random.split(key, 4)
    w1, b1 = linear(k1, X_DIM, N_HID)
    w2, b2 = linear(k2, N_HID, N_HID)
    wg, bg = linear(k3, N_HID, Z_DIM)
    wc, bc = linear(k4, N_HID, N_CLASSES)
    return (w1, b1, w2, b2, wg, bg, wc, bc)


def prepare_kernel_params(params):
    """Pad hidden dim 1000 -> 1024 with zeros (exactly preserves the math:
    padded h1/h2 columns are relu(0 + 0) = 0 and meet zero weight rows),
    fuse the gauss/cat heads, and cast weights to bf16. Biases stay f32."""
    (w1, b1, w2, b2, wg, bg, wc, bc) = params
    ph = N_HID_PAD - N_HID

    w1p = jnp.pad(w1, ((0, 0), (0, ph)))
    b1p = jnp.pad(b1, ((0, 0), (0, ph)))
    w2p = jnp.pad(w2, ((0, ph), (0, ph)))
    b2p = jnp.pad(b2, ((0, 0), (0, ph)))

    wh = jnp.concatenate([wg, wc], axis=1)        # (N_HID, N_HEAD)
    wh = jnp.pad(wh, ((0, ph), (0, 0)))           # (N_HID_PAD, N_HEAD)
    bh = jnp.concatenate([bg, bc], axis=1)        # (1, N_HEAD)

    return (w1p.astype(jnp.bfloat16), b1p,
            w2p.astype(jnp.bfloat16), b2p,
            wh.astype(jnp.bfloat16), bh)


def qnet_reference(x, params):
    """Pure-JAX reference using the same bf16-weight / f32-accum precision."""
    (w1, b1, w2, b2, wg, bg, wc, bc) = params

    def mm(a, w):
        return jnp.dot(a.astype(jnp.bfloat16), w.astype(jnp.bfloat16),
                       preferred_element_type=jnp.float32)

    h1 = jnp.maximum(mm(x, w1) + b1, 0.0)
    h2 = jnp.maximum(mm(h1, w2) + b2, 0.0)
    xgauss = mm(h2, wg) + bg
    xcat = jax.nn.softmax(mm(h2, wc) + bc, axis=-1)
    return xcat, xgauss


if __name__ == "__main__":
    key = jax.random.PRNGKey(0)
    kp, kx = jax.random.split(key)

    params = init_params(kp)
    kernel_params = prepare_kernel_params(params)

    batch = 8
    x = jax.random.normal(kx, (batch, X_DIM), jnp.float32)

    xcat, xgauss = qnet_forward(x, kernel_params)
    jax.block_until_ready((xcat, xgauss))

    # sanity check against a pure-JAX reference at matching (bf16) precision
    xcat_ref, xgauss_ref = qnet_reference(x, params)
    assert xcat.shape == (batch, N_CLASSES)
    assert xgauss.shape == (batch, Z_DIM)
    assert jnp.allclose(xcat, xcat_ref, atol=5e-3, rtol=5e-3)
    assert jnp.allclose(xgauss, xgauss_ref, atol=1e-2, rtol=1e-2)
    # exact reciprocal in-kernel -> rows sum to 1 within fp32 rounding
    assert jnp.allclose(jnp.sum(xcat, axis=-1), 1.0, atol=1e-5)

    print("KERNEL_OK")
</pallas_src>

<mosaic_0001>
module attributes {stable_mosaic.version = 11 : i64} {
  func.func @qnet_kernel(%arg0: i32, %arg1: memref<16x784xbf16, #tpu.memory_space<vmem>>, %arg2: memref<784x1024xbf16, #tpu.memory_space<vmem>>, %arg3: memref<1x1024xf32, #tpu.memory_space<vmem>>, %arg4: memref<1024x1024xbf16, #tpu.memory_space<vmem>>, %arg5: memref<1x1024xf32, #tpu.memory_space<vmem>>, %arg6: memref<1024x12xbf16, #tpu.memory_space<vmem>>, %arg7: memref<1x12xf32, #tpu.memory_space<vmem>>, %arg8: memref<16x12xf32, #tpu.memory_space<vmem>>) attributes {dimension_semantics = [#tpu.dimension_semantics<arbitrary>], iteration_bounds = array<i64: 1>, scalar_prefetch = 0 : i64, scratch_operands = 0 : i64, tpu.core_type = #tpu.core_type<tc>, window_params = [{transform_indices = @transform_0, window_bounds = array<i64: 16, 784>}, {pipeline_mode = #tpu.pipeline_mode<synchronous>, transform_indices = @transform_1, window_bounds = array<i64: 784, 1024>}, {pipeline_mode = #tpu.pipeline_mode<synchronous>, transform_indices = @transform_2, window_bounds = array<i64: 1, 1024>}, {pipeline_mode = #tpu.pipeline_mode<synchronous>, transform_indices = @transform_3, window_bounds = array<i64: 1024, 1024>}, {pipeline_mode = #tpu.pipeline_mode<synchronous>, transform_indices = @transform_4, window_bounds = array<i64: 1, 1024>}, {pipeline_mode = #tpu.pipeline_mode<synchronous>, transform_indices = @transform_5, window_bounds = array<i64: 1024, 12>}, {pipeline_mode = #tpu.pipeline_mode<synchronous>, transform_indices = @transform_6, window_bounds = array<i64: 1, 12>}, {transform_indices = @transform_7, window_bounds = array<i64: 16, 12>}]} {
    %c0 = arith.constant 0 : index
    %c0_0 = arith.constant 0 : index
    %0 = vector.load %arg1[%c0, %c0_0] : memref<16x784xbf16, #tpu.memory_space<vmem>>, vector<16x784xbf16>
    %c0_1 = arith.constant 0 : index
    %c0_2 = arith.constant 0 : index
    %1 = vector.load %arg2[%c0_1, %c0_2] : memref<784x1024xbf16, #tpu.memory_space<vmem>>, vector<784x1024xbf16>
    %cst = arith.constant dense<0.000000e+00> : vector<16x1024xf32>
    %2 = tpu.matmul %0, %1, %cst {dimension_numbers = #tpu.dot_dimension_numbers<[1], [0], [0], [1], [0, 0, 1, 1], [], []>} : vector<16x784xbf16>, vector<784x1024xbf16>, vector<16x1024xf32> -> vector<16x1024xf32>
    %c0_3 = arith.constant 0 : index
    %c0_4 = arith.constant 0 : index
    %3 = vector.load %arg3[%c0_3, %c0_4] : memref<1x1024xf32, #tpu.memory_space<vmem>>, vector<1x1024xf32>
    %4 = vector.broadcast %3 : vector<1x1024xf32> to vector<16x1024xf32>
    %5 = arith.addf %2, %4 : vector<16x1024xf32>
    %cst_5 = arith.constant 0.000000e+00 : f32
    %6 = vector.broadcast %cst_5 : f32 to vector<16x1024xf32>
    %7 = arith.maximumf %5, %6 : vector<16x1024xf32>
    %8 = arith.truncf %7 : vector<16x1024xf32> to vector<16x1024xbf16>
    %c0_6 = arith.constant 0 : index
    %c0_7 = arith.constant 0 : index
    %9 = vector.load %arg4[%c0_6, %c0_7] : memref<1024x1024xbf16, #tpu.memory_space<vmem>>, vector<1024x1024xbf16>
    %cst_8 = arith.constant dense<0.000000e+00> : vector<16x1024xf32>
    %10 = tpu.matmul %8, %9, %cst_8 {dimension_numbers = #tpu.dot_dimension_numbers<[1], [0], [0], [1], [0, 0, 1, 1], [], []>} : vector<16x1024xbf16>, vector<1024x1024xbf16>, vector<16x1024xf32> -> vector<16x1024xf32>
    %c0_9 = arith.constant 0 : index
    %c0_10 = arith.constant 0 : index
    %11 = vector.load %arg5[%c0_9, %c0_10] : memref<1x1024xf32, #tpu.memory_space<vmem>>, vector<1x1024xf32>
    %12 = vector.broadcast %11 : vector<1x1024xf32> to vector<16x1024xf32>
    %13 = arith.addf %10, %12 : vector<16x1024xf32>
    %cst_11 = arith.constant 0.000000e+00 : f32
    %14 = vector.broadcast %cst_11 : f32 to vector<16x1024xf32>
    %15 = arith.maximumf %13, %14 : vector<16x1024xf32>
    %16 = arith.truncf %15 : vector<16x1024xf32> to vector<16x1024xbf16>
    %c0_12 = arith.constant 0 : index
    %c0_13 = arith.constant 0 : index
    %17 = vector.load %arg6[%c0_12, %c0_13] : memref<1024x12xbf16, #tpu.memory_space<vmem>>, vector<1024x12xbf16>
    %cst_14 = arith.constant dense<0.000000e+00> : vector<16x12xf32>
    %18 = tpu.matmul %16, %17, %cst_14 {dimension_numbers = #tpu.dot_dimension_numbers<[1], [0], [0], [1], [0, 0, 1, 1], [], []>} : vector<16x1024xbf16>, vector<1024x12xbf16>, vector<16x12xf32> -> vector<16x12xf32>
    %c0_15 = arith.constant 0 : index
    %c0_16 = arith.constant 0 : index
    %19 = vector.load %arg7[%c0_15, %c0_16] : memref<1x12xf32, #tpu.memory_space<vmem>>, vector<1x12xf32>
    %20 = vector.broadcast %19 : vector<1x12xf32> to vector<16x12xf32>
    %21 = arith.addf %18, %20 : vector<16x12xf32>
    %22 = vector.extract_strided_slice %21 {offsets = [0, 0], sizes = [16, 2], strides = [1, 1]} : vector<16x12xf32> to vector<16x2xf32>
    %23 = vector.extract_strided_slice %21 {offsets = [0, 2], sizes = [16, 10], strides = [1, 1]} : vector<16x12xf32> to vector<16x10xf32>
    %cst_17 = arith.constant dense<0xFF800000> : vector<16xf32>
    %24 = vector.multi_reduction <maximumf>, %23, %cst_17 [1] : vector<16x10xf32> to vector<16xf32>
    %25 = vector.shape_cast %24 : vector<16xf32> to vector<16x1xf32>
    %26 = vector.broadcast %25 : vector<16x1xf32> to vector<16x10xf32>
    %27 = arith.subf %23, %26 : vector<16x10xf32>
    %28 = math.exp %27 : vector<16x10xf32>
    %cst_18 = arith.constant dense<0.000000e+00> : vector<16xf32>
    %29 = vector.multi_reduction <add>, %28, %cst_18 [1] : vector<16x10xf32> to vector<16xf32>
    %30 = vector.shape_cast %29 : vector<16xf32> to vector<16x1xf32>
    %31 = vector.broadcast %30 : vector<16x1xf32> to vector<16x10xf32>
    %32 = arith.divf %28, %31 : vector<16x10xf32>
    %33 = tpu.concatenate %22, %32 in 1 : vector<16x2xf32>, vector<16x10xf32> -> vector<16x12xf32>
    %c0_19 = arith.constant 0 : index
    %c0_20 = arith.constant 0 : index
    %34 = vector.load %arg8[%c0_19, %c0_20] : memref<16x12xf32, #tpu.memory_space<vmem>>, vector<16x12xf32>
    tpu.vector_store %arg8[%c0_19, %c0_20], %33 {strides = array<i32>} : memref<16x12xf32, #tpu.memory_space<vmem>>, vector<16x12xf32>,
    return
  }
  func.func @transform_0(%arg0: i32) -> (i32, i32) {
    %c0_i32 = arith.constant 0 : i32
    %c0_i32_0 = arith.constant 0 : i32
    return %arg0, %c0_i32 : i32, i32
  }
  func.func @transform_1(%arg0: i32) -> (i32, i32) {
    %c0_i32 = arith.constant 0 : i32
    %c0_i32_0 = arith.constant 0 : i32
    %c0_i32_1 = arith.constant 0 : i32
    return %c0_i32, %c0_i32_0 : i32, i32
  }
  func.func @transform_2(%arg0: i32) -> (i32, i32) {
    %c0_i32 = arith.constant 0 : i32
    %c0_i32_0 = arith.constant 0 : i32
    %c0_i32_1 = arith.constant 0 : i32
    return %c0_i32, %c0_i32_0 : i32, i32
  }
  func.func @transform_3(%arg0: i32) -> (i32, i32) {
    %c0_i32 = arith.constant 0 : i32
    %c0_i32_0 = arith.constant 0 : i32
    %c0_i32_1 = arith.constant 0 : i32
    return %c0_i32, %c0_i32_0 : i32, i32
  }
  func.func @transform_4(%arg0: i32) -> (i32, i32) {
    %c0_i32 = arith.constant 0 : i32
    %c0_i32_0 = arith.constant 0 : i32
    %c0_i32_1 = arith.constant 0 : i32
    return %c0_i32, %c0_i32_0 : i32, i32
  }
  func.func @transform_5(%arg0: i32) -> (i32, i32) {
    %c0_i32 = arith.constant 0 : i32
    %c0_i32_0 = arith.constant 0 : i32
    %c0_i32_1 = arith.constant 0 : i32
    return %c0_i32, %c0_i32_0 : i32, i32
  }
  func.func @transform_6(%arg0: i32) -> (i32, i32) {
    %c0_i32 = arith.constant 0 : i32
    %c0_i32_0 = arith.constant 0 : i32
    %c0_i32_1 = arith.constant 0 : i32
    return %c0_i32, %c0_i32_0 : i32, i32
  }
  func.func @transform_7(%arg0: i32) -> (i32, i32) {
    %c0_i32 = arith.constant 0 : i32
    %c0_i32_0 = arith.constant 0 : i32
    return %arg0, %c0_i32 : i32, i32
  }
}

</mosaic_0001>

<bundles_post_ra>
// kernel: tpu_custom_call.1
= control target key start
LH: loop header
LB: loop body
LE: loop exit
PB: predicated region body
PF: predicated region fallthrough
CT: control target
= control target key end

     0   :  { %12 = vsyncpa [#allocation3], 0  ;;  %s9756_s0 = inlined_call_operand.hbm [shape: bf16[16,784], index: 0, kind: input, shape index: {}]   ;;  %s9757_s1 = inlined_call_operand.hbm [shape: bf16[784,1024], index: 1, kind: input, shape index: {}]   ;;  %s9758_s2 = inlined_call_operand.hbm [shape: f32[1,1024], index: 2, kind: input, shape index: {}]   ;;  %s9759_s3 = inlined_call_operand.hbm [shape: bf16[1024,1024], index: 3, kind: input, shape index: {}]   ;;  %s9760_s4 = inlined_call_operand.hbm [shape: f32[1,1024], index: 4, kind: input, shape index: {}]   ;;  %s9761_s5 = inlined_call_operand.vmem [shape: bf16[1024,12], index: 5, kind: input, shape index: {}]   ;;  %s9762_s6 = inlined_call_operand.hbm [shape: f32[1,12], index: 6, kind: input, shape index: {}]   ;;  %s9763_s7 = inlined_call_operand.hbm [shape: f32[16,12], index: 7, kind: output, shape index: {}]  }
   0x1   :  { %13 = vsyncpa [#allocation6], 0 }
   0x2   :  { %14 = vsyncpa [#allocation9], 0 }
   0x3   :  { %15 = vsyncpa [#allocation12], 0 }
   0x4   :  { %16 = vsyncpa [#allocation4], 0  ;;  %s9289_s24 = smov [#allocation5]   ;;  %s9125_s28 = scalar_lea.hbm %s9757_s1, 50176 }
   0x5   :  { %s34_s25 = sshll.u32 %s9289_s24, 4  ;;  %p9126_p0 = scmp.ne.s32.totalorder %s9757_s1, %s9125_s28  ;;  %s35_s25 = int_to_ptr.vmem [resolvable:$true] %s34_s25 }
   0x6   :  { %p9129_p1 = scmp.lt.u32.totalorder %s9125_s28, %s9757_s1 }
   0x8   :  { %p9131_p2 = pnand %p9129_p1, %p9126_p0 }
   0xa   :  { %9134 = shalt.err (!%p9131_p2)
}
   0xb   :  { %s9135_s10 = scalar_lea.vmem %s35_s25, 50176  ;;  %p9140_p4 = scmp.lt.s32.totalorder %s35_s25, %s35_s25 }
   0xc   :  { %p9136_p3 = scmp.ne.s32.totalorder %s35_s25, %s9135_s10  ;;  %p9141_p5 = scmp.lt.s32.totalorder %s9135_s10, %s9135_s10 }
   0xe   :  { %p9142_p6 = por %p9141_p5, %p9140_p4 }
  0x10   :  { %p9143_p7 = pnand %p9142_p6, %p9136_p3 }
  0x12   :  { %9146 = shalt.err (!%p9143_p7)
}
  0x13   :  { %s9290_s11 = smov 512   ;;  %s9291_s12 = smov 32  }
  0x14   :  { %40 = dma.hbm_to_vmem [thread:$0]  %s9757_s1, 50176, %s35_s25, [#allocation6], %s9290_s11, %s9290_s11, %s9291_s12  }
  0x15   :  { %s9292_s15 = smov [#allocation8]   ;;  %s9293_s17 = smov [#allocation2]  }
  0x16   :  { %s56_s16 = sshll.u32 %s9292_s15, 4  ;;  %s22_s18 = sshll.u32 %s9293_s17, 4  ;;  %s57_s16 = int_to_ptr.vmem [resolvable:$true] %s56_s16  ;;  %s23_s18 = int_to_ptr.vmem [resolvable:$true] %s22_s18 }
  0x17   :  { %s9147_s21 = scalar_lea.hbm %s9759_s3, 65536 }
  0x18   :  { %p9148_p8 = scmp.ne.s32.totalorder %s9759_s3, %s9147_s21  ;;  %p9151_p9 = scmp.lt.u32.totalorder %s9147_s21, %s9759_s3 }
  0x1a   :  { %p9153_p10 = pnand %p9151_p9, %p9148_p8 }
  0x1c   :  { %9156 = shalt.err (!%p9153_p10)
}
  0x1d   :  { %s9157_s1 = scalar_lea.vmem %s57_s16, 65536  ;;  %p9162_p12 = scmp.lt.s32.totalorder %s57_s16, %s57_s16 }
  0x1e   :  { %p9158_p11 = scmp.ne.s32.totalorder %s57_s16, %s9157_s1  ;;  %p9163_p13 = scmp.lt.s32.totalorder %s9157_s1, %s9157_s1 }
  0x20   :  { %p9164_p0 = por %p9163_p13, %p9162_p12 }
  0x22   :  { %p9165_p1 = pnand %p9164_p0, %p9158_p11 }
  0x24   :  { %9168 = shalt.err (!%p9165_p1)
}
  0x25   :  { %62 = dma.hbm_to_vmem [thread:$0]  %s9759_s3, 65536, %s57_s16, [#allocation9], %s9290_s11, %s9290_s11, %s9291_s12  }
  0x26   :  { %s9169_s30 = scalar_lea.hbm %s9756_s0, 896 }
  0x27   :  { %p9170_p2 = scmp.ne.s32.totalorder %s9756_s0, %s9169_s30  ;;  %p9173_p3 = scmp.lt.u32.totalorder %s9169_s30, %s9756_s0 }
  0x29   :  { %p9175_p4 = pnand %p9173_p3, %p9170_p2 }
  0x2b   :  { %9178 = shalt.err (!%p9175_p4)
}
  0x2c   :  { %s9179_s14 = scalar_lea.vmem %s23_s18, 896  ;;  %p9184_p6 = scmp.lt.s32.totalorder %s23_s18, %s23_s18 }
  0x2d   :  { %p9180_p5 = scmp.ne.s32.totalorder %s23_s18, %s9179_s14  ;;  %p9185_p7 = scmp.lt.s32.totalorder %s9179_s14, %s9179_s14 }
  0x2f   :  { %p9186_p8 = por %p9185_p7, %p9184_p6 }
  0x31   :  { %p9187_p9 = pnand %p9186_p8, %p9180_p5 }
  0x33   :  { %9190 = shalt.err (!%p9187_p9)
}
  0x34   :  { %s9294_s3 = smov 448   ;;  %s9295_s11 = smov 28  }
  0x35   :  { %28 = dma.hbm_to_vmem [thread:$0]  %s9756_s0, 896, %s23_s18, [#allocation3], %s9294_s3, %s9294_s3, %s9295_s11  }
  0x36   :  { %s9296_s16 = smov [#allocation7]   ;;  %s9297_s19 = smov [#allocation10]  }
  0x37   :  { %s47_s17 = sshll.u32 %s9296_s16, 4  ;;  %s69_s20 = sshll.u32 %s9297_s19, 4  ;;  %s48_s17 = int_to_ptr.vmem [resolvable:$true] %s47_s17  ;;  %s70_s20 = int_to_ptr.vmem [resolvable:$true] %s69_s20 }
  0x38   :  { %s9191_s23 = scalar_lea.hbm %s9758_s2, 128 }
  0x39   :  { %p9192_p10 = scmp.ne.s32.totalorder %s9758_s2, %s9191_s23  ;;  %p9195_p11 = scmp.lt.u32.totalorder %s9191_s23, %s9758_s2 }
  0x3b   :  { %p9197_p12 = pnand %p9195_p11, %p9192_p10 }
  0x3d   :  { %9200 = shalt.err (!%p9197_p12)
}
  0x3e   :  { %s9201_s0 = scalar_lea.vmem %s48_s17, 128  ;;  %p9206_p0 = scmp.lt.s32.totalorder %s48_s17, %s48_s17 }
  0x3f   :  { %p9202_p13 = scmp.ne.s32.totalorder %s48_s17, %s9201_s0  ;;  %p9207_p1 = scmp.lt.s32.totalorder %s9201_s0, %s9201_s0 }
  0x41   :  { %p9208_p2 = por %p9207_p1, %p9206_p0 }
  0x43   :  { %p9209_p3 = pnand %p9208_p2, %p9202_p13 }
  0x45   :  { %9212 = shalt.err (!%p9209_p3)
}
  0x46   :  { %50 = dma.hbm_to_vmem [thread:$0]  %s9758_s2, 128, %s48_s17, [#allocation6]  }
  0x47   :  { %s9213_s30 = scalar_lea.hbm %s9760_s4, 128 }
  0x48   :  { %p9214_p4 = scmp.ne.s32.totalorder %s9760_s4, %s9213_s30  ;;  %p9217_p5 = scmp.lt.u32.totalorder %s9213_s30, %s9760_s4 }
  0x4a   :  { %p9219_p6 = pnand %p9217_p5, %p9214_p4 }
  0x4c   :  { %9222 = shalt.err (!%p9219_p6)
}
  0x4d   :  { %s9223_s14 = scalar_lea.vmem %s70_s20, 128  ;;  %p9228_p8 = scmp.lt.s32.totalorder %s70_s20, %s70_s20 }
  0x4e   :  { %p9224_p7 = scmp.ne.s32.totalorder %s70_s20, %s9223_s14  ;;  %p9229_p9 = scmp.lt.s32.totalorder %s9223_s14, %s9223_s14 }
  0x50   :  { %p9230_p10 = por %p9229_p9, %p9228_p8 }
  0x52   :  { %p9231_p11 = pnand %p9230_p10, %p9224_p7 }
  0x54   :  { %9234 = shalt.err (!%p9231_p11)
}
  0x55   :  { %72 = dma.hbm_to_vmem [thread:$0]  %s9760_s4, 128, %s70_s20, [#allocation9]  }
  0x56   :  { %s9298_s11 = smov [#allocation11]   ;;  %s9235_s17 = scalar_lea.hbm %s9762_s6, 16 }
  0x57   :  { %s81_s12 = sshll.u32 %s9298_s11, 4  ;;  %p9236_p12 = scmp.ne.s32.totalorder %s9762_s6, %s9235_s17  ;;  %s82_s12 = int_to_ptr.vmem [resolvable:$true] %s81_s12 }
  0x58   :  { %p9239_p13 = scmp.lt.u32.totalorder %s9235_s17, %s9762_s6 }
  0x5a   :  { %p9241_p0 = pnand %p9239_p13, %p9236_p12 }
  0x5c   :  { %9244 = shalt.err (!%p9241_p0)
}
  0x5d   :  { %s9245_s24 = scalar_lea.vmem %s82_s12, 16  ;;  %s9249_s4 = scalar_lea.vmem %s82_s12, 32 }
  0x5e   :  { %p9246_p1 = scmp.ne.s32.totalorder %s82_s12, %s9245_s24  ;;  %p9250_p2 = scmp.lt.s32.totalorder %s82_s12, %s82_s12 }
  0x5f   :  { %p9251_p3 = scmp.lt.s32.totalorder %s9249_s4, %s9245_s24 }
  0x61   :  { %p9252_p4 = por %p9251_p3, %p9250_p2 }
  0x63   :  { %p9253_p5 = pnand %p9252_p4, %p9246_p1 }
  0x65   :  { %9256 = shalt.err (!%p9253_p5)
}
  0x66   :  { %84 = dma.hbm_to_vmem [thread:$0]  %s9762_s6, 16, %s82_s12, [#allocation12]  }
  0x67   :  { %9279 = dma.done.wait [#allocation3], 896  }
  0x68   :  { %9280 = vsyncadd [#allocation3], 4294966400 }
  0x69   :  { %9281 = dma.done.wait [#allocation6], 50304  }
  0x6a   :  { %9282 = vsyncadd [#allocation6], 4294916992 }
  0x6b   :  { %9283 = dma.done.wait [#allocation9], 65664  }
  0x6c   :  { %9284 = vsyncadd [#allocation9], 4294901632 }
  0x6d   :  { %9285 = dma.done.wait [#allocation12], 16  }
  0x6e   :  { %9286 = vsyncadd [#allocation12], 4294967280  ;;  %v112_v0 = vld [vmem:[#allocation5] sm:$0xff]  ;;  %v113_v2 = vld [vmem:[#allocation5 + $0x8] sm:$0xff]  ;;  %vm2541_vm0 = vcmask 130048   ;;  %vm7766_vm1 = vcmask 97296  }
  0x6f   :  { %v116_v1 = vld [vmem:[#allocation5 + $0x20] sm:$0xff]  ;;  %v117_v4 = vld [vmem:[#allocation5 + $0x28] sm:$0xff]  ;;  %vm7787_vm2 = vcmask 80896   ;;  %vm7798_vm3 = vcmask 15360   ;;  %vm7801_vm4 = vcmask 97280   ;;  %s9301_s13 = smov [#allocation13]  }
  0x70   :  { %v7832_v3 = vcombine.high %v112_v0, %v116_v1  ;;  %v7831_v5 = vcombine.low %v112_v0, %v116_v1  ;;  %v120_v6 = vld [vmem:[#allocation5 + $0x40] sm:$0xff]  ;;  %v7834_v8 = vcombine.high %v113_v2, %v117_v4  ;;  %v7833_v9 = vcombine.low %v113_v2, %v117_v4  ;;  %v121_v11 = vld [vmem:[#allocation5 + $0x48] sm:$0xff]  ;;  %s7809_s14 = sshll.u32 %s9301_s13, 4  ;;  %s7810_s14 = int_to_ptr.vmem [resolvable:$true] %s7809_s14 }
  0x71   :  { %v124_v7 = vld [vmem:[#allocation5 + $0x60] sm:$0xff]  ;;  %v125_v12 = vld [vmem:[#allocation5 + $0x68] sm:$0xff]  ;;  %s9257_s2 = scalar_lea.vmem %s7810_s14, 256  ;;  %p9262_p7 = scmp.lt.s32.totalorder %s7810_s14, %s7810_s14 }
  0x72   :  { %v7840_v10 = vcombine.high %v120_v6, %v124_v7  ;;  %v128_v13 = vld [vmem:[#allocation5 + $0x80] sm:$0xff]  ;;  %2545 = vmatprep.subr.bf16.mxu0 %v7832_v3  ;;  %v7842_v14 = vcombine.high %v121_v11, %v125_v12  ;;  %v129_v16 = vld [vmem:[#allocation5 + $0x88] sm:$0xff]  ;;  %2717 = vmatprep.subr.bf16.mxu1 %v7834_v8  ;;  %v7839_v18 = vcombine.low %v120_v6, %v124_v7  ;;  %p9258_p6 = scmp.ne.s32.totalorder %s7810_s14, %s9257_s2  ;;  %p9263_p8 = scmp.lt.s32.totalorder %s9257_s2, %s9257_s2 }
  0x73   :  { %v132_v15 = vld [vmem:[#allocation5 + $0xa0] sm:$0xff]  ;;  %v133_v17 = vld [vmem:[#allocation5 + $0xa8] sm:$0xff]  ;;  %2546 = vmatpush1.bf16.msra.mxu0 %v7831_v5  ;;  %2718 = vmatpush1.bf16.msra.mxu1 %v7833_v9  ;;  %v7841_v19 = vcombine.low %v121_v11, %v125_v12 }
  0x74   :  { %2547 = vmatprep.subr.bf16.mxu0 %v7840_v10  ;;  %v7848_v20 = vcombine.high %v128_v13, %v132_v15  ;;  %2719 = vmatprep.subr.bf16.mxu1 %v7842_v14  ;;  %v7850_v21 = vcombine.high %v129_v16, %v133_v17  ;;  %v136_v22 = vld [vmem:[#allocation5 + $0xc0] sm:$0xff]  ;;  %v137_v24 = vld [vmem:[#allocation5 + $0xc8] sm:$0xff]  ;;  %v7847_v26 = vcombine.low %v128_v13, %v132_v15  ;;  %p9264_p9 = por %p9263_p8, %p9262_p7 }
  0x75   :  { %v140_v23 = vld [vmem:[#allocation5 + $0xe0] sm:$0xff]  ;;  %v141_v25 = vld [vmem:[#allocation5 + $0xe8] sm:$0xff]  ;;  %v7849_v27 = vcombine.low %v129_v16, %v133_v17 }
  0x76   :  { %v7856_v28 = vcombine.high %v136_v22, %v140_v23  ;;  %v7858_v29 = vcombine.high %v137_v24, %v141_v25  ;;  %v144_v30 = vld [vmem:[#allocation5 + $0x100] sm:$0xff]  ;;  %v145_v32 = vld [vmem:[#allocation5 + $0x108] sm:$0xff]  ;;  %v7855_v34 = vcombine.low %v136_v22, %v140_v23  ;;  %v7857_v35 = vcombine.low %v137_v24, %v141_v25  ;;  %p9265_p10 = pnand %p9264_p9, %p9258_p6 }
  0x77   :  { %2548 = vmatpush1.bf16.msra.mxu0 %v7839_v18  ;;  %2720 = vmatpush1.bf16.msra.mxu1 %v7841_v19  ;;  %v148_v31 = vld [vmem:[#allocation5 + $0x120] sm:$0xff]  ;;  %v149_v33 = vld [vmem:[#allocation5 + $0x128] sm:$0xff] }
  0x78   :  { %2549 = vmatprep.subr.bf16.mxu0 %v7848_v20  ;;  %2721 = vmatprep.subr.bf16.mxu1 %v7850_v21  ;;  %v7864_v36 = vcombine.high %v144_v30, %v148_v31  ;;  %v7866_v37 = vcombine.high %v145_v32, %v149_v33  ;;  %v152_v38 = vld [vmem:[#allocation5 + $0x140] sm:$0xff]  ;;  %v153_v40 = vld [vmem:[#allocation5 + $0x148] sm:$0xff]  ;;  %v7863_v42 = vcombine.low %v144_v30, %v148_v31 }
  0x79   :  { %v156_v39 = vld [vmem:[#allocation5 + $0x160] sm:$0xff]  ;;  %v157_v41 = vld [vmem:[#allocation5 + $0x168] sm:$0xff]  ;;  %v7865_v43 = vcombine.low %v145_v32, %v149_v33 }
  0x7a   :  { %v7872_v44 = vcombine.high %v152_v38, %v156_v39  ;;  %v7874_v45 = vcombine.high %v153_v40, %v157_v41  ;;  %v160_v46 = vld [vmem:[#allocation5 + $0x180] sm:$0xff]  ;;  %v161_v48 = vld [vmem:[#allocation5 + $0x188] sm:$0xff]  ;;  %v7871_v50 = vcombine.low %v152_v38, %v156_v39  ;;  %v7873_v51 = vcombine.low %v153_v40, %v157_v41 }
  0x7b   :  { %2550 = vmatpush1.bf16.msra.mxu0 %v7847_v26  ;;  %2722 = vmatpush1.bf16.msra.mxu1 %v7849_v27  ;;  %v164_v47 = vld [vmem:[#allocation5 + $0x1a0] sm:$0xff]  ;;  %v165_v49 = vld [vmem:[#allocation5 + $0x1a8] sm:$0xff] }
  0x7c   :  { %2551 = vmatprep.subr.bf16.mxu0 %v7856_v28  ;;  %2723 = vmatprep.subr.bf16.mxu1 %v7858_v29  ;;  %v7880_v52 = vcombine.high %v160_v46, %v164_v47  ;;  %v7882_v53 = vcombine.high %v161_v48, %v165_v49  ;;  %v168_v54 = vld [vmem:[#allocation5 + $0x1c0] sm:$0xff]  ;;  %v9035_v56 = vld [vmem:[#allocation2 + $0x4] ss:$28 sps:$4 sm:$0xff]   ;;  %v7879_v59 = vcombine.low %v160_v46, %v164_v47 }
  0x7d   :  { %v172_v55 = vld [vmem:[#allocation5 + $0x1e0] sm:$0xff]  ;;  %v169_v57 = vld [vmem:[#allocation5 + $0x1c8] sm:$0xff]  ;;  %2577 = vmatprep.mubr.bf16.mxu0 %v9035_v56  ;;  %v7881_v60 = vcombine.low %v161_v48, %v165_v49  ;;  %2749 = vmatprep.mubr.bf16.mxu1 %v9035_v56 }
  0x7e   :  { %v173_v58 = vld [vmem:[#allocation5 + $0x1e8] sm:$0xff]  ;;  %v7888_v61 = vcombine.high %v168_v54, %v172_v55  ;;  %v176_v63 = vld [vmem:[#allocation5 + $0x200] sm:$0xff]  ;;  %v7887_v3 = vcombine.low %v168_v54, %v172_v55 }
  0x7f   :  { %2552 = vmatpush1.bf16.msra.mxu0 %v7855_v34  ;;  %2724 = vmatpush1.bf16.msra.mxu1 %v7857_v35  ;;  %v7890_v62 = vcombine.high %v169_v57, %v173_v58  ;;  %v180_v0 = vld [vmem:[#allocation5 + $0x220] sm:$0xff]  ;;  %v177_v1 = vld [vmem:[#allocation5 + $0x208] sm:$0xff]  ;;  %v7889_v4 = vcombine.low %v169_v57, %v173_v58 }
  0x80   :  { %2553 = vmatprep.subr.bf16.mxu0 %v7864_v36  ;;  %2725 = vmatprep.subr.bf16.mxu1 %v7866_v37  ;;  %v181_v2 = vld [vmem:[#allocation5 + $0x228] sm:$0xff]  ;;  %v7896_v5 = vcombine.high %v176_v63, %v180_v0  ;;  %v184_v7 = vld [vmem:[#allocation5 + $0x240] sm:$0xff]  ;;  %v7895_v11 = vcombine.low %v176_v63, %v180_v0 }
  0x81   :  { %v7898_v6 = vcombine.high %v177_v1, %v181_v2  ;;  %v188_v8 = vld [vmem:[#allocation5 + $0x260] sm:$0xff]  ;;  %v185_v9 = vld [vmem:[#allocation5 + $0x248] sm:$0xff]  ;;  %v7897_v12 = vcombine.low %v177_v1, %v181_v2 }
  0x82   :  { %v189_v10 = vld [vmem:[#allocation5 + $0x268] sm:$0xff]  ;;  %v7904_v13 = vcombine.high %v184_v7, %v188_v8  ;;  %v192_v15 = vld [vmem:[#allocation5 + $0x280] sm:$0xff]  ;;  %v7903_v19 = vcombine.low %v184_v7, %v188_v8 }
  0x83   :  { %2554 = vmatpush1.bf16.msra.mxu0 %v7863_v42  ;;  %2726 = vmatpush1.bf16.msra.mxu1 %v7865_v43  ;;  %v7906_v14 = vcombine.high %v185_v9, %v189_v10  ;;  %v196_v16 = vld [vmem:[#allocation5 + $0x2a0] sm:$0xff]  ;;  %v193_v17 = vld [vmem:[#allocation5 + $0x288] sm:$0xff]  ;;  %v7905_v20 = vcombine.low %v185_v9, %v189_v10 }
  0x84   :  { %2555 = vmatprep.subr.bf16.mxu0 %v7872_v44  ;;  %2727 = vmatprep.subr.bf16.mxu1 %v7874_v45  ;;  %v197_v18 = vld [vmem:[#allocation5 + $0x2a8] sm:$0xff]  ;;  %v7912_v21 = vcombine.high %v192_v15, %v196_v16  ;;  %v200_v23 = vld [vmem:[#allocation5 + $0x2c0] sm:$0xff]  ;;  %v7911_v27 = vcombine.low %v192_v15, %v196_v16 }
  0x85   :  { %v7914_v22 = vcombine.high %v193_v17, %v197_v18  ;;  %v204_v24 = vld [vmem:[#allocation5 + $0x2e0] sm:$0xff]  ;;  %v201_v25 = vld [vmem:[#allocation5 + $0x2c8] sm:$0xff]  ;;  %v7913_v28 = vcombine.low %v193_v17, %v197_v18  ;;  %v9038_v18 = vld [vmem:[#allocation2 + $0xc] ss:$28 sps:$4 sm:$0xff]  }
  0x86   :  { %v205_v26 = vld [vmem:[#allocation5 + $0x2e8] sm:$0xff]  ;;  %v7920_v29 = vcombine.high %v200_v23, %v204_v24  ;;  %v208_v31 = vld [vmem:[#allocation5 + $0x300] sm:$0xff]  ;;  %v7919_v35 = vcombine.low %v200_v23, %v204_v24 }
  0x87   :  { %2556 = vmatpush1.bf16.msra.mxu0 %v7871_v50  ;;  %2728 = vmatpush1.bf16.msra.mxu1 %v7873_v51  ;;  %v7922_v30 = vcombine.high %v201_v25, %v205_v26  ;;  %v212_v32 = vld [vmem:[#allocation5 + $0x320] sm:$0xff]  ;;  %v209_v33 = vld [vmem:[#allocation5 + $0x308] sm:$0xff]  ;;  %v7921_v36 = vcombine.low %v201_v25, %v205_v26 }
  0x88   :  { %2557 = vmatprep.subr.bf16.mxu0 %v7880_v52  ;;  %2729 = vmatprep.subr.bf16.mxu1 %v7882_v53  ;;  %v213_v34 = vld [vmem:[#allocation5 + $0x328] sm:$0xff]  ;;  %v7928_v37 = vcombine.high %v208_v31, %v212_v32  ;;  %v216_v39 = vld [vmem:[#allocation5 + $0x340] sm:$0xff]  ;;  %v7927_v43 = vcombine.low %v208_v31, %v212_v32 }
  0x89   :  { %v7930_v38 = vcombine.high %v209_v33, %v213_v34  ;;  %v220_v40 = vld [vmem:[#allocation5 + $0x360] sm:$0xff]  ;;  %v217_v41 = vld [vmem:[#allocation5 + $0x348] sm:$0xff]  ;;  %v7929_v44 = vcombine.low %v209_v33, %v213_v34 }
  0x8a   :  { %v221_v42 = vld [vmem:[#allocation5 + $0x368] sm:$0xff]  ;;  %v7936_v45 = vcombine.high %v216_v39, %v220_v40  ;;  %v224_v47 = vld [vmem:[#allocation5 + $0x380] sm:$0xff]  ;;  %v7935_v51 = vcombine.low %v216_v39, %v220_v40 }
  0x8b   :  { %2558 = vmatpush1.bf16.msra.mxu0 %v7879_v59  ;;  %2730 = vmatpush1.bf16.msra.mxu1 %v7881_v60  ;;  %v7938_v46 = vcombine.high %v217_v41, %v221_v42  ;;  %v228_v48 = vld [vmem:[#allocation5 + $0x3a0] sm:$0xff]  ;;  %v225_v49 = vld [vmem:[#allocation5 + $0x388] sm:$0xff]  ;;  %v7937_v52 = vcombine.low %v217_v41, %v221_v42 }
  0x8c   :  { %2559 = vmatprep.subr.bf16.mxu0 %v7888_v61  ;;  %2731 = vmatprep.subr.bf16.mxu1 %v7890_v62  ;;  %v229_v50 = vld [vmem:[#allocation5 + $0x3a8] sm:$0xff]  ;;  %v7944_v53 = vcombine.high %v224_v47, %v228_v48  ;;  %v232_v55 = vld [vmem:[#allocation5 + $0x3c0] sm:$0xff]  ;;  %v7943_v59 = vcombine.low %v224_v47, %v228_v48 }
  0x8d   :  { %v7946_v54 = vcombine.high %v225_v49, %v229_v50  ;;  %v236_v56 = vld [vmem:[#allocation5 + $0x3e0] sm:$0xff]  ;;  %v233_v57 = vld [vmem:[#allocation5 + $0x3c8] sm:$0xff]  ;;  %v7945_v60 = vcombine.low %v225_v49, %v229_v50 }
  0x8e   :  { %v237_v58 = vld [vmem:[#allocation5 + $0x3e8] sm:$0xff]  ;;  %v7952_v61 = vcombine.high %v232_v55, %v236_v56  ;;  %v240_v63 = vld [vmem:[#allocation5 + $0x400] sm:$0xff] }
  0x8f   :  { %2560 = vmatpush1.bf16.msra.mxu0 %v7887_v3  ;;  %2732 = vmatpush1.bf16.msra.mxu1 %v7889_v4  ;;  %v7954_v62 = vcombine.high %v233_v57, %v237_v58  ;;  %v244_v0 = vld [vmem:[#allocation5 + $0x420] sm:$0xff]  ;;  %v241_v1 = vld [vmem:[#allocation5 + $0x408] sm:$0xff]  ;;  %v7951_v3 = vcombine.low %v232_v55, %v236_v56  ;;  %v7953_v4 = vcombine.low %v233_v57, %v237_v58 }
  0x90   :  { %2561 = vmatprep.subr.bf16.mxu0 %v7896_v5  ;;  %2733 = vmatprep.subr.bf16.mxu1 %v7898_v6  ;;  %v245_v2 = vld [vmem:[#allocation5 + $0x428] sm:$0xff]  ;;  %v7960_v5 = vcombine.high %v240_v63, %v244_v0  ;;  %v248_v7 = vld [vmem:[#allocation5 + $0x440] sm:$0xff] }
  0x91   :  { %v7962_v6 = vcombine.high %v241_v1, %v245_v2  ;;  %v252_v8 = vld [vmem:[#allocation5 + $0x460] sm:$0xff]  ;;  %v249_v10 = vld [vmem:[#allocation5 + $0x448] sm:$0xff] }
  0x92   :  { %v9037_v9 = vld [vmem:[#allocation2] ss:$28 sps:$4 sm:$0xff]  }
  0x93   :  { %2562 = vmatpush1.bf16.msra.mxu0 %v7895_v11  ;;  %2734 = vmatpush1.bf16.msra.mxu1 %v7897_v12  ;;  %v253_v11 = vld [vmem:[#allocation5 + $0x468] sm:$0xff]  ;;  %v7959_v12 = vcombine.low %v240_v63, %v244_v0  ;;  %v256_v15 = vld [vmem:[#allocation5 + $0x480] sm:$0xff] }
  0x94   :  { %2563 = vmatprep.subr.bf16.mxu0 %v7904_v13  ;;  %2735 = vmatprep.subr.bf16.mxu1 %v7906_v14  ;;  %v7961_v13 = vcombine.low %v241_v1, %v245_v2  ;;  %v7968_v14 = vcombine.high %v248_v7, %v252_v8  ;;  %v7970_v16 = vcombine.high %v249_v10, %v253_v11  ;;  %v260_v17 = vld [vmem:[#allocation5 + $0x4a0] sm:$0xff]  ;;  %v273_v34 = vld [vmem:[#allocation5 + $0x508] sm:$0xff] }
  0x95   :  { %v7976_v23 = vcombine.high %v256_v15, %v260_v17  ;;  %v264_v25 = vld [vmem:[#allocation5 + $0x4c0] sm:$0xff]  ;;  %v281_v42 = vld [vmem:[#allocation5 + $0x548] sm:$0xff] }
  0x96   :  { %v268_v26 = vld [vmem:[#allocation5 + $0x4e0] sm:$0xff]  ;;  %v289_v50 = vld [vmem:[#allocation5 + $0x588] sm:$0xff] }
  0x97   :  { %2564 = vmatpush1.bf16.msra.mxu0 %v7903_v19  ;;  %2736 = vmatpush1.bf16.msra.mxu1 %v7905_v20  ;;  %v257_v19 = vld [vmem:[#allocation5 + $0x488] sm:$0xff]  ;;  %v276_v31 = vld [vmem:[#allocation5 + $0x520] sm:$0xff]  ;;  %v7984_v33 = vcombine.high %v264_v25, %v268_v26 }
  0x98   :  { %2565 = vmatprep.subr.bf16.mxu0 %v7912_v21  ;;  %2737 = vmatprep.subr.bf16.mxu1 %v7914_v22  ;;  %v261_v20 = vld [vmem:[#allocation5 + $0x4a8] sm:$0xff]  ;;  %v7967_v21 = vcombine.low %v248_v7, %v252_v8  ;;  %v7969_v22 = vcombine.low %v249_v10, %v253_v11  ;;  %v284_v39 = vld [vmem:[#allocation5 + $0x560] sm:$0xff] }
  0x99   :  { %v7978_v24 = vcombine.high %v257_v19, %v261_v20  ;;  %v7977_v32 = vcombine.low %v257_v19, %v261_v20  ;;  %v288_v48 = vld [vmem:[#allocation5 + $0x580] sm:$0xff]  ;;  %v297_v58 = vld [vmem:[#allocation5 + $0x5c8] sm:$0xff] }
  0x9a   :  { %v292_v49 = vld [vmem:[#allocation5 + $0x5a0] sm:$0xff]  ;;  %v305_v2 = vld [vmem:[#allocation5 + $0x608] sm:$0xff] }
  0x9b   :  { %2566 = vmatpush1.bf16.msra.mxu0 %v7911_v27  ;;  %2738 = vmatpush1.bf16.msra.mxu1 %v7913_v28  ;;  %v265_v27 = vld [vmem:[#allocation5 + $0x4c8] sm:$0xff]  ;;  %v8008_v55 = vcombine.high %v288_v48, %v292_v49  ;;  %v296_v56 = vld [vmem:[#allocation5 + $0x5c0] sm:$0xff] }
  0x9c   :  { %2567 = vmatprep.subr.bf16.mxu0 %v7920_v29  ;;  %2739 = vmatprep.subr.bf16.mxu1 %v7922_v30  ;;  %v269_v28 = vld [vmem:[#allocation5 + $0x4e8] sm:$0xff]  ;;  %v7975_v29 = vcombine.low %v256_v15, %v260_v17  ;;  %v272_v30 = vld [vmem:[#allocation5 + $0x500] sm:$0xff] }
  0x9d   :  { %v7985_v40 = vcombine.low %v265_v27, %v269_v28  ;;  %v7992_v41 = vcombine.high %v272_v30, %v276_v31  ;;  %v300_v57 = vld [vmem:[#allocation5 + $0x5e0] sm:$0xff]  ;;  %v313_v10 = vld [vmem:[#allocation5 + $0x648] sm:$0xff] }
  0x9e   :  { %v8016_v63 = vcombine.high %v296_v56, %v300_v57  ;;  %v304_v0 = vld [vmem:[#allocation5 + $0x600] sm:$0xff]  ;;  %v325_v20 = vld [vmem:[#allocation5 + $0x6a8] sm:$0xff] }
  0x9f   :  { %2568 = vmatpush1.bf16.msra.mxu0 %v7919_v35  ;;  %2740 = vmatpush1.bf16.msra.mxu1 %v7921_v36  ;;  %v277_v35 = vld [vmem:[#allocation5 + $0x528] sm:$0xff]  ;;  %v7986_v36 = vcombine.high %v265_v27, %v269_v28  ;;  %v308_v1 = vld [vmem:[#allocation5 + $0x620] sm:$0xff] }
  0xa0   :  { %2569 = vmatprep.subr.bf16.mxu0 %v7928_v37  ;;  %2741 = vmatprep.subr.bf16.mxu1 %v7930_v38  ;;  %v7983_v37 = vcombine.low %v264_v25, %v268_v26  ;;  %v280_v38 = vld [vmem:[#allocation5 + $0x540] sm:$0xff]  ;;  %v8024_v7 = vcombine.high %v304_v0, %v308_v1  ;;  %v329_v26 = vld [vmem:[#allocation5 + $0x6c8] sm:$0xff] }
  0xa1   :  { %v8000_v47 = vcombine.high %v280_v38, %v284_v39  ;;  %v312_v8 = vld [vmem:[#allocation5 + $0x640] sm:$0xff]  ;;  %v333_v28 = vld [vmem:[#allocation5 + $0x6e8] sm:$0xff] }
  0xa2   :  { %v324_v17 = vld [vmem:[#allocation5 + $0x6a0] sm:$0xff] }
  0xa3   :  { %2570 = vmatpush1.bf16.msra.mxu0 %v7927_v43  ;;  %2742 = vmatpush1.bf16.msra.mxu1 %v7929_v44  ;;  %v285_v43 = vld [vmem:[#allocation5 + $0x568] sm:$0xff]  ;;  %v7994_v44 = vcombine.high %v273_v34, %v277_v35  ;;  %v332_v25 = vld [vmem:[#allocation5 + $0x6e0] sm:$0xff] }
  0xa4   :  { %2571 = vmatprep.subr.bf16.mxu0 %v7936_v45  ;;  %2743 = vmatprep.subr.bf16.mxu1 %v7938_v46  ;;  %v7991_v45 = vcombine.low %v272_v30, %v276_v31  ;;  %v7993_v46 = vcombine.low %v273_v34, %v277_v35  ;;  %v337_v34 = vld [vmem:[#allocation5 + $0x708] sm:$0xff]  ;;  %v8050_v35 = vcombine.high %v329_v26, %v333_v28 }
  0xa7   :  { %2572 = vmatpush1.bf16.msra.mxu0 %v7935_v51  ;;  %2744 = vmatpush1.bf16.msra.mxu1 %v7937_v52  ;;  %v8002_v51 = vcombine.high %v281_v42, %v285_v43  ;;  %v293_v52 = vld [vmem:[#allocation5 + $0x5a8] sm:$0xff] }
  0xa8   :  { %2573 = vmatprep.subr.bf16.mxu0 %v7944_v53  ;;  %2745 = vmatprep.subr.bf16.mxu1 %v7946_v54  ;;  %v7999_v53 = vcombine.low %v280_v38, %v284_v39  ;;  %v8001_v54 = vcombine.low %v281_v42, %v285_v43  ;;  %v8049_v38 = vcombine.low %v329_v26, %v333_v28  ;;  %v345_v42 = vld [vmem:[#allocation5 + $0x748] sm:$0xff]  ;;  %v396_v28 = vld [vmem:[#allocation5 + $0x8e0] sm:$0xff] }
  0xab   :  { %2574 = vmatpush1.bf16.msra.mxu0 %v7943_v59  ;;  %2746 = vmatpush1.bf16.msra.mxu1 %v7945_v60  ;;  %v8010_v59 = vcombine.high %v289_v50, %v293_v52  ;;  %v301_v60 = vld [vmem:[#allocation5 + $0x5e8] sm:$0xff] }
  0xac   :  { %2575 = vmatprep.subr.bf16.mxu0 %v7952_v61  ;;  %2747 = vmatprep.subr.bf16.mxu1 %v7954_v62  ;;  %v8007_v61 = vcombine.low %v288_v48, %v292_v49  ;;  %v8009_v62 = vcombine.low %v289_v50, %v293_v52  ;;  %v352_v48 = vld [vmem:[#allocation5 + $0x780] sm:$0xff]  ;;  %v353_v50 = vld [vmem:[#allocation5 + $0x788] sm:$0xff] }
  0xad   :  { %v356_v49 = vld [vmem:[#allocation5 + $0x7a0] sm:$0xff]  ;;  %v357_v52 = vld [vmem:[#allocation5 + $0x7a8] sm:$0xff] }
  0xaf   :  { %2576 = vmatpush1.bf16.msra.mxu0 %v7951_v3  ;;  %2748 = vmatpush1.bf16.msra.mxu1 %v7953_v4  ;;  %v8018_v3 = vcombine.high %v297_v58, %v301_v60  ;;  %v309_v4 = vld [vmem:[#allocation5 + $0x628] sm:$0xff] }
  0xb0   :  { %2588 = vmatprep.subr.bf16.mxu0 %v7960_v5  ;;  %2760 = vmatprep.subr.bf16.mxu1 %v7962_v6  ;;  %v8015_v5 = vcombine.low %v296_v56, %v300_v57  ;;  %v8017_v6 = vcombine.low %v297_v58, %v301_v60  ;;  %v8026_v11 = vcombine.high %v305_v2, %v309_v4  ;;  %v360_v56 = vld [vmem:[#allocation5 + $0x7c0] sm:$0xff]  ;;  %v361_v58 = vld [vmem:[#allocation5 + $0x7c8] sm:$0xff] }
  0xb1   :  { %v364_v57 = vld [vmem:[#allocation5 + $0x7e0] sm:$0xff]  ;;  %v365_v60 = vld [vmem:[#allocation5 + $0x7e8] sm:$0xff] }
  0xb2   :  { %2578 = vmatmul.mubr.bf16.vlgmr.msra.gmra.mrb[0].mxu0 %v9037_v9  ;;  %2750 = vmatmul.mubr.bf16.vlgmr.msra.gmra.mrb[0].mxu1 %v9037_v9  ;;  %v316_v9 = vld [vmem:[#allocation5 + $0x660] sm:$0xff] }
  0xb3   :  { %2589 = vmatpush1.bf16.msra.mxu0 %v7959_v12  ;;  %2761 = vmatpush1.bf16.msra.mxu1 %v7961_v13  ;;  %v317_v12 = vld [vmem:[#allocation5 + $0x668] sm:$0xff]  ;;  %v8023_v13 = vcombine.low %v304_v0, %v308_v1  ;;  %v8032_v15 = vcombine.high %v312_v8, %v316_v9  ;;  %v368_v0 = vld [vmem:[#allocation5 + $0x800] sm:$0xff] }
  0xb4   :  { %2590 = vmatprep.subr.bf16.mxu0 %v7968_v14  ;;  %2762 = vmatprep.subr.bf16.mxu1 %v7970_v16  ;;  %v8025_v14 = vcombine.low %v305_v2, %v309_v4  ;;  %v320_v16 = vld [vmem:[#allocation5 + $0x680] sm:$0xff]  ;;  %v8034_v19 = vcombine.high %v313_v10, %v317_v12  ;;  %v369_v2 = vld [vmem:[#allocation5 + $0x808] sm:$0xff] }
  0xb5   :  { %2620 = vmatprep.mubr.bf16.mxu0 %v9038_v18  ;;  %2792 = vmatprep.mubr.bf16.mxu1 %v9038_v18  ;;  %v321_v18 = vld [vmem:[#allocation5 + $0x688] sm:$0xff]  ;;  %v372_v1 = vld [vmem:[#allocation5 + $0x820] sm:$0xff] }
  0xb6   :  { %v8042_v27 = vcombine.high %v321_v18, %v325_v20  ;;  %v8041_v30 = vcombine.low %v321_v18, %v325_v20  ;;  %v373_v4 = vld [vmem:[#allocation5 + $0x828] sm:$0xff]  ;;  %v388_v18 = vld [vmem:[#allocation5 + $0x8a0] sm:$0xff] }
  0xb7   :  { %2591 = vmatpush1.bf16.msra.mxu0 %v7967_v21  ;;  %2763 = vmatpush1.bf16.msra.mxu1 %v7969_v22  ;;  %v8031_v21 = vcombine.low %v312_v8, %v316_v9  ;;  %v8033_v22 = vcombine.low %v313_v10, %v317_v12  ;;  %v9040_v8 = vld [vmem:[#allocation2 + $0x8] ss:$28 sps:$4 sm:$0xff]   ;;  %v376_v9 = vld [vmem:[#allocation5 + $0x840] sm:$0xff]  ;;  %v8090_v12 = vcombine.high %v369_v2, %v373_v4 }
  0xb8   :  { %2592 = vmatprep.subr.bf16.mxu0 %v7976_v23  ;;  %2764 = vmatprep.subr.bf16.mxu1 %v7978_v24  ;;  %v8040_v23 = vcombine.high %v320_v16, %v324_v17  ;;  %v328_v24 = vld [vmem:[#allocation5 + $0x6c0] sm:$0xff] }
  0xb9   :  { %v8048_v31 = vcombine.high %v328_v24, %v332_v25  ;;  %v380_v10 = vld [vmem:[#allocation5 + $0x860] sm:$0xff] }
  0xbb   :  { %2593 = vmatpush1.bf16.msra.mxu0 %v7975_v29  ;;  %2765 = vmatpush1.bf16.msra.mxu1 %v7977_v32  ;;  %v8039_v29 = vcombine.low %v320_v16, %v324_v17  ;;  %v336_v32 = vld [vmem:[#allocation5 + $0x700] sm:$0xff]  ;;  %v8096_v16 = vcombine.high %v376_v9, %v380_v10 }
  0xbc   :  { %2594 = vmatprep.subr.bf16.mxu0 %v7984_v33  ;;  %2766 = vmatprep.subr.bf16.mxu1 %v7986_v36  ;;  %v340_v33 = vld [vmem:[#allocation5 + $0x720] sm:$0xff]  ;;  %v341_v36 = vld [vmem:[#allocation5 + $0x728] sm:$0xff] }
  0xbd   :  { %v8056_v39 = vcombine.high %v336_v32, %v340_v33  ;;  %v8058_v43 = vcombine.high %v337_v34, %v341_v36  ;;  %v384_v17 = vld [vmem:[#allocation5 + $0x880] sm:$0xff] }
  0xbf   :  { %2595 = vmatpush1.bf16.msra.mxu0 %v7983_v37  ;;  %2767 = vmatpush1.bf16.msra.mxu1 %v7985_v40  ;;  %v8047_v37 = vcombine.low %v328_v24, %v332_v25  ;;  %v344_v40 = vld [vmem:[#allocation5 + $0x740] sm:$0xff]  ;;  %v8104_v25 = vcombine.high %v384_v17, %v388_v18 }
  0xc0   :  { %2596 = vmatprep.subr.bf16.mxu0 %v7992_v41  ;;  %2768 = vmatprep.subr.bf16.mxu1 %v7994_v44  ;;  %v348_v41 = vld [vmem:[#allocation5 + $0x760] sm:$0xff]  ;;  %v349_v44 = vld [vmem:[#allocation5 + $0x768] sm:$0xff] }
  0xc3   :  { %2597 = vmatpush1.bf16.msra.mxu0 %v7991_v45  ;;  %2769 = vmatpush1.bf16.msra.mxu1 %v7993_v46  ;;  %v8055_v45 = vcombine.low %v336_v32, %v340_v33  ;;  %v8057_v46 = vcombine.low %v337_v34, %v341_v36  ;;  %v404_v36 = vld [vmem:[#allocation5 + $0x920] sm:$0xff] }
  0xc4   :  { %2598 = vmatprep.subr.bf16.mxu0 %v8000_v47  ;;  %2770 = vmatprep.subr.bf16.mxu1 %v8002_v51  ;;  %v8064_v47 = vcombine.high %v344_v40, %v348_v41  ;;  %v8066_v51 = vcombine.high %v345_v42, %v349_v44 }
  0xc7   :  { %2599 = vmatpush1.bf16.msra.mxu0 %v7999_v53  ;;  %2771 = vmatpush1.bf16.msra.mxu1 %v8001_v54  ;;  %v8063_v53 = vcombine.low %v344_v40, %v348_v41  ;;  %v8065_v54 = vcombine.low %v345_v42, %v349_v44  ;;  %v412_v44 = vld [vmem:[#allocation5 + $0x960] sm:$0xff] }
  0xc8   :  { %2600 = vmatprep.subr.bf16.mxu0 %v8008_v55  ;;  %2772 = vmatprep.subr.bf16.mxu1 %v8010_v59  ;;  %v8072_v55 = vcombine.high %v352_v48, %v356_v49  ;;  %v8074_v59 = vcombine.high %v353_v50, %v357_v52 }
  0xcb   :  { %2601 = vmatpush1.bf16.msra.mxu0 %v8007_v61  ;;  %2773 = vmatpush1.bf16.msra.mxu1 %v8009_v62  ;;  %v8071_v61 = vcombine.low %v352_v48, %v356_v49  ;;  %v8073_v62 = vcombine.low %v353_v50, %v357_v52  ;;  %v420_v52 = vld [vmem:[#allocation5 + $0x9a0] sm:$0xff] }
  0xcc   :  { %2602 = vmatprep.subr.bf16.mxu0 %v8016_v63  ;;  %2774 = vmatprep.subr.bf16.mxu1 %v8018_v3  ;;  %v8080_v63 = vcombine.high %v360_v56, %v364_v57  ;;  %v8082_v3 = vcombine.high %v361_v58, %v365_v60 }
  0xcf   :  { %2603 = vmatpush1.bf16.msra.mxu0 %v8015_v5  ;;  %2775 = vmatpush1.bf16.msra.mxu1 %v8017_v6  ;;  %v8079_v5 = vcombine.low %v360_v56, %v364_v57  ;;  %v8081_v6 = vcombine.low %v361_v58, %v365_v60  ;;  %v428_v60 = vld [vmem:[#allocation5 + $0x9e0] sm:$0xff] }
  0xd0   :  { %2604 = vmatprep.subr.bf16.mxu0 %v8024_v7  ;;  %2776 = vmatprep.subr.bf16.mxu1 %v8026_v11  ;;  %v8088_v7 = vcombine.high %v368_v0, %v372_v1  ;;  %v377_v11 = vld [vmem:[#allocation5 + $0x848] sm:$0xff] }
  0xd3   :  { %2605 = vmatpush1.bf16.msra.mxu0 %v8023_v13  ;;  %2777 = vmatpush1.bf16.msra.mxu1 %v8025_v14  ;;  %v381_v13 = vld [vmem:[#allocation5 + $0x868] sm:$0xff]  ;;  %v8087_v14 = vcombine.low %v368_v0, %v372_v1 }
  0xd4   :  { %2606 = vmatprep.subr.bf16.mxu0 %v8032_v15  ;;  %2778 = vmatprep.subr.bf16.mxu1 %v8034_v19  ;;  %v8089_v15 = vcombine.low %v369_v2, %v373_v4  ;;  %v385_v19 = vld [vmem:[#allocation5 + $0x888] sm:$0xff]  ;;  %v8098_v20 = vcombine.high %v377_v11, %v381_v13  ;;  %v8097_v24 = vcombine.low %v377_v11, %v381_v13  ;;  %v436_v4 = vld [vmem:[#allocation5 + $0xa20] sm:$0xff] }
  0xd5   :  { %v440_v11 = vld [vmem:[#allocation5 + $0xa40] sm:$0xff]  ;;  %v441_v13 = vld [vmem:[#allocation5 + $0xa48] sm:$0xff] }
  0xd7   :  { %2607 = vmatpush1.bf16.msra.mxu0 %v8031_v21  ;;  %2779 = vmatpush1.bf16.msra.mxu1 %v8033_v22  ;;  %v9041_v21 = vld [vmem:[#allocation2 + $0x14] ss:$28 sps:$4 sm:$0xff]   ;;  %v389_v22 = vld [vmem:[#allocation5 + $0x8a8] sm:$0xff] }
  0xd8   :  { %2608 = vmatprep.subr.bf16.mxu0 %v8040_v23  ;;  %2780 = vmatprep.subr.bf16.mxu1 %v8042_v27  ;;  %v8095_v23 = vcombine.low %v376_v9, %v380_v10  ;;  %v8106_v26 = vcombine.high %v385_v19, %v389_v22  ;;  %v392_v27 = vld [vmem:[#allocation5 + $0x8c0] sm:$0xff]  ;;  %v8105_v32 = vcombine.low %v385_v19, %v389_v22  ;;  %v453_v22 = vld [vmem:[#allocation5 + $0xaa8] sm:$0xff] }
  0xd9   :  { %v8112_v33 = vcombine.high %v392_v27, %v396_v28  ;;  %v448_v19 = vld [vmem:[#allocation5 + $0xa80] sm:$0xff] }
  0xdb   :  { %2609 = vmatpush1.bf16.msra.mxu0 %v8039_v29  ;;  %2781 = vmatpush1.bf16.msra.mxu1 %v8041_v30  ;;  %v393_v29 = vld [vmem:[#allocation5 + $0x8c8] sm:$0xff] }
  0xdc   :  { %2610 = vmatprep.subr.bf16.mxu0 %v8048_v31  ;;  %2782 = vmatprep.subr.bf16.mxu1 %v8050_v35  ;;  %v397_v30 = vld [vmem:[#allocation5 + $0x8e8] sm:$0xff]  ;;  %v8103_v31 = vcombine.low %v384_v17, %v388_v18  ;;  %v400_v35 = vld [vmem:[#allocation5 + $0x900] sm:$0xff] }
  0xdd   :  { %v8114_v34 = vcombine.high %v393_v29, %v397_v30  ;;  %v8113_v40 = vcombine.low %v393_v29, %v397_v30  ;;  %v8120_v41 = vcombine.high %v400_v35, %v404_v36  ;;  %v457_v29 = vld [vmem:[#allocation5 + $0xac8] sm:$0xff] }
  0xde   :  { %v461_v30 = vld [vmem:[#allocation5 + $0xae8] sm:$0xff] }
  0xdf   :  { %2611 = vmatpush1.bf16.msra.mxu0 %v8047_v37  ;;  %2783 = vmatpush1.bf16.msra.mxu1 %v8049_v38  ;;  %v401_v37 = vld [vmem:[#allocation5 + $0x908] sm:$0xff] }
  0xe0   :  { %2612 = vmatprep.subr.bf16.mxu0 %v8056_v39  ;;  %2784 = vmatprep.subr.bf16.mxu1 %v8058_v43  ;;  %v405_v38 = vld [vmem:[#allocation5 + $0x928] sm:$0xff]  ;;  %v8111_v39 = vcombine.low %v392_v27, %v396_v28  ;;  %v408_v43 = vld [vmem:[#allocation5 + $0x940] sm:$0xff] }
  0xe1   :  { %v8122_v42 = vcombine.high %v401_v37, %v405_v38  ;;  %v8121_v48 = vcombine.low %v401_v37, %v405_v38  ;;  %v8128_v49 = vcombine.high %v408_v43, %v412_v44  ;;  %v456_v27 = vld [vmem:[#allocation5 + $0xac0] sm:$0xff]  ;;  %v465_v37 = vld [vmem:[#allocation5 + $0xb08] sm:$0xff] }
  0xe2   :  { %v460_v28 = vld [vmem:[#allocation5 + $0xae0] sm:$0xff]  ;;  %v469_v38 = vld [vmem:[#allocation5 + $0xb28] sm:$0xff] }
  0xe3   :  { %2613 = vmatpush1.bf16.msra.mxu0 %v8055_v45  ;;  %2785 = vmatpush1.bf16.msra.mxu1 %v8057_v46  ;;  %v409_v45 = vld [vmem:[#allocation5 + $0x948] sm:$0xff] }
  0xe4   :  { %2614 = vmatprep.subr.bf16.mxu0 %v8064_v47  ;;  %2786 = vmatprep.subr.bf16.mxu1 %v8066_v51  ;;  %v413_v46 = vld [vmem:[#allocation5 + $0x968] sm:$0xff]  ;;  %v8119_v47 = vcombine.low %v400_v35, %v404_v36  ;;  %v416_v51 = vld [vmem:[#allocation5 + $0x980] sm:$0xff] }
  0xe5   :  { %v8130_v50 = vcombine.high %v409_v45, %v413_v46  ;;  %v8129_v56 = vcombine.low %v409_v45, %v413_v46  ;;  %v8136_v57 = vcombine.high %v416_v51, %v420_v52  ;;  %v464_v35 = vld [vmem:[#allocation5 + $0xb00] sm:$0xff]  ;;  %v473_v45 = vld [vmem:[#allocation5 + $0xb48] sm:$0xff] }
  0xe6   :  { %v468_v36 = vld [vmem:[#allocation5 + $0xb20] sm:$0xff]  ;;  %v477_v46 = vld [vmem:[#allocation5 + $0xb68] sm:$0xff] }
  0xe7   :  { %2615 = vmatpush1.bf16.msra.mxu0 %v8063_v53  ;;  %2787 = vmatpush1.bf16.msra.mxu1 %v8065_v54  ;;  %v417_v53 = vld [vmem:[#allocation5 + $0x988] sm:$0xff] }
  0xe8   :  { %2616 = vmatprep.subr.bf16.mxu0 %v8072_v55  ;;  %2788 = vmatprep.subr.bf16.mxu1 %v8074_v59  ;;  %v421_v54 = vld [vmem:[#allocation5 + $0x9a8] sm:$0xff]  ;;  %v8127_v55 = vcombine.low %v408_v43, %v412_v44  ;;  %v424_v59 = vld [vmem:[#allocation5 + $0x9c0] sm:$0xff] }
  0xe9   :  { %v8138_v58 = vcombine.high %v417_v53, %v421_v54  ;;  %v8137_v0 = vcombine.low %v417_v53, %v421_v54  ;;  %v8144_v1 = vcombine.high %v424_v59, %v428_v60  ;;  %v472_v43 = vld [vmem:[#allocation5 + $0xb40] sm:$0xff]  ;;  %v481_v53 = vld [vmem:[#allocation5 + $0xb88] sm:$0xff] }
  0xea   :  { %v476_v44 = vld [vmem:[#allocation5 + $0xb60] sm:$0xff]  ;;  %v485_v54 = vld [vmem:[#allocation5 + $0xba8] sm:$0xff] }
  0xeb   :  { %2617 = vmatpush1.bf16.msra.mxu0 %v8071_v61  ;;  %2789 = vmatpush1.bf16.msra.mxu1 %v8073_v62  ;;  %v425_v61 = vld [vmem:[#allocation5 + $0x9c8] sm:$0xff] }
  0xec   :  { %2618 = vmatprep.subr.bf16.mxu0 %v8080_v63  ;;  %2790 = vmatprep.subr.bf16.mxu1 %v8082_v3  ;;  %v429_v62 = vld [vmem:[#allocation5 + $0x9e8] sm:$0xff]  ;;  %v8135_v63 = vcombine.low %v416_v51, %v420_v52  ;;  %v432_v3 = vld [vmem:[#allocation5 + $0xa00] sm:$0xff] }
  0xed   :  { %v8146_v2 = vcombine.high %v425_v61, %v429_v62  ;;  %v8152_v9 = vcombine.high %v432_v3, %v436_v4  ;;  %v480_v51 = vld [vmem:[#allocation5 + $0xb80] sm:$0xff] }
  0xee   :  { %v484_v52 = vld [vmem:[#allocation5 + $0xba0] sm:$0xff] }
  0xef   :  { %2619 = vmatpush1.bf16.msra.mxu0 %v8079_v5  ;;  %2791 = vmatpush1.bf16.msra.mxu1 %v8081_v6  ;;  %v433_v5 = vld [vmem:[#allocation5 + $0xa08] sm:$0xff] }
  0xf0   :  { %2631 = vmatprep.subr.bf16.mxu0 %v8088_v7  ;;  %2803 = vmatprep.subr.bf16.mxu1 %v8090_v12  ;;  %v437_v6 = vld [vmem:[#allocation5 + $0xa28] sm:$0xff]  ;;  %v8143_v7 = vcombine.low %v424_v59, %v428_v60  ;;  %v444_v12 = vld [vmem:[#allocation5 + $0xa60] sm:$0xff] }
  0xf1   :  { %v8154_v10 = vcombine.high %v433_v5, %v437_v6  ;;  %v8160_v17 = vcombine.high %v440_v11, %v444_v12  ;;  %v488_v59 = vld [vmem:[#allocation5 + $0xbc0] sm:$0xff] }
  0xf2   :  { %2621 = vmatmul.mubr.bf16.vlgmr.msra.gmra.mrb[0].mxu0 %v9040_v8  ;;  %2793 = vmatmul.mubr.bf16.vlgmr.msra.gmra.mrb[0].mxu1 %v9040_v8  ;;  %v8145_v8 = vcombine.low %v425_v61, %v429_v62  ;;  %v492_v60 = vld [vmem:[#allocation5 + $0xbe0] sm:$0xff]  ;;  %v489_v61 = vld [vmem:[#allocation5 + $0xbc8] sm:$0xff] }
  0xf3   :  { %2632 = vmatpush1.bf16.msra.mxu0 %v8087_v14  ;;  %2804 = vmatpush1.bf16.msra.mxu1 %v8089_v15  ;;  %v445_v14 = vld [vmem:[#allocation5 + $0xa68] sm:$0xff]  ;;  %v8151_v15 = vcombine.low %v432_v3, %v436_v4  ;;  %v496_v3 = vld [vmem:[#allocation5 + $0xc00] sm:$0xff] }
  0xf4   :  { %2633 = vmatprep.subr.bf16.mxu0 %v8096_v16  ;;  %2805 = vmatprep.subr.bf16.mxu1 %v8098_v20  ;;  %v8153_v16 = vcombine.low %v433_v5, %v437_v6  ;;  %v8162_v18 = vcombine.high %v441_v13, %v445_v14  ;;  %v452_v20 = vld [vmem:[#allocation5 + $0xaa0] sm:$0xff]  ;;  %v493_v62 = vld [vmem:[#allocation5 + $0xbe8] sm:$0xff] }
  0xf5   :  { %2663 = vmatprep.mubr.bf16.mxu0 %v9041_v21  ;;  %2835 = vmatprep.mubr.bf16.mxu1 %v9041_v21  ;;  %v449_v21 = vld [vmem:[#allocation5 + $0xa88] sm:$0xff]  ;;  %v500_v4 = vld [vmem:[#allocation5 + $0xc20] sm:$0xff] }
  0xf6   :  { %v497_v5 = vld [vmem:[#allocation5 + $0xc08] sm:$0xff] }
  0xf7   :  { %2634 = vmatpush1.bf16.msra.mxu0 %v8095_v23  ;;  %2806 = vmatpush1.bf16.msra.mxu1 %v8097_v24  ;;  %v8159_v23 = vcombine.low %v440_v11, %v444_v12  ;;  %v8161_v24 = vcombine.low %v441_v13, %v445_v14  ;;  %v501_v6 = vld [vmem:[#allocation5 + $0xc28] sm:$0xff]  ;;  %v9043_v11 = vld [vmem:[#allocation2 + $0x10] ss:$28 sps:$4 sm:$0xff]   ;;  %v8215_v14 = vcombine.low %v496_v3, %v500_v4 }
  0xf8   :  { %2635 = vmatprep.subr.bf16.mxu0 %v8104_v25  ;;  %2807 = vmatprep.subr.bf16.mxu1 %v8106_v26  ;;  %v8168_v25 = vcombine.high %v448_v19, %v452_v20  ;;  %v8170_v26 = vcombine.high %v449_v21, %v453_v22  ;;  %v114_v12 = vld [vmem:[#allocation5 + $0x10] sm:$0xff] }
  0xf9   :  { %v118_v13 = vld [vmem:[#allocation5 + $0x30] sm:$0xff] }
  0xfb   :  { %2636 = vmatpush1.bf16.msra.mxu0 %v8103_v31  ;;  %2808 = vmatpush1.bf16.msra.mxu1 %v8105_v32  ;;  %v8167_v31 = vcombine.low %v448_v19, %v452_v20  ;;  %v8169_v32 = vcombine.low %v449_v21, %v453_v22  ;;  %v9299_v20 = vmov 0   ;;  %v122_v21 = vld [vmem:[#allocation5 + $0x50] sm:$0xff] }
  0xfc   :  { %2637 = vmatprep.subr.bf16.mxu0 %v8112_v33  ;;  %2809 = vmatprep.subr.bf16.mxu1 %v8114_v34  ;;  %v8176_v33 = vcombine.high %v456_v27, %v460_v28  ;;  %v8178_v34 = vcombine.high %v457_v29, %v461_v30  ;;  %v126_v22 = vld [vmem:[#allocation5 + $0x70] sm:$0xff] }
  0xff   :  { %2638 = vmatpush1.bf16.msra.mxu0 %v8111_v39  ;;  %2810 = vmatpush1.bf16.msra.mxu1 %v8113_v40  ;;  %v8175_v39 = vcombine.low %v456_v27, %v460_v28  ;;  %v8177_v40 = vcombine.low %v457_v29, %v461_v30  ;;  %v7844_v28 = vcombine.high %v122_v21, %v126_v22  ;;  %v130_v30 = vld [vmem:[#allocation5 + $0x90] sm:$0xff] }
 0x100   :  { %2639 = vmatprep.subr.bf16.mxu0 %v8120_v41  ;;  %2811 = vmatprep.subr.bf16.mxu1 %v8122_v42  ;;  %v8184_v41 = vcombine.high %v464_v35, %v468_v36  ;;  %v8186_v42 = vcombine.high %v465_v37, %v469_v38 }
 0x103   :  { %2640 = vmatpush1.bf16.msra.mxu0 %v8119_v47  ;;  %2812 = vmatpush1.bf16.msra.mxu1 %v8121_v48  ;;  %v8183_v47 = vcombine.low %v464_v35, %v468_v36  ;;  %v8185_v48 = vcombine.low %v465_v37, %v469_v38  ;;  %v138_v38 = vld [vmem:[#allocation5 + $0xd0] sm:$0xff] }
 0x104   :  { %2641 = vmatprep.subr.bf16.mxu0 %v8128_v49  ;;  %2813 = vmatprep.subr.bf16.mxu1 %v8130_v50  ;;  %v8192_v49 = vcombine.high %v472_v43, %v476_v44  ;;  %v8194_v50 = vcombine.high %v473_v45, %v477_v46 }
 0x107   :  { %2642 = vmatpush1.bf16.msra.mxu0 %v8127_v55  ;;  %2814 = vmatpush1.bf16.msra.mxu1 %v8129_v56  ;;  %v8191_v55 = vcombine.low %v472_v43, %v476_v44  ;;  %v8193_v56 = vcombine.low %v473_v45, %v477_v46 }
 0x108   :  { %2643 = vmatprep.subr.bf16.mxu0 %v8136_v57  ;;  %2815 = vmatprep.subr.bf16.mxu1 %v8138_v58  ;;  %v8200_v57 = vcombine.high %v480_v51, %v484_v52  ;;  %v8202_v58 = vcombine.high %v481_v53, %v485_v54 }
 0x10b   :  { %2644 = vmatpush1.bf16.msra.mxu0 %v8135_v63  ;;  %2816 = vmatpush1.bf16.msra.mxu1 %v8137_v0  ;;  %v8199_v63 = vcombine.low %v480_v51, %v484_v52  ;;  %v8201_v0 = vcombine.low %v481_v53, %v485_v54 }
 0x10c   :  { %2645 = vmatprep.subr.bf16.mxu0 %v8144_v1  ;;  %2817 = vmatprep.subr.bf16.mxu1 %v8146_v2  ;;  %v8208_v1 = vcombine.high %v488_v59, %v492_v60  ;;  %v8210_v2 = vcombine.high %v489_v61, %v493_v62 }
 0x10f   :  { %2646 = vmatpush1.bf16.msra.mxu0 %v8143_v7  ;;  %2818 = vmatpush1.bf16.msra.mxu1 %v8145_v8  ;;  %v8207_v7 = vcombine.low %v488_v59, %v492_v60  ;;  %v8209_v8 = vcombine.low %v489_v61, %v493_v62 }
 0x110   :  { %2647 = vmatprep.subr.bf16.mxu0 %v8152_v9  ;;  %2819 = vmatprep.subr.bf16.mxu1 %v8154_v10  ;;  %v8216_v9 = vcombine.high %v496_v3, %v500_v4  ;;  %v8218_v10 = vcombine.high %v497_v5, %v501_v6 }
 0x113   :  { %2648 = vmatpush1.bf16.msra.mxu0 %v8151_v15  ;;  %2820 = vmatpush1.bf16.msra.mxu1 %v8153_v16  ;;  %v115_v15 = vld [vmem:[#allocation5 + $0x18] sm:$0xff] }
 0x114   :  { %2649 = vmatprep.subr.bf16.mxu0 %v8160_v17  ;;  %2821 = vmatprep.subr.bf16.mxu1 %v8162_v18  ;;  %v119_v16 = vld [vmem:[#allocation5 + $0x38] sm:$0xff]  ;;  %v8217_v17 = vcombine.low %v497_v5, %v501_v6  ;;  %v7836_v18 = vcombine.high %v114_v12, %v118_v13 }
 0x115   :  { %v7838_v19 = vcombine.high %v115_v15, %v119_v16  ;;  %v7837_v27 = vcombine.low %v115_v15, %v119_v16  ;;  %v178_v15 = vld [vmem:[#allocation5 + $0x210] sm:$0xff] }
 0x116   :  { %v182_v16 = vld [vmem:[#allocation5 + $0x230] sm:$0xff] }
 0x117   :  { %2650 = vmatpush1.bf16.msra.mxu0 %v8159_v23  ;;  %2822 = vmatpush1.bf16.msra.mxu1 %v8161_v24  ;;  %v9044_v23 = vld [vmem:[#allocation2 + $0x18] ss:$28 sps:$4 sm:$0xff]  }
 0x118   :  { %2651 = vmatprep.subr.bf16.mxu0 %v8168_v25  ;;  %2823 = vmatprep.subr.bf16.mxu1 %v8170_v26  ;;  %v123_v24 = vld [vmem:[#allocation5 + $0x58] sm:$0xff]  ;;  %v7835_v26 = vcombine.low %v114_v12, %v118_v13 }
 0x119   :  { %v127_v25 = vld [vmem:[#allocation5 + $0x78] sm:$0xff] }
 0x11a   :  { %v7846_v29 = vcombine.high %v123_v24, %v127_v25  ;;  %v7845_v35 = vcombine.low %v123_v24, %v127_v25  ;;  %v186_v24 = vld [vmem:[#allocation5 + $0x250] sm:$0xff] }
 0x11b   :  { %2652 = vmatpush1.bf16.msra.mxu0 %v8167_v31  ;;  %2824 = vmatpush1.bf16.msra.mxu1 %v8169_v32  ;;  %v134_v31 = vld [vmem:[#allocation5 + $0xb0] sm:$0xff]  ;;  %v131_v32 = vld [vmem:[#allocation5 + $0x98] sm:$0xff] }
 0x11c   :  { %2653 = vmatprep.subr.bf16.mxu0 %v8176_v33  ;;  %2825 = vmatprep.subr.bf16.mxu1 %v8178_v34  ;;  %v135_v33 = vld [vmem:[#allocation5 + $0xb8] sm:$0xff]  ;;  %v7843_v34 = vcombine.low %v122_v21, %v126_v22  ;;  %v7852_v36 = vcombine.high %v130_v30, %v134_v31  ;;  %v7851_v43 = vcombine.low %v130_v30, %v134_v31  ;;  %v190_v25 = vld [vmem:[#allocation5 + $0x270] sm:$0xff] }
 0x11d   :  { %v7854_v37 = vcombine.high %v131_v32, %v135_v33  ;;  %v7853_v44 = vcombine.low %v131_v32, %v135_v33  ;;  %v7900_v22 = vcombine.high %v178_v15, %v182_v16  ;;  %v7908_v30 = vcombine.high %v186_v24, %v190_v25  ;;  %v194_v32 = vld [vmem:[#allocation5 + $0x290] sm:$0xff] }
 0x11e   :  { %v198_v33 = vld [vmem:[#allocation5 + $0x2b0] sm:$0xff] }
 0x11f   :  { %2654 = vmatpush1.bf16.msra.mxu0 %v8175_v39  ;;  %2826 = vmatpush1.bf16.msra.mxu1 %v8177_v40  ;;  %v142_v39 = vld [vmem:[#allocation5 + $0xf0] sm:$0xff]  ;;  %v9117_v40 = vld [vmem:[#allocation2 + $0x4] ss:$28 sps:$4 sm:$0xff]  }
 0x120   :  { %2655 = vmatprep.subr.bf16.mxu0 %v8184_v41  ;;  %2827 = vmatprep.subr.bf16.mxu1 %v8186_v42  ;;  %v139_v41 = vld [vmem:[#allocation5 + $0xd8] sm:$0xff]  ;;  %v7860_v45 = vcombine.high %v138_v38, %v142_v39  ;;  %v7859_v51 = vcombine.low %v138_v38, %v142_v39  ;;  %v7916_v38 = vcombine.high %v194_v32, %v198_v33 }
 0x121   :  { %v143_v42 = vld [vmem:[#allocation5 + $0xf8] sm:$0xff] }
 0x122   :  { %v7862_v46 = vcombine.high %v139_v41, %v143_v42  ;;  %v7861_v52 = vcombine.low %v139_v41, %v143_v42  ;;  %v206_v41 = vld [vmem:[#allocation5 + $0x2f0] sm:$0xff]  ;;  %v203_v42 = vld [vmem:[#allocation5 + $0x2d8] sm:$0xff] }
 0x123   :  { %2656 = vmatpush1.bf16.msra.mxu0 %v8183_v47  ;;  %2828 = vmatpush1.bf16.msra.mxu1 %v8185_v48  ;;  %v146_v47 = vld [vmem:[#allocation5 + $0x110] sm:$0xff] }
 0x124   :  { %2657 = vmatprep.subr.bf16.mxu0 %v8192_v49  ;;  %2829 = vmatprep.subr.bf16.mxu1 %v8194_v50  ;;  %v150_v48 = vld [vmem:[#allocation5 + $0x130] sm:$0xff]  ;;  %v147_v49 = vld [vmem:[#allocation5 + $0x118] sm:$0xff] }
 0x125   :  { %v151_v50 = vld [vmem:[#allocation5 + $0x138] sm:$0xff]  ;;  %v7868_v53 = vcombine.high %v146_v47, %v150_v48  ;;  %v7867_v59 = vcombine.low %v146_v47, %v150_v48  ;;  %v210_v48 = vld [vmem:[#allocation5 + $0x310] sm:$0xff] }
 0x126   :  { %v7870_v54 = vcombine.high %v147_v49, %v151_v50  ;;  %v7869_v60 = vcombine.low %v147_v49, %v151_v50  ;;  %v214_v49 = vld [vmem:[#allocation5 + $0x330] sm:$0xff]  ;;  %v211_v50 = vld [vmem:[#allocation5 + $0x318] sm:$0xff] }
 0x127   :  { %2658 = vmatpush1.bf16.msra.mxu0 %v8191_v55  ;;  %2830 = vmatpush1.bf16.msra.mxu1 %v8193_v56  ;;  %v154_v55 = vld [vmem:[#allocation5 + $0x150] sm:$0xff] }
 0x128   :  { %2659 = vmatprep.subr.bf16.mxu0 %v8200_v57  ;;  %2831 = vmatprep.subr.bf16.mxu1 %v8202_v58  ;;  %v158_v56 = vld [vmem:[#allocation5 + $0x170] sm:$0xff]  ;;  %v155_v57 = vld [vmem:[#allocation5 + $0x158] sm:$0xff] }
 0x129   :  { %v159_v58 = vld [vmem:[#allocation5 + $0x178] sm:$0xff]  ;;  %v7876_v61 = vcombine.high %v154_v55, %v158_v56  ;;  %v7875_v3 = vcombine.low %v154_v55, %v158_v56  ;;  %v218_v56 = vld [vmem:[#allocation5 + $0x350] sm:$0xff] }
 0x12a   :  { %v7878_v62 = vcombine.high %v155_v57, %v159_v58  ;;  %v7877_v4 = vcombine.low %v155_v57, %v159_v58  ;;  %v222_v57 = vld [vmem:[#allocation5 + $0x370] sm:$0xff]  ;;  %v219_v58 = vld [vmem:[#allocation5 + $0x358] sm:$0xff] }
 0x12b   :  { %2660 = vmatpush1.bf16.msra.mxu0 %v8199_v63  ;;  %2832 = vmatpush1.bf16.msra.mxu1 %v8201_v0  ;;  %v162_v63 = vld [vmem:[#allocation5 + $0x190] sm:$0xff] }
 0x12c   :  { %2661 = vmatprep.subr.bf16.mxu0 %v8208_v1  ;;  %2833 = vmatprep.subr.bf16.mxu1 %v8210_v2  ;;  %v166_v0 = vld [vmem:[#allocation5 + $0x1b0] sm:$0xff]  ;;  %v163_v1 = vld [vmem:[#allocation5 + $0x198] sm:$0xff] }
 0x12d   :  { %v167_v2 = vld [vmem:[#allocation5 + $0x1b8] sm:$0xff]  ;;  %v7884_v5 = vcombine.high %v162_v63, %v166_v0 }
 0x12e   :  { %v7886_v6 = vcombine.high %v163_v1, %v167_v2  ;;  %v7885_v12 = vcombine.low %v163_v1, %v167_v2  ;;  %v230_v1 = vld [vmem:[#allocation5 + $0x3b0] sm:$0xff]  ;;  %v227_v2 = vld [vmem:[#allocation5 + $0x398] sm:$0xff] }
 0x12f   :  { %2662 = vmatpush1.bf16.msra.mxu0 %v8207_v7  ;;  %2834 = vmatpush1.bf16.msra.mxu1 %v8209_v8  ;;  %v170_v7 = vld [vmem:[#allocation5 + $0x1d0] sm:$0xff] }
 0x130   :  { %2674 = vmatprep.subr.bf16.mxu0 %v8216_v9  ;;  %2846 = vmatprep.subr.bf16.mxu1 %v8218_v10  ;;  %v174_v8 = vld [vmem:[#allocation5 + $0x1f0] sm:$0xff]  ;;  %v171_v9 = vld [vmem:[#allocation5 + $0x1d8] sm:$0xff] }
 0x131   :  { %v175_v10 = vld [vmem:[#allocation5 + $0x1f8] sm:$0xff]  ;;  %v7892_v13 = vcombine.high %v170_v7, %v174_v8 }
 0x132   :  { %2664 = vmatmul.mubr.bf16.vlgmr.msra.gmra.mrb[0].mxu0 %v9043_v11  ;;  %2836 = vmatmul.mubr.bf16.vlgmr.msra.gmra.mrb[0].mxu1 %v9043_v11  ;;  %v7883_v11 = vcombine.low %v162_v63, %v166_v0  ;;  %v7893_v21 = vcombine.low %v171_v9, %v175_v10  ;;  %v226_v0 = vld [vmem:[#allocation5 + $0x390] sm:$0xff] }
 0x133   :  { %2675 = vmatpush1.bf16.msra.mxu0 %v8215_v14  ;;  %2847 = vmatpush1.bf16.msra.mxu1 %v8217_v17  ;;  %v7894_v14 = vcombine.high %v171_v9, %v175_v10  ;;  %v179_v17 = vld [vmem:[#allocation5 + $0x218] sm:$0xff]  ;;  %v238_v9 = vld [vmem:[#allocation5 + $0x3f0] sm:$0xff] }
 0x134   :  { %2706 = vmatprep.mubr.bf16.mxu0 %v9299_v20  ;;  %2878 = vmatprep.mubr.bf16.mxu1 %v9299_v20  ;;  %v235_v10 = vld [vmem:[#allocation5 + $0x3d8] sm:$0xff] }
 0x135   :  { %2889 = vmatprep.subr.bf16.mxu0 %v7836_v18  ;;  %3061 = vmatprep.subr.bf16.mxu1 %v7838_v19  ;;  %v183_v18 = vld [vmem:[#allocation5 + $0x238] sm:$0xff]  ;;  %v7891_v19 = vcombine.low %v170_v7, %v174_v8  ;;  %v234_v8 = vld [vmem:[#allocation5 + $0x3d0] sm:$0xff] }
 0x13e   :  { %8223 = vmatmul.mubr.msk.bf16.vlgmr.msra.gmra.mrb[0].mxu0 %vm2541_vm0, %v9044_v23  ;;  %8224 = vmatmul.mubr.msk.bf16.vlgmr.msra.gmra.mrb[0].mxu1 %vm2541_vm0, %v9044_v23  ;;  %v7902_v23 = vcombine.high %v179_v17, %v183_v18 }
 0x13f   :  { %2890 = vmatpush1.bf16.msra.mxu0 %v7835_v26  ;;  %3062 = vmatpush1.bf16.msra.mxu1 %v7837_v27  ;;  %v187_v26 = vld [vmem:[#allocation5 + $0x258] sm:$0xff] }
 0x140   :  { %2891 = vmatprep.subr.bf16.mxu0 %v7844_v28  ;;  %3063 = vmatprep.subr.bf16.mxu1 %v7846_v29  ;;  %v191_v27 = vld [vmem:[#allocation5 + $0x278] sm:$0xff]  ;;  %v7899_v28 = vcombine.low %v178_v15, %v182_v16  ;;  %v7901_v29 = vcombine.low %v179_v17, %v183_v18  ;;  %v242_v16 = vld [vmem:[#allocation5 + $0x410] sm:$0xff] }
 0x141   :  { %2921 = vmatprep.mubr.bf16.mxu0 %v9117_v40  ;;  %3093 = vmatprep.mubr.bf16.mxu1 %v9117_v40  ;;  %v7910_v31 = vcombine.high %v187_v26, %v191_v27  ;;  %v202_v40 = vld [vmem:[#allocation5 + $0x2d0] sm:$0xff]  ;;  %v243_v18 = vld [vmem:[#allocation5 + $0x418] sm:$0xff] }
 0x142   :  { %v246_v17 = vld [vmem:[#allocation5 + $0x430] sm:$0xff] }
 0x143   :  { %2892 = vmatpush1.bf16.msra.mxu0 %v7843_v34  ;;  %3064 = vmatpush1.bf16.msra.mxu1 %v7845_v35  ;;  %v195_v34 = vld [vmem:[#allocation5 + $0x298] sm:$0xff] }
 0x144   :  { %2893 = vmatprep.subr.bf16.mxu0 %v7852_v36  ;;  %3065 = vmatprep.subr.bf16.mxu1 %v7854_v37  ;;  %v199_v35 = vld [vmem:[#allocation5 + $0x2b8] sm:$0xff]  ;;  %v7907_v36 = vcombine.low %v186_v24, %v190_v25  ;;  %v7909_v37 = vcombine.low %v187_v26, %v191_v27  ;;  %v250_v25 = vld [vmem:[#allocation5 + $0x450] sm:$0xff] }
 0x145   :  { %v7918_v39 = vcombine.high %v195_v34, %v199_v35  ;;  %v254_v26 = vld [vmem:[#allocation5 + $0x470] sm:$0xff]  ;;  %v251_v27 = vld [vmem:[#allocation5 + $0x458] sm:$0xff] }
 0x147   :  { %2894 = vmatpush1.bf16.msra.mxu0 %v7851_v43  ;;  %3066 = vmatpush1.bf16.msra.mxu1 %v7853_v44  ;;  %v207_v43 = vld [vmem:[#allocation5 + $0x2f8] sm:$0xff]  ;;  %v7915_v44 = vcombine.low %v194_v32, %v198_v33  ;;  %v258_v33 = vld [vmem:[#allocation5 + $0x490] sm:$0xff] }
 0x148   :  { %2895 = vmatprep.subr.bf16.mxu0 %v7860_v45  ;;  %3067 = vmatprep.subr.bf16.mxu1 %v7862_v46  ;;  %v7917_v45 = vcombine.low %v195_v34, %v199_v35  ;;  %v7924_v46 = vcombine.high %v202_v40, %v206_v41  ;;  %v7926_v47 = vcombine.high %v203_v42, %v207_v43  ;;  %v262_v34 = vld [vmem:[#allocation5 + $0x4b0] sm:$0xff]  ;;  %v9118_v35 = vld [vmem:[#allocation2] ss:$28 sps:$4 sm:$0xff]  }
 0x14b   :  { %2896 = vmatpush1.bf16.msra.mxu0 %v7859_v51  ;;  %3068 = vmatpush1.bf16.msra.mxu1 %v7861_v52  ;;  %v215_v51 = vld [vmem:[#allocation5 + $0x338] sm:$0xff]  ;;  %v7923_v52 = vcombine.low %v202_v40, %v206_v41  ;;  %v7980_v40 = vcombine.high %v258_v33, %v262_v34 }
 0x14c   :  { %2897 = vmatprep.subr.bf16.mxu0 %v7868_v53  ;;  %3069 = vmatprep.subr.bf16.mxu1 %v7870_v54  ;;  %v7925_v53 = vcombine.low %v203_v42, %v207_v43  ;;  %v7932_v54 = vcombine.high %v210_v48, %v214_v49  ;;  %v7934_v55 = vcombine.high %v211_v50, %v215_v51  ;;  %v266_v42 = vld [vmem:[#allocation5 + $0x4d0] sm:$0xff] }
 0x14d   :  { %v270_v43 = vld [vmem:[#allocation5 + $0x4f0] sm:$0xff] }
 0x14f   :  { %2898 = vmatpush1.bf16.msra.mxu0 %v7867_v59  ;;  %3070 = vmatpush1.bf16.msra.mxu1 %v7869_v60  ;;  %v223_v59 = vld [vmem:[#allocation5 + $0x378] sm:$0xff]  ;;  %v7931_v60 = vcombine.low %v210_v48, %v214_v49  ;;  %v7988_v49 = vcombine.high %v266_v42, %v270_v43 }
 0x150   :  { %2899 = vmatprep.subr.bf16.mxu0 %v7876_v61  ;;  %3071 = vmatprep.subr.bf16.mxu1 %v7878_v62  ;;  %v7933_v61 = vcombine.low %v211_v50, %v215_v51  ;;  %v7940_v62 = vcombine.high %v218_v56, %v222_v57  ;;  %v7942_v63 = vcombine.high %v219_v58, %v223_v59  ;;  %v274_v51 = vld [vmem:[#allocation5 + $0x510] sm:$0xff] }
 0x153   :  { %2900 = vmatpush1.bf16.msra.mxu0 %v7875_v3  ;;  %3072 = vmatpush1.bf16.msra.mxu1 %v7877_v4  ;;  %v231_v3 = vld [vmem:[#allocation5 + $0x3b8] sm:$0xff]  ;;  %v7939_v4 = vcombine.low %v218_v56, %v222_v57 }
 0x154   :  { %2901 = vmatprep.subr.bf16.mxu0 %v7884_v5  ;;  %3073 = vmatprep.subr.bf16.mxu1 %v7886_v6  ;;  %v7941_v5 = vcombine.low %v219_v58, %v223_v59  ;;  %v7948_v6 = vcombine.high %v226_v0, %v230_v1  ;;  %v7950_v7 = vcombine.high %v227_v2, %v231_v3  ;;  %v282_v59 = vld [vmem:[#allocation5 + $0x550] sm:$0xff] }
 0x157   :  { %2902 = vmatpush1.bf16.msra.mxu0 %v7883_v11  ;;  %3074 = vmatpush1.bf16.msra.mxu1 %v7885_v12  ;;  %v239_v11 = vld [vmem:[#allocation5 + $0x3f8] sm:$0xff]  ;;  %v7947_v12 = vcombine.low %v226_v0, %v230_v1 }
 0x158   :  { %2903 = vmatprep.subr.bf16.mxu0 %v7892_v13  ;;  %3075 = vmatprep.subr.bf16.mxu1 %v7894_v14  ;;  %v7949_v13 = vcombine.low %v227_v2, %v231_v3  ;;  %v7956_v14 = vcombine.high %v234_v8, %v238_v9  ;;  %v7958_v15 = vcombine.high %v235_v10, %v239_v11  ;;  %v290_v3 = vld [vmem:[#allocation5 + $0x590] sm:$0xff] }
 0x15b   :  { %2904 = vmatpush1.bf16.msra.mxu0 %v7891_v19  ;;  %3076 = vmatpush1.bf16.msra.mxu1 %v7893_v21  ;;  %v247_v19 = vld [vmem:[#allocation5 + $0x438] sm:$0xff]  ;;  %v7955_v21 = vcombine.low %v234_v8, %v238_v9 }
 0x15c   :  { %2905 = vmatprep.subr.bf16.mxu0 %v7900_v22  ;;  %3077 = vmatprep.subr.bf16.mxu1 %v7902_v23  ;;  %v7957_v22 = vcombine.low %v235_v10, %v239_v11  ;;  %v7964_v23 = vcombine.high %v242_v16, %v246_v17  ;;  %v7966_v24 = vcombine.high %v243_v18, %v247_v19  ;;  %v298_v11 = vld [vmem:[#allocation5 + $0x5d0] sm:$0xff] }
 0x15f   :  { %2906 = vmatpush1.bf16.msra.mxu0 %v7899_v28  ;;  %3078 = vmatpush1.bf16.msra.mxu1 %v7901_v29  ;;  %v255_v28 = vld [vmem:[#allocation5 + $0x478] sm:$0xff]  ;;  %v7963_v29 = vcombine.low %v242_v16, %v246_v17 }
 0x160   :  { %2907 = vmatprep.subr.bf16.mxu0 %v7908_v30  ;;  %3079 = vmatprep.subr.bf16.mxu1 %v7910_v31  ;;  %v7965_v30 = vcombine.low %v243_v18, %v247_v19  ;;  %v7972_v31 = vcombine.high %v250_v25, %v254_v26  ;;  %v7974_v32 = vcombine.high %v251_v27, %v255_v28  ;;  %v306_v19 = vld [vmem:[#allocation5 + $0x610] sm:$0xff] }
 0x163   :  { %2908 = vmatpush1.bf16.msra.mxu0 %v7907_v36  ;;  %3080 = vmatpush1.bf16.msra.mxu1 %v7909_v37  ;;  %v259_v36 = vld [vmem:[#allocation5 + $0x498] sm:$0xff] }
 0x164   :  { %2909 = vmatprep.subr.bf16.mxu0 %v7916_v38  ;;  %3081 = vmatprep.subr.bf16.mxu1 %v7918_v39  ;;  %v263_v37 = vld [vmem:[#allocation5 + $0x4b8] sm:$0xff]  ;;  %v7971_v38 = vcombine.low %v250_v25, %v254_v26  ;;  %v7973_v39 = vcombine.low %v251_v27, %v255_v28  ;;  %v314_v28 = vld [vmem:[#allocation5 + $0x650] sm:$0xff] }
 0x165   :  { %v7982_v41 = vcombine.high %v259_v36, %v263_v37  ;;  %v7981_v48 = vcombine.low %v259_v36, %v263_v37  ;;  %v322_v36 = vld [vmem:[#allocation5 + $0x690] sm:$0xff] }
 0x166   :  { %v326_v37 = vld [vmem:[#allocation5 + $0x6b0] sm:$0xff] }
 0x167   :  { %2910 = vmatpush1.bf16.msra.mxu0 %v7915_v44  ;;  %3082 = vmatpush1.bf16.msra.mxu1 %v7917_v45  ;;  %v9119_v44 = vld [vmem:[#allocation2 + $0xc] ss:$28 sps:$4 sm:$0xff]   ;;  %v267_v45 = vld [vmem:[#allocation5 + $0x4d8] sm:$0xff] }
 0x168   :  { %2911 = vmatprep.subr.bf16.mxu0 %v7924_v46  ;;  %3083 = vmatprep.subr.bf16.mxu1 %v7926_v47  ;;  %v271_v46 = vld [vmem:[#allocation5 + $0x4f8] sm:$0xff]  ;;  %v7979_v47 = vcombine.low %v258_v33, %v262_v34 }
 0x169   :  { %v7990_v50 = vcombine.high %v267_v45, %v271_v46  ;;  %v7989_v56 = vcombine.low %v267_v45, %v271_v46  ;;  %v334_v45 = vld [vmem:[#allocation5 + $0x6f0] sm:$0xff]  ;;  %v331_v46 = vld [vmem:[#allocation5 + $0x6d8] sm:$0xff] }
 0x16b   :  { %2912 = vmatpush1.bf16.msra.mxu0 %v7923_v52  ;;  %3084 = vmatpush1.bf16.msra.mxu1 %v7925_v53  ;;  %v278_v52 = vld [vmem:[#allocation5 + $0x530] sm:$0xff]  ;;  %v275_v53 = vld [vmem:[#allocation5 + $0x518] sm:$0xff] }
 0x16c   :  { %2913 = vmatprep.subr.bf16.mxu0 %v7932_v54  ;;  %3085 = vmatprep.subr.bf16.mxu1 %v7934_v55  ;;  %v279_v54 = vld [vmem:[#allocation5 + $0x538] sm:$0xff]  ;;  %v7987_v55 = vcombine.low %v266_v42, %v270_v43  ;;  %v7996_v57 = vcombine.high %v274_v51, %v278_v52  ;;  %v8044_v42 = vcombine.high %v322_v36, %v326_v37 }
 0x16d   :  { %v7998_v58 = vcombine.high %v275_v53, %v279_v54  ;;  %v7997_v0 = vcombine.low %v275_v53, %v279_v54  ;;  %v342_v53 = vld [vmem:[#allocation5 + $0x730] sm:$0xff]  ;;  %v339_v54 = vld [vmem:[#allocation5 + $0x718] sm:$0xff] }
 0x16f   :  { %2914 = vmatpush1.bf16.msra.mxu0 %v7931_v60  ;;  %3086 = vmatpush1.bf16.msra.mxu1 %v7933_v61  ;;  %v286_v60 = vld [vmem:[#allocation5 + $0x570] sm:$0xff]  ;;  %v283_v61 = vld [vmem:[#allocation5 + $0x558] sm:$0xff] }
 0x170   :  { %2915 = vmatprep.subr.bf16.mxu0 %v7940_v62  ;;  %3087 = vmatprep.subr.bf16.mxu1 %v7942_v63  ;;  %v287_v62 = vld [vmem:[#allocation5 + $0x578] sm:$0xff]  ;;  %v7995_v63 = vcombine.low %v274_v51, %v278_v52  ;;  %v8004_v1 = vcombine.high %v282_v59, %v286_v60  ;;  %v338_v52 = vld [vmem:[#allocation5 + $0x710] sm:$0xff] }
 0x171   :  { %v8006_v2 = vcombine.high %v283_v61, %v287_v62  ;;  %v8005_v8 = vcombine.low %v283_v61, %v287_v62  ;;  %v350_v61 = vld [vmem:[#allocation5 + $0x770] sm:$0xff]  ;;  %v347_v62 = vld [vmem:[#allocation5 + $0x758] sm:$0xff] }
 0x173   :  { %2916 = vmatpush1.bf16.msra.mxu0 %v7939_v4  ;;  %3088 = vmatpush1.bf16.msra.mxu1 %v7941_v5  ;;  %v294_v4 = vld [vmem:[#allocation5 + $0x5b0] sm:$0xff]  ;;  %v291_v5 = vld [vmem:[#allocation5 + $0x598] sm:$0xff] }
 0x174   :  { %2917 = vmatprep.subr.bf16.mxu0 %v7948_v6  ;;  %3089 = vmatprep.subr.bf16.mxu1 %v7950_v7  ;;  %v295_v6 = vld [vmem:[#allocation5 + $0x5b8] sm:$0xff]  ;;  %v8003_v7 = vcombine.low %v282_v59, %v286_v60  ;;  %v8012_v9 = vcombine.high %v290_v3, %v294_v4  ;;  %v346_v60 = vld [vmem:[#allocation5 + $0x750] sm:$0xff] }
 0x175   :  { %v8014_v10 = vcombine.high %v291_v5, %v295_v6  ;;  %v8013_v16 = vcombine.low %v291_v5, %v295_v6  ;;  %v358_v5 = vld [vmem:[#allocation5 + $0x7b0] sm:$0xff]  ;;  %v355_v6 = vld [vmem:[#allocation5 + $0x798] sm:$0xff] }
 0x177   :  { %2918 = vmatpush1.bf16.msra.mxu0 %v7947_v12  ;;  %3090 = vmatpush1.bf16.msra.mxu1 %v7949_v13  ;;  %v302_v12 = vld [vmem:[#allocation5 + $0x5f0] sm:$0xff]  ;;  %v299_v13 = vld [vmem:[#allocation5 + $0x5d8] sm:$0xff] }
 0x178   :  { %2919 = vmatprep.subr.bf16.mxu0 %v7956_v14  ;;  %3091 = vmatprep.subr.bf16.mxu1 %v7958_v15  ;;  %v303_v14 = vld [vmem:[#allocation5 + $0x5f8] sm:$0xff]  ;;  %v8011_v15 = vcombine.low %v290_v3, %v294_v4  ;;  %v8020_v17 = vcombine.high %v298_v11, %v302_v12  ;;  %v354_v4 = vld [vmem:[#allocation5 + $0x790] sm:$0xff] }
 0x179   :  { %v8022_v18 = vcombine.high %v299_v13, %v303_v14  ;;  %v8021_v25 = vcombine.low %v299_v13, %v303_v14  ;;  %v366_v13 = vld [vmem:[#allocation5 + $0x7f0] sm:$0xff]  ;;  %v363_v14 = vld [vmem:[#allocation5 + $0x7d8] sm:$0xff] }
 0x17b   :  { %2920 = vmatpush1.bf16.msra.mxu0 %v7955_v21  ;;  %3092 = vmatpush1.bf16.msra.mxu1 %v7957_v22  ;;  %v310_v21 = vld [vmem:[#allocation5 + $0x630] sm:$0xff]  ;;  %v307_v22 = vld [vmem:[#allocation5 + $0x618] sm:$0xff] }
 0x17c   :  { %2932 = vmatprep.subr.bf16.mxu0 %v7964_v23  ;;  %3104 = vmatprep.subr.bf16.mxu1 %v7966_v24  ;;  %v311_v23 = vld [vmem:[#allocation5 + $0x638] sm:$0xff]  ;;  %v8019_v24 = vcombine.low %v298_v11, %v302_v12  ;;  %v8028_v26 = vcombine.high %v306_v19, %v310_v21  ;;  %v362_v12 = vld [vmem:[#allocation5 + $0x7d0] sm:$0xff] }
 0x17d   :  { %v8030_v27 = vcombine.high %v307_v22, %v311_v23  ;;  %v8029_v33 = vcombine.low %v307_v22, %v311_v23  ;;  %v374_v22 = vld [vmem:[#allocation5 + $0x830] sm:$0xff]  ;;  %v371_v23 = vld [vmem:[#allocation5 + $0x818] sm:$0xff] }
 0x17e   :  { %2922 = vmatmul.mubr.bf16.vlgmr.msra.gmra.mrb[4].mxu0 %v9118_v35  ;;  %3094 = vmatmul.mubr.bf16.vlgmr.msra.gmra.mrb[4].mxu1 %v9118_v35 }
 0x17f   :  { %2933 = vmatpush1.bf16.msra.mxu0 %v7963_v29  ;;  %3105 = vmatpush1.bf16.msra.mxu1 %v7965_v30  ;;  %v318_v29 = vld [vmem:[#allocation5 + $0x670] sm:$0xff]  ;;  %v315_v30 = vld [vmem:[#allocation5 + $0x658] sm:$0xff] }
 0x180   :  { %2934 = vmatprep.subr.bf16.mxu0 %v7972_v31  ;;  %3106 = vmatprep.subr.bf16.mxu1 %v7974_v32  ;;  %v319_v31 = vld [vmem:[#allocation5 + $0x678] sm:$0xff]  ;;  %v8027_v32 = vcombine.low %v306_v19, %v310_v21  ;;  %v8036_v34 = vcombine.high %v314_v28, %v318_v29  ;;  %v370_v21 = vld [vmem:[#allocation5 + $0x810] sm:$0xff] }
 0x181   :  { %2964 = vmatprep.mubr.bf16.mxu0 %v9119_v44  ;;  %3136 = vmatprep.mubr.bf16.mxu1 %v9119_v44  ;;  %v8038_v35 = vcombine.high %v315_v30, %v319_v31  ;;  %v330_v44 = vld [vmem:[#allocation5 + $0x6d0] sm:$0xff] }
 0x183   :  { %2935 = vmatpush1.bf16.msra.mxu0 %v7971_v38  ;;  %3107 = vmatpush1.bf16.msra.mxu1 %v7973_v39  ;;  %v323_v38 = vld [vmem:[#allocation5 + $0x698] sm:$0xff] }
 0x184   :  { %2936 = vmatprep.subr.bf16.mxu0 %v7980_v40  ;;  %3108 = vmatprep.subr.bf16.mxu1 %v7982_v41  ;;  %v327_v39 = vld [vmem:[#allocation5 + $0x6b8] sm:$0xff]  ;;  %v8035_v40 = vcombine.low %v314_v28, %v318_v29  ;;  %v8037_v41 = vcombine.low %v315_v30, %v319_v31  ;;  %v378_v29 = vld [vmem:[#allocation5 + $0x850] sm:$0xff] }
 0x185   :  { %v8046_v43 = vcombine.high %v323_v38, %v327_v39  ;;  %v382_v30 = vld [vmem:[#allocation5 + $0x870] sm:$0xff]  ;;  %v379_v31 = vld [vmem:[#allocation5 + $0x858] sm:$0xff] }
 0x187   :  { %2937 = vmatpush1.bf16.msra.mxu0 %v7979_v47  ;;  %3109 = vmatpush1.bf16.msra.mxu1 %v7981_v48  ;;  %v335_v47 = vld [vmem:[#allocation5 + $0x6f8] sm:$0xff]  ;;  %v8043_v48 = vcombine.low %v322_v36, %v326_v37  ;;  %v386_v37 = vld [vmem:[#allocation5 + $0x890] sm:$0xff] }
 0x188   :  { %2938 = vmatprep.subr.bf16.mxu0 %v7988_v49  ;;  %3110 = vmatprep.subr.bf16.mxu1 %v7990_v50  ;;  %v8045_v49 = vcombine.low %v323_v38, %v327_v39  ;;  %v8052_v50 = vcombine.high %v330_v44, %v334_v45  ;;  %v8054_v51 = vcombine.high %v331_v46, %v335_v47  ;;  %v390_v38 = vld [vmem:[#allocation5 + $0x8b0] sm:$0xff] }
 0x189   :  { %v9120_v39 = vld [vmem:[#allocation2 + $0x8] ss:$28 sps:$4 sm:$0xff]  }
 0x18b   :  { %2939 = vmatpush1.bf16.msra.mxu0 %v7987_v55  ;;  %3111 = vmatpush1.bf16.msra.mxu1 %v7989_v56  ;;  %v343_v55 = vld [vmem:[#allocation5 + $0x738] sm:$0xff]  ;;  %v8051_v56 = vcombine.low %v330_v44, %v334_v45  ;;  %v8108_v44 = vcombine.high %v386_v37, %v390_v38 }
 0x18c   :  { %2940 = vmatprep.subr.bf16.mxu0 %v7996_v57  ;;  %3112 = vmatprep.subr.bf16.mxu1 %v7998_v58  ;;  %v8053_v57 = vcombine.low %v331_v46, %v335_v47  ;;  %v8060_v58 = vcombine.high %v338_v52, %v342_v53  ;;  %v8062_v59 = vcombine.high %v339_v54, %v343_v55  ;;  %v394_v46 = vld [vmem:[#allocation5 + $0x8d0] sm:$0xff] }
 0x18d   :  { %v398_v47 = vld [vmem:[#allocation5 + $0x8f0] sm:$0xff] }
 0x18f   :  { %2941 = vmatpush1.bf16.msra.mxu0 %v7995_v63  ;;  %3113 = vmatpush1.bf16.msra.mxu1 %v7997_v0  ;;  %v351_v63 = vld [vmem:[#allocation5 + $0x778] sm:$0xff]  ;;  %v8059_v0 = vcombine.low %v338_v52, %v342_v53  ;;  %v8116_v53 = vcombine.high %v394_v46, %v398_v47 }
 0x190   :  { %2942 = vmatprep.subr.bf16.mxu0 %v8004_v1  ;;  %3114 = vmatprep.subr.bf16.mxu1 %v8006_v2  ;;  %v8061_v1 = vcombine.low %v339_v54, %v343_v55  ;;  %v8068_v2 = vcombine.high %v346_v60, %v350_v61  ;;  %v8070_v3 = vcombine.high %v347_v62, %v351_v63  ;;  %v402_v55 = vld [vmem:[#allocation5 + $0x910] sm:$0xff] }
 0x193   :  { %2943 = vmatpush1.bf16.msra.mxu0 %v8003_v7  ;;  %3115 = vmatpush1.bf16.msra.mxu1 %v8005_v8  ;;  %v359_v7 = vld [vmem:[#allocation5 + $0x7b8] sm:$0xff]  ;;  %v8067_v8 = vcombine.low %v346_v60, %v350_v61 }
 0x194   :  { %2944 = vmatprep.subr.bf16.mxu0 %v8012_v9  ;;  %3116 = vmatprep.subr.bf16.mxu1 %v8014_v10  ;;  %v8069_v9 = vcombine.low %v347_v62, %v351_v63  ;;  %v8076_v10 = vcombine.high %v354_v4, %v358_v5  ;;  %v8078_v11 = vcombine.high %v355_v6, %v359_v7  ;;  %v410_v63 = vld [vmem:[#allocation5 + $0x950] sm:$0xff] }
 0x197   :  { %2945 = vmatpush1.bf16.msra.mxu0 %v8011_v15  ;;  %3117 = vmatpush1.bf16.msra.mxu1 %v8013_v16  ;;  %v367_v15 = vld [vmem:[#allocation5 + $0x7f8] sm:$0xff]  ;;  %v8075_v16 = vcombine.low %v354_v4, %v358_v5 }
 0x198   :  { %2946 = vmatprep.subr.bf16.mxu0 %v8020_v17  ;;  %3118 = vmatprep.subr.bf16.mxu1 %v8022_v18  ;;  %v8077_v17 = vcombine.low %v355_v6, %v359_v7  ;;  %v8084_v18 = vcombine.high %v362_v12, %v366_v13  ;;  %v8086_v19 = vcombine.high %v363_v14, %v367_v15  ;;  %v418_v7 = vld [vmem:[#allocation5 + $0x990] sm:$0xff] }
 0x19b   :  { %2947 = vmatpush1.bf16.msra.mxu0 %v8019_v24  ;;  %3119 = vmatpush1.bf16.msra.mxu1 %v8021_v25  ;;  %v375_v24 = vld [vmem:[#allocation5 + $0x838] sm:$0xff]  ;;  %v8083_v25 = vcombine.low %v362_v12, %v366_v13 }
 0x19c   :  { %2948 = vmatprep.subr.bf16.mxu0 %v8028_v26  ;;  %3120 = vmatprep.subr.bf16.mxu1 %v8030_v27  ;;  %v8085_v26 = vcombine.low %v363_v14, %v367_v15  ;;  %v8092_v27 = vcombine.high %v370_v21, %v374_v22  ;;  %v8094_v28 = vcombine.high %v371_v23, %v375_v24  ;;  %v426_v15 = vld [vmem:[#allocation5 + $0x9d0] sm:$0xff] }
 0x19f   :  { %2949 = vmatpush1.bf16.msra.mxu0 %v8027_v32  ;;  %3121 = vmatpush1.bf16.msra.mxu1 %v8029_v33  ;;  %v383_v32 = vld [vmem:[#allocation5 + $0x878] sm:$0xff]  ;;  %v8091_v33 = vcombine.low %v370_v21, %v374_v22 }
 0x1a0   :  { %2950 = vmatprep.subr.bf16.mxu0 %v8036_v34  ;;  %3122 = vmatprep.subr.bf16.mxu1 %v8038_v35  ;;  %v8093_v34 = vcombine.low %v371_v23, %v375_v24  ;;  %v8100_v35 = vcombine.high %v378_v29, %v382_v30  ;;  %v8102_v36 = vcombine.high %v379_v31, %v383_v32  ;;  %v434_v24 = vld [vmem:[#allocation5 + $0xa10] sm:$0xff] }
 0x1a3   :  { %2951 = vmatpush1.bf16.msra.mxu0 %v8035_v40  ;;  %3123 = vmatpush1.bf16.msra.mxu1 %v8037_v41  ;;  %v387_v40 = vld [vmem:[#allocation5 + $0x898] sm:$0xff] }
 0x1a4   :  { %2952 = vmatprep.subr.bf16.mxu0 %v8044_v42  ;;  %3124 = vmatprep.subr.bf16.mxu1 %v8046_v43  ;;  %v391_v41 = vld [vmem:[#allocation5 + $0x8b8] sm:$0xff]  ;;  %v8099_v42 = vcombine.low %v378_v29, %v382_v30  ;;  %v8101_v43 = vcombine.low %v379_v31, %v383_v32  ;;  %v442_v32 = vld [vmem:[#allocation5 + $0xa50] sm:$0xff] }
 0x1a5   :  { %v8110_v45 = vcombine.high %v387_v40, %v391_v41  ;;  %v8109_v52 = vcombine.low %v387_v40, %v391_v41  ;;  %v450_v40 = vld [vmem:[#allocation5 + $0xa90] sm:$0xff] }
 0x1a6   :  { %v454_v41 = vld [vmem:[#allocation5 + $0xab0] sm:$0xff] }
 0x1a7   :  { %2953 = vmatpush1.bf16.msra.mxu0 %v8043_v48  ;;  %3125 = vmatpush1.bf16.msra.mxu1 %v8045_v49  ;;  %v9121_v48 = vld [vmem:[#allocation2 + $0x14] ss:$28 sps:$4 sm:$0xff]  }
 0x1a8   :  { %2954 = vmatprep.subr.bf16.mxu0 %v8052_v50  ;;  %3126 = vmatprep.subr.bf16.mxu1 %v8054_v51  ;;  %v395_v49 = vld [vmem:[#allocation5 + $0x8d8] sm:$0xff]  ;;  %v8107_v51 = vcombine.low %v386_v37, %v390_v38 }
 0x1a9   :  { %v399_v50 = vld [vmem:[#allocation5 + $0x8f8] sm:$0xff] }
 0x1aa   :  { %v8118_v54 = vcombine.high %v395_v49, %v399_v50  ;;  %v8117_v60 = vcombine.low %v395_v49, %v399_v50  ;;  %v462_v49 = vld [vmem:[#allocation5 + $0xaf0] sm:$0xff]  ;;  %v459_v50 = vld [vmem:[#allocation5 + $0xad8] sm:$0xff] }
 0x1ab   :  { %2955 = vmatpush1.bf16.msra.mxu0 %v8051_v56  ;;  %3127 = vmatpush1.bf16.msra.mxu1 %v8053_v57  ;;  %v406_v56 = vld [vmem:[#allocation5 + $0x930] sm:$0xff]  ;;  %v403_v57 = vld [vmem:[#allocation5 + $0x918] sm:$0xff] }
 0x1ac   :  { %2956 = vmatprep.subr.bf16.mxu0 %v8060_v58  ;;  %3128 = vmatprep.subr.bf16.mxu1 %v8062_v59  ;;  %v407_v58 = vld [vmem:[#allocation5 + $0x938] sm:$0xff]  ;;  %v8115_v59 = vcombine.low %v394_v46, %v398_v47  ;;  %v8124_v61 = vcombine.high %v402_v55, %v406_v56  ;;  %v8172_v46 = vcombine.high %v450_v40, %v454_v41 }
 0x1ad   :  { %v8126_v62 = vcombine.high %v403_v57, %v407_v58  ;;  %v8125_v4 = vcombine.low %v403_v57, %v407_v58  ;;  %v470_v57 = vld [vmem:[#allocation5 + $0xb30] sm:$0xff]  ;;  %v467_v58 = vld [vmem:[#allocation5 + $0xb18] sm:$0xff] }
 0x1af   :  { %2957 = vmatpush1.bf16.msra.mxu0 %v8059_v0  ;;  %3129 = vmatpush1.bf16.msra.mxu1 %v8061_v1  ;;  %v414_v0 = vld [vmem:[#allocation5 + $0x970] sm:$0xff]  ;;  %v411_v1 = vld [vmem:[#allocation5 + $0x958] sm:$0xff] }
 0x1b0   :  { %2958 = vmatprep.subr.bf16.mxu0 %v8068_v2  ;;  %3130 = vmatprep.subr.bf16.mxu1 %v8070_v3  ;;  %v415_v2 = vld [vmem:[#allocation5 + $0x978] sm:$0xff]  ;;  %v8123_v3 = vcombine.low %v402_v55, %v406_v56  ;;  %v8132_v5 = vcombine.high %v410_v63, %v414_v0  ;;  %v466_v56 = vld [vmem:[#allocation5 + $0xb10] sm:$0xff] }
 0x1b1   :  { %v8134_v6 = vcombine.high %v411_v1, %v415_v2  ;;  %v8133_v12 = vcombine.low %v411_v1, %v415_v2  ;;  %v478_v1 = vld [vmem:[#allocation5 + $0xb70] sm:$0xff]  ;;  %v475_v2 = vld [vmem:[#allocation5 + $0xb58] sm:$0xff] }
 0x1b3   :  { %2959 = vmatpush1.bf16.msra.mxu0 %v8067_v8  ;;  %3131 = vmatpush1.bf16.msra.mxu1 %v8069_v9  ;;  %v422_v8 = vld [vmem:[#allocation5 + $0x9b0] sm:$0xff]  ;;  %v419_v9 = vld [vmem:[#allocation5 + $0x998] sm:$0xff] }
 0x1b4   :  { %2960 = vmatprep.subr.bf16.mxu0 %v8076_v10  ;;  %3132 = vmatprep.subr.bf16.mxu1 %v8078_v11  ;;  %v423_v10 = vld [vmem:[#allocation5 + $0x9b8] sm:$0xff]  ;;  %v8131_v11 = vcombine.low %v410_v63, %v414_v0  ;;  %v8140_v13 = vcombine.high %v418_v7, %v422_v8  ;;  %v474_v0 = vld [vmem:[#allocation5 + $0xb50] sm:$0xff] }
 0x1b5   :  { %v8142_v14 = vcombine.high %v419_v9, %v423_v10  ;;  %v8141_v21 = vcombine.low %v419_v9, %v423_v10  ;;  %v486_v9 = vld [vmem:[#allocation5 + $0xbb0] sm:$0xff]  ;;  %v483_v10 = vld [vmem:[#allocation5 + $0xb98] sm:$0xff] }
 0x1b7   :  { %2961 = vmatpush1.bf16.msra.mxu0 %v8075_v16  ;;  %3133 = vmatpush1.bf16.msra.mxu1 %v8077_v17  ;;  %v430_v16 = vld [vmem:[#allocation5 + $0x9f0] sm:$0xff]  ;;  %v427_v17 = vld [vmem:[#allocation5 + $0x9d8] sm:$0xff] }
 0x1b8   :  { %2962 = vmatprep.subr.bf16.mxu0 %v8084_v18  ;;  %3134 = vmatprep.subr.bf16.mxu1 %v8086_v19  ;;  %v431_v18 = vld [vmem:[#allocation5 + $0x9f8] sm:$0xff]  ;;  %v8139_v19 = vcombine.low %v418_v7, %v422_v8  ;;  %v8148_v22 = vcombine.high %v426_v15, %v430_v16  ;;  %v482_v8 = vld [vmem:[#allocation5 + $0xb90] sm:$0xff] }
 0x1b9   :  { %v8150_v23 = vcombine.high %v427_v17, %v431_v18  ;;  %v8149_v29 = vcombine.low %v427_v17, %v431_v18  ;;  %v494_v17 = vld [vmem:[#allocation5 + $0xbf0] sm:$0xff]  ;;  %v491_v18 = vld [vmem:[#allocation5 + $0xbd8] sm:$0xff] }
 0x1bb   :  { %2963 = vmatpush1.bf16.msra.mxu0 %v8083_v25  ;;  %3135 = vmatpush1.bf16.msra.mxu1 %v8085_v26  ;;  %v438_v25 = vld [vmem:[#allocation5 + $0xa30] sm:$0xff]  ;;  %v435_v26 = vld [vmem:[#allocation5 + $0xa18] sm:$0xff] }
 0x1bc   :  { %2975 = vmatprep.subr.bf16.mxu0 %v8092_v27  ;;  %3147 = vmatprep.subr.bf16.mxu1 %v8094_v28  ;;  %v439_v27 = vld [vmem:[#allocation5 + $0xa38] sm:$0xff]  ;;  %v8147_v28 = vcombine.low %v426_v15, %v430_v16  ;;  %v8156_v30 = vcombine.high %v434_v24, %v438_v25  ;;  %v490_v16 = vld [vmem:[#allocation5 + $0xbd0] sm:$0xff] }
 0x1bd   :  { %v8158_v31 = vcombine.high %v435_v26, %v439_v27  ;;  %v8157_v37 = vcombine.low %v435_v26, %v439_v27  ;;  %v502_v26 = vld [vmem:[#allocation5 + $0xc30] sm:$0xff]  ;;  %v499_v27 = vld [vmem:[#allocation5 + $0xc18] sm:$0xff] }
 0x1be   :  { %2965 = vmatmul.mubr.bf16.vlgmr.msra.gmra.mrb[4].mxu0 %v9120_v39  ;;  %3137 = vmatmul.mubr.bf16.vlgmr.msra.gmra.mrb[4].mxu1 %v9120_v39 }
 0x1bf   :  { %2976 = vmatpush1.bf16.msra.mxu0 %v8091_v33  ;;  %3148 = vmatpush1.bf16.msra.mxu1 %v8093_v34  ;;  %v446_v33 = vld [vmem:[#allocation5 + $0xa70] sm:$0xff]  ;;  %v443_v34 = vld [vmem:[#allocation5 + $0xa58] sm:$0xff] }
 0x1c0   :  { %2977 = vmatprep.subr.bf16.mxu0 %v8100_v35  ;;  %3149 = vmatprep.subr.bf16.mxu1 %v8102_v36  ;;  %v447_v35 = vld [vmem:[#allocation5 + $0xa78] sm:$0xff]  ;;  %v8155_v36 = vcombine.low %v434_v24, %v438_v25  ;;  %v8164_v38 = vcombine.high %v442_v32, %v446_v33  ;;  %v498_v25 = vld [vmem:[#allocation5 + $0xc10] sm:$0xff] }
 0x1c1   :  { %3007 = vmatprep.mubr.bf16.mxu0 %v9121_v48  ;;  %3179 = vmatprep.mubr.bf16.mxu1 %v9121_v48  ;;  %v8166_v39 = vcombine.high %v443_v34, %v447_v35  ;;  %v458_v48 = vld [vmem:[#allocation5 + $0xad0] sm:$0xff] }
 0x1c3   :  { %2978 = vmatpush1.bf16.msra.mxu0 %v8099_v42  ;;  %3150 = vmatpush1.bf16.msra.mxu1 %v8101_v43  ;;  %v451_v42 = vld [vmem:[#allocation5 + $0xa98] sm:$0xff] }
 0x1c4   :  { %2979 = vmatprep.subr.bf16.mxu0 %v8108_v44  ;;  %3151 = vmatprep.subr.bf16.mxu1 %v8110_v45  ;;  %v455_v43 = vld [vmem:[#allocation5 + $0xab8] sm:$0xff]  ;;  %v8163_v44 = vcombine.low %v442_v32, %v446_v33  ;;  %v8165_v45 = vcombine.low %v443_v34, %v447_v35  ;;  %v3257_v33 = vld [vmem:[#allocation8] sm:$0xff]  ;;  %v8219_v35 = vcombine.low %v498_v25, %v502_v26 }
 0x1c5   :  { %v8174_v47 = vcombine.high %v451_v42, %v455_v43  ;;  %v3261_v34 = vld [vmem:[#allocation8 + $0x20] sm:$0xff] }
 0x1c7   :  { %2980 = vmatpush1.bf16.msra.mxu0 %v8107_v51  ;;  %3152 = vmatpush1.bf16.msra.mxu1 %v8109_v52  ;;  %v463_v51 = vld [vmem:[#allocation5 + $0xaf8] sm:$0xff]  ;;  %v8171_v52 = vcombine.low %v450_v40, %v454_v41 }
 0x1c8   :  { %2981 = vmatprep.subr.bf16.mxu0 %v8116_v53  ;;  %3153 = vmatprep.subr.bf16.mxu1 %v8118_v54  ;;  %v8173_v53 = vcombine.low %v451_v42, %v455_v43  ;;  %v8180_v54 = vcombine.high %v458_v48, %v462_v49  ;;  %v8182_v55 = vcombine.high %v459_v50, %v463_v51  ;;  %v9122_v40 = vld [vmem:[#allocation2 + $0x10] ss:$28 sps:$4 sm:$0xff]   ;;  %v506_v42 = vlaneseq  ;;  %v3265_v43 = vld [vmem:[#allocation8 + $0x40] sm:$0xff] }
 0x1cb   :  { %2982 = vmatpush1.bf16.msra.mxu0 %v8115_v59  ;;  %3154 = vmatpush1.bf16.msra.mxu1 %v8117_v60  ;;  %v471_v59 = vld [vmem:[#allocation5 + $0xb38] sm:$0xff]  ;;  %v8179_v60 = vcombine.low %v458_v48, %v462_v49  ;;  %v8227_v48 = vcombine.low %v3257_v33, %v3261_v34 }
 0x1cc   :  { %2983 = vmatprep.subr.bf16.mxu0 %v8124_v61  ;;  %3155 = vmatprep.subr.bf16.mxu1 %v8126_v62  ;;  %v8181_v61 = vcombine.low %v459_v50, %v463_v51  ;;  %v8188_v62 = vcombine.high %v466_v56, %v470_v57  ;;  %v8190_v63 = vcombine.high %v467_v58, %v471_v59 }
 0x1cf   :  { %2984 = vmatpush1.bf16.msra.mxu0 %v8123_v3  ;;  %3156 = vmatpush1.bf16.msra.mxu1 %v8125_v4  ;;  %v479_v3 = vld [vmem:[#allocation5 + $0xb78] sm:$0xff]  ;;  %v8187_v4 = vcombine.low %v466_v56, %v470_v57 }
 0x1d0   :  { %2985 = vmatprep.subr.bf16.mxu0 %v8132_v5  ;;  %3157 = vmatprep.subr.bf16.mxu1 %v8134_v6  ;;  %v8189_v5 = vcombine.low %v467_v58, %v471_v59  ;;  %v8196_v6 = vcombine.high %v474_v0, %v478_v1  ;;  %v8198_v7 = vcombine.high %v475_v2, %v479_v3  ;;  %v504_v58 = vld [vmem:[#allocation7] sm:$0xff] }
 0x1d3   :  { %2986 = vmatpush1.bf16.msra.mxu0 %v8131_v11  ;;  %3158 = vmatpush1.bf16.msra.mxu1 %v8133_v12  ;;  %v487_v11 = vld [vmem:[#allocation5 + $0xbb8] sm:$0xff]  ;;  %v8195_v12 = vcombine.low %v474_v0, %v478_v1  ;;  %v3281_v1 = vld [vmem:[#allocation8 + $0xc0] sm:$0xff] }
 0x1d4   :  { %2987 = vmatprep.subr.bf16.mxu0 %v8140_v13  ;;  %3159 = vmatprep.subr.bf16.mxu1 %v8142_v14  ;;  %v8197_v13 = vcombine.low %v475_v2, %v479_v3  ;;  %v8204_v14 = vcombine.high %v482_v8, %v486_v9  ;;  %v8206_v15 = vcombine.high %v483_v10, %v487_v11  ;;  %v3285_v2 = vld [vmem:[#allocation8 + $0xe0] sm:$0xff] }
 0x1d7   :  { %2988 = vmatpush1.bf16.msra.mxu0 %v8139_v19  ;;  %3160 = vmatpush1.bf16.msra.mxu1 %v8141_v21  ;;  %v495_v19 = vld [vmem:[#allocation5 + $0xbf8] sm:$0xff]  ;;  %v8203_v21 = vcombine.low %v482_v8, %v486_v9 }
 0x1d8   :  { %2989 = vmatprep.subr.bf16.mxu0 %v8148_v22  ;;  %3161 = vmatprep.subr.bf16.mxu1 %v8150_v23  ;;  %v8205_v22 = vcombine.low %v483_v10, %v487_v11  ;;  %v8212_v23 = vcombine.high %v490_v16, %v494_v17  ;;  %v8214_v24 = vcombine.high %v491_v18, %v495_v19 }
 0x1d9   :  { %v8252_v11 = vcombine.high %v3281_v1, %v3285_v2 }
 0x1db   :  { %2990 = vmatpush1.bf16.msra.mxu0 %v8147_v28  ;;  %3162 = vmatpush1.bf16.msra.mxu1 %v8149_v29  ;;  %v503_v28 = vld [vmem:[#allocation5 + $0xc38] sm:$0xff]  ;;  %v8211_v29 = vcombine.low %v490_v16, %v494_v17 }
 0x1dc   :  { %2991 = vmatprep.subr.bf16.mxu0 %v8156_v30  ;;  %3163 = vmatprep.subr.bf16.mxu1 %v8158_v31  ;;  %v8213_v30 = vcombine.low %v491_v18, %v495_v19  ;;  %v8220_v31 = vcombine.high %v498_v25, %v502_v26  ;;  %v8222_v32 = vcombine.high %v499_v27, %v503_v28  ;;  %v3290_v19 = vld [vmem:[#allocation8 + $0x108] sm:$0xff] }
 0x1dd   :  { %v8251_v26 = vcombine.low %v3281_v1, %v3285_v2  ;;  %v3310_v1 = vld [vmem:[#allocation8 + $0x1a8] sm:$0xff] }
 0x1df   :  { %2992 = vmatpush1.bf16.msra.mxu0 %v8155_v36  ;;  %3164 = vmatpush1.bf16.msra.mxu1 %v8157_v37  ;;  %v3258_v36 = vld [vmem:[#allocation8 + $0x8] sm:$0xff] }
 0x1e0   :  { %2993 = vmatprep.subr.bf16.mxu0 %v8164_v38  ;;  %3165 = vmatprep.subr.bf16.mxu1 %v8166_v39  ;;  %v3262_v37 = vld [vmem:[#allocation8 + $0x28] sm:$0xff]  ;;  %v8221_v38 = vcombine.low %v499_v27, %v503_v28  ;;  %v8228_v39 = vcombine.high %v3257_v33, %v3261_v34 }
 0x1e1   :  { %v8230_v41 = vcombine.high %v3258_v36, %v3262_v37  ;;  %v8229_v49 = vcombine.low %v3258_v36, %v3262_v37  ;;  %v3297_v37 = vld [vmem:[#allocation8 + $0x140] sm:$0xff] }
 0x1e3   :  { %2994 = vmatpush1.bf16.msra.mxu0 %v8163_v44  ;;  %3166 = vmatpush1.bf16.msra.mxu1 %v8165_v45  ;;  %v3269_v44 = vld [vmem:[#allocation8 + $0x60] sm:$0xff]  ;;  %v3266_v45 = vld [vmem:[#allocation8 + $0x48] sm:$0xff] }
 0x1e4   :  { %2995 = vmatprep.subr.bf16.mxu0 %v8172_v46  ;;  %3167 = vmatprep.subr.bf16.mxu1 %v8174_v47  ;;  %v3270_v46 = vld [vmem:[#allocation8 + $0x68] sm:$0xff]  ;;  %v9422_v47 = vshrl.u32 %v506_v42, 7  ;;  %v8236_v50 = vcombine.high %v3265_v43, %v3269_v44  ;;  %v8235_v57 = vcombine.low %v3265_v43, %v3269_v44  ;;  %v3301_v42 = vld [vmem:[#allocation8 + $0x160] sm:$0xff] }
 0x1e5   :  { %v8238_v51 = vcombine.high %v3266_v45, %v3270_v46  ;;  %v3298_v43 = vld [vmem:[#allocation8 + $0x148] sm:$0xff]  ;;  %v8267_v2 = vcombine.low %v3297_v37, %v3301_v42 }
 0x1e6   :  { %v508_v56 = vsub.s32 0, %v9422_v47  ;;  %v516_v59 = vsub.s32 2, %v9422_v47  ;;  %v3302_v44 = vld [vmem:[#allocation8 + $0x168] sm:$0xff] }
 0x1e7   :  { %2996 = vmatpush1.bf16.msra.mxu0 %v8171_v52  ;;  %3168 = vmatpush1.bf16.msra.mxu1 %v8173_v53  ;;  %v3273_v52 = vld [vmem:[#allocation8 + $0x80] sm:$0xff] }
 0x1e8   :  { %2997 = vmatprep.subr.bf16.mxu0 %v8180_v54  ;;  %3169 = vmatprep.subr.bf16.mxu1 %v8182_v55  ;;  %v3277_v53 = vld [vmem:[#allocation8 + $0xa0] sm:$0xff]  ;;  %v9123_v54 = vld [vmem:[#allocation2 + $0x18] ss:$28 sps:$4 sm:$0xff]   ;;  %v3274_v55 = vld [vmem:[#allocation8 + $0x88] sm:$0xff]  ;;  %v509_v3 = vrot.slane %v504_v58, %v508_v56 }
 0x1eb   :  { %2998 = vmatpush1.bf16.msra.mxu0 %v8179_v60  ;;  %3170 = vmatpush1.bf16.msra.mxu1 %v8181_v61  ;;  %v512_v60 = vsub.s32 1, %v9422_v47  ;;  %v8237_v61 = vcombine.low %v3266_v45, %v3270_v46 }
 0x1ec   :  { %2999 = vmatprep.subr.bf16.mxu0 %v8188_v62  ;;  %3171 = vmatprep.subr.bf16.mxu1 %v8190_v63  ;;  %v8244_v62 = vcombine.high %v3273_v52, %v3277_v53  ;;  %v520_v63 = vsub.s32 3, %v9422_v47 }
 0x1ed   :  { %v513_v8 = vrot.slane %v504_v58, %v512_v60 }
 0x1ee   :  { %v521_v10 = vrot.slane %v504_v58, %v520_v63 }
 0x1ef   :  { %3000 = vmatpush1.bf16.msra.mxu0 %v8187_v4  ;;  %3172 = vmatpush1.bf16.msra.mxu1 %v8189_v5  ;;  %v3282_v4 = vld [vmem:[#allocation8 + $0xc8] sm:$0xff] }
 0x1f0   :  { %3001 = vmatprep.subr.bf16.mxu0 %v8196_v6  ;;  %3173 = vmatprep.subr.bf16.mxu1 %v8198_v7  ;;  %v3286_v5 = vld [vmem:[#allocation8 + $0xe8] sm:$0xff]  ;;  %v8243_v6 = vcombine.low %v3273_v52, %v3277_v53  ;;  %v517_v7 = vrot.slane %v504_v58, %v516_v59  ;;  %v3305_v58 = vld [vmem:[#allocation8 + $0x180] sm:$0xff] }
 0x1f1   :  { %v8253_v27 = vcombine.low %v3282_v4, %v3286_v5 }
 0x1f3   :  { %3002 = vmatpush1.bf16.msra.mxu0 %v8195_v12  ;;  %3174 = vmatpush1.bf16.msra.mxu1 %v8197_v13  ;;  %v8254_v13 = vcombine.high %v3282_v4, %v3286_v5 }
 0x1f4   :  { %3003 = vmatprep.subr.bf16.mxu0 %v8204_v14  ;;  %3175 = vmatprep.subr.bf16.mxu1 %v8206_v15  ;;  %v3289_v14 = vld [vmem:[#allocation8 + $0x100] sm:$0xff] }
 0x1f5   :  { %v3293_v15 = vld [vmem:[#allocation8 + $0x120] sm:$0xff] }
 0x1f7   :  { %3004 = vmatpush1.bf16.msra.mxu0 %v8203_v21  ;;  %3176 = vmatpush1.bf16.msra.mxu1 %v8205_v22  ;;  %v3294_v21 = vld [vmem:[#allocation8 + $0x128] sm:$0xff] }
 0x1f8   :  { %3005 = vmatprep.subr.bf16.mxu0 %v8212_v23  ;;  %3177 = vmatprep.subr.bf16.mxu1 %v8214_v24  ;;  %v8262_v36 = vcombine.high %v3290_v19, %v3294_v21  ;;  %v8261_v53 = vcombine.low %v3290_v19, %v3294_v21 }
 0x1fb   :  { %3006 = vmatpush1.bf16.msra.mxu0 %v8211_v29  ;;  %3178 = vmatpush1.bf16.msra.mxu1 %v8213_v30 }
 0x1fc   :  { %3018 = vmatprep.subr.bf16.mxu0 %v8220_v31  ;;  %3190 = vmatprep.subr.bf16.mxu1 %v8222_v32  ;;  %v8260_v32 = vcombine.high %v3289_v14, %v3293_v15 }
 0x1fe   :  { %3008 = vmatmul.mubr.bf16.vlgmr.msra.gmra.mrb[4].mxu0 %v9122_v40  ;;  %3180 = vmatmul.mubr.bf16.vlgmr.msra.gmra.mrb[4].mxu1 %v9122_v40 }
 0x1ff   :  { %3019 = vmatpush1.bf16.msra.mxu0 %v8219_v35  ;;  %3191 = vmatpush1.bf16.msra.mxu1 %v8221_v38 }
 0x200   :  { %3050 = vmatprep.mubr.bf16.mxu0 %v9299_v20  ;;  %3222 = vmatprep.mubr.bf16.mxu1 %v9299_v20  ;;  %v3278_v20 = vld [vmem:[#allocation8 + $0xa8] sm:$0xff] }
 0x201   :  { %6371 = vmatprep.subr.bf16.mxu0 %v8228_v39  ;;  %6543 = vmatprep.subr.bf16.mxu1 %v8230_v41  ;;  %v8246_v0 = vcombine.high %v3274_v55, %v3278_v20  ;;  %v8245_v9 = vcombine.low %v3274_v55, %v3278_v20  ;;  %v8259_v41 = vcombine.low %v3289_v14, %v3293_v15  ;;  %v3321_v14 = vld [vmem:[#allocation8 + $0x200] sm:$0xff] }
 0x202   :  { %v8268_v20 = vcombine.high %v3297_v37, %v3301_v42  ;;  %v3325_v15 = vld [vmem:[#allocation8 + $0x220] sm:$0xff]  ;;  %v3350_v42 = vld [vmem:[#allocation8 + $0x2e8] sm:$0xff] }
 0x203   :  { %v8292_v21 = vcombine.high %v3321_v14, %v3325_v15 }
 0x20a   :  { %8225 = vmatmul.mubr.msk.bf16.vlgmr.msra.gmra.mrb[4].mxu0 %vm2541_vm0, %v9123_v54  ;;  %8226 = vmatmul.mubr.msk.bf16.vlgmr.msra.gmra.mrb[4].mxu1 %vm2541_vm0, %v9123_v54 }
 0x20b   :  { %6372 = vmatpush1.bf16.msra.mxu0 %v8227_v48  ;;  %6544 = vmatpush1.bf16.msra.mxu1 %v8229_v49 }
 0x20c   :  { %6373 = vmatprep.subr.bf16.mxu0 %v8236_v50  ;;  %6545 = vmatprep.subr.bf16.mxu1 %v8238_v51 }
 0x20f   :  { %6374 = vmatpush1.bf16.msra.mxu0 %v8235_v57  ;;  %6546 = vmatpush1.bf16.msra.mxu1 %v8237_v61  ;;  %v8270_v57 = vcombine.high %v3298_v43, %v3302_v44  ;;  %v3309_v61 = vld [vmem:[#allocation8 + $0x1a0] sm:$0xff] }
 0x210   :  { %6375 = vmatprep.subr.bf16.mxu0 %v8244_v62  ;;  %6547 = vmatprep.subr.bf16.mxu1 %v8246_v0  ;;  %v3306_v0 = vld [vmem:[#allocation8 + $0x188] sm:$0xff]  ;;  %v8276_v4 = vcombine.high %v3305_v58, %v3309_v61 }
 0x211   :  { %v2708_v12 = vpop.f32.mrb[0].mxu0  ;;  %v2880_v17 = vpop.f32.mrb[0].mxu1  ;;  %v8278_v5 = vcombine.high %v3306_v0, %v3310_v1 }
 0x212   :  { %v8892_v16 = vadd.f32 %v2708_v12, %v509_v3  ;;  %v2710_v18 = vpop.f32.mrb[1].mxu0  ;;  %v8896_v22 = vadd.f32 %v2880_v17, %v517_v7  ;;  %v2882_v24 = vpop.f32.mrb[1].mxu1  ;;  %v3326_v17 = vld [vmem:[#allocation8 + $0x228] sm:$0xff] }
 0x213   :  { %6376 = vmatpush1.bf16.msra.mxu0 %v8243_v6  ;;  %v8893_v23 = vadd.f32 %v2710_v18, %v513_v8  ;;  %v2712_v25 = vpop.f32.mrb[2].mxu0  ;;  %6548 = vmatpush1.bf16.msra.mxu1 %v8245_v9  ;;  %v8897_v28 = vadd.f32 %v2882_v24, %v521_v10  ;;  %v2884_v30 = vpop.f32.mrb[2].mxu1  ;;  %v3313_v6 = vld [vmem:[#allocation8 + $0x1c0] sm:$0xff]  ;;  %v3318_v9 = vld [vmem:[#allocation8 + $0x1e8] sm:$0xff] }
 0x214   :  { %v8894_v29 = vadd.f32 %v2712_v25, %v509_v3  ;;  %v2714_v31 = vpop.f32.mrb[3].mxu0  ;;  %6377 = vmatprep.subr.bf16.mxu0 %v8252_v11  ;;  %v8898_v33 = vadd.f32 %v2884_v30, %v517_v7  ;;  %v2886_v35 = vpop.f32.mrb[3].mxu1  ;;  %6549 = vmatprep.subr.bf16.mxu1 %v8254_v13  ;;  %v3233_v38 = vmax.f32 %v8892_v16, 0.0  ;;  %v3235_v45 = vmax.f32 %v8896_v22, 0.0  ;;  %v3317_v7 = vld [vmem:[#allocation8 + $0x1e0] sm:$0xff]  ;;  %v3322_v16 = vld [vmem:[#allocation8 + $0x208] sm:$0xff] }
 0x215   :  { %v8895_v34 = vadd.f32 %v2714_v31, %v513_v8  ;;  %v8899_v40 = vadd.f32 %v2886_v35, %v521_v10  ;;  %v3234_v46 = vmax.f32 %v8893_v23, 0.0  ;;  %v3236_v50 = vmax.f32 %v8897_v28, 0.0  ;;  %v3314_v8 = vld [vmem:[#allocation8 + $0x1c8] sm:$0xff]  ;;  %v3329_v23 = vld [vmem:[#allocation8 + $0x240] sm:$0xff] }
 0x216   :  { %v3241_v39 = vmax.f32 %v8894_v29, 0.0  ;;  %v3243_v48 = vmax.f32 %v8898_v33, 0.0  ;;  %v8269_v3 = vcombine.low %v3298_v43, %v3302_v44  ;;  %v8275_v10 = vcombine.low %v3305_v58, %v3309_v61  ;;  %v3333_v24 = vld [vmem:[#allocation8 + $0x260] sm:$0xff]  ;;  %v3330_v25 = vld [vmem:[#allocation8 + $0x248] sm:$0xff] }
 0x217   :  { %v3242_v49 = vmax.f32 %v8895_v34, 0.0  ;;  %6378 = vmatpush1.bf16.msra.mxu0 %v8251_v26  ;;  %v3244_v52 = vmax.f32 %v8899_v40, 0.0  ;;  %6550 = vmatpush1.bf16.msra.mxu1 %v8253_v27  ;;  %v8277_v11 = vcombine.low %v3306_v0, %v3310_v1  ;;  %v8284_v12 = vcombine.high %v3313_v6, %v3317_v7  ;;  %v3334_v26 = vld [vmem:[#allocation8 + $0x268] sm:$0xff]  ;;  %v3337_v31 = vld [vmem:[#allocation8 + $0x280] sm:$0xff] }
 0x218   :  { %v9438_v51 = vpack.c.bf16 %v3241_v39, %v3233_v38  ;;  %6379 = vmatprep.subr.bf16.mxu0 %v8260_v32  ;;  %v9440_v54 = vpack.c.bf16 %v3243_v48, %v3235_v45  ;;  %6551 = vmatprep.subr.bf16.mxu1 %v8262_v36  ;;  %v8286_v13 = vcombine.high %v3314_v8, %v3318_v9  ;;  %v3341_v32 = vld [vmem:[#allocation8 + $0x2a0] sm:$0xff]  ;;  %v3338_v33 = vld [vmem:[#allocation8 + $0x288] sm:$0xff] }
 0x219   :  { %v9442_v55 = vpack.c.bf16 %v3242_v49, %v3234_v46  ;;  %v9444_v62 = vpack.c.bf16 %v3244_v52, %v3236_v50  ;;  %v8283_v18 = vcombine.low %v3313_v6, %v3317_v7  ;;  %v8285_v19 = vcombine.low %v3314_v8, %v3318_v9  ;;  %v3342_v34 = vld [vmem:[#allocation8 + $0x2a8] sm:$0xff]  ;;  %v3345_v39 = vld [vmem:[#allocation8 + $0x2c0] sm:$0xff] }
 0x21a   :  { %v8294_v22 = vcombine.high %v3322_v16, %v3326_v17  ;;  %v8291_v27 = vcombine.low %v3321_v14, %v3325_v15  ;;  %v8293_v28 = vcombine.low %v3322_v16, %v3326_v17  ;;  %v8300_v29 = vcombine.high %v3329_v23, %v3333_v24  ;;  %v3349_v40 = vld [vmem:[#allocation8 + $0x2e0] sm:$0xff]  ;;  %v3354_v50 = vld [vmem:[#allocation8 + $0x308] sm:$0xff] }
 0x21b   :  { %6380 = vmatpush1.bf16.msra.mxu0 %v8259_v41  ;;  %6403 = vmatprep.mubr.bf16.mxu0 %v9442_v55  ;;  %v8302_v30 = vcombine.high %v3330_v25, %v3334_v26  ;;  %v8299_v35 = vcombine.low %v3329_v23, %v3333_v24  ;;  %v8301_v36 = vcombine.low %v3330_v25, %v3334_v26  ;;  %v3346_v41 = vld [vmem:[#allocation8 + $0x2c8] sm:$0xff]  ;;  %v3353_v48 = vld [vmem:[#allocation8 + $0x300] sm:$0xff] }
 0x21c   :  { %6552 = vmatpush1.bf16.msra.mxu1 %v8261_v53  ;;  %6575 = vmatprep.mubr.bf16.mxu1 %v9442_v55  ;;  %v8308_v37 = vcombine.high %v3337_v31, %v3341_v32  ;;  %v8310_v38 = vcombine.high %v3338_v33, %v3342_v34  ;;  %v8307_v43 = vcombine.low %v3337_v31, %v3341_v32  ;;  %v3357_v49 = vld [vmem:[#allocation8 + $0x320] sm:$0xff]  ;;  %v3358_v52 = vld [vmem:[#allocation8 + $0x328] sm:$0xff] }
 0x21d   :  { %6381 = vmatprep.subr.bf16.mxu0 %v8268_v20  ;;  %6553 = vmatprep.subr.bf16.mxu1 %v8270_v57  ;;  %v8309_v44 = vcombine.low %v3338_v33, %v3342_v34  ;;  %v8316_v45 = vcombine.high %v3345_v39, %v3349_v40  ;;  %v8318_v46 = vcombine.high %v3346_v41, %v3350_v42  ;;  %v3361_v61 = vld [vmem:[#allocation8 + $0x340] sm:$0xff]  ;;  %v3362_v1 = vld [vmem:[#allocation8 + $0x348] sm:$0xff] }
 0x21e   :  { %v8315_v53 = vcombine.low %v3345_v39, %v3349_v40  ;;  %v8317_v20 = vcombine.low %v3346_v41, %v3350_v42  ;;  %v8324_v57 = vcombine.high %v3353_v48, %v3357_v49  ;;  %v8326_v58 = vcombine.high %v3354_v50, %v3358_v52  ;;  %v3365_v0 = vld [vmem:[#allocation8 + $0x360] sm:$0xff]  ;;  %v3370_v9 = vld [vmem:[#allocation8 + $0x388] sm:$0xff] }
 0x21f   :  { %6382 = vmatpush1.bf16.msra.mxu0 %v8267_v2  ;;  %v3366_v2 = vld [vmem:[#allocation8 + $0x368] sm:$0xff]  ;;  %v3369_v7 = vld [vmem:[#allocation8 + $0x380] sm:$0xff] }
 0x220   :  { %6554 = vmatpush1.bf16.msra.mxu1 %v8269_v3  ;;  %6383 = vmatprep.subr.bf16.mxu0 %v8276_v4  ;;  %v8323_v3 = vcombine.low %v3353_v48, %v3357_v49  ;;  %v8325_v4 = vcombine.low %v3354_v50, %v3358_v52  ;;  %v8334_v6 = vcombine.high %v3362_v1, %v3366_v2  ;;  %v3373_v8 = vld [vmem:[#allocation8 + $0x3a0] sm:$0xff]  ;;  %v3378_v17 = vld [vmem:[#allocation8 + $0x3c8] sm:$0xff] }
 0x221   :  { %6555 = vmatprep.subr.bf16.mxu1 %v8278_v5  ;;  %v8332_v5 = vcombine.high %v3361_v61, %v3365_v0  ;;  %v3377_v15 = vld [vmem:[#allocation8 + $0x3c0] sm:$0xff]  ;;  %v3386_v26 = vld [vmem:[#allocation8 + $0x408] sm:$0xff] }
 0x222   :  { %v3381_v16 = vld [vmem:[#allocation8 + $0x3e0] sm:$0xff]  ;;  %v3402_v42 = vld [vmem:[#allocation8 + $0x488] sm:$0xff] }
 0x223   :  { %6384 = vmatpush1.bf16.msra.mxu0 %v8275_v10  ;;  %v3374_v10 = vld [vmem:[#allocation8 + $0x3a8] sm:$0xff]  ;;  %v3385_v24 = vld [vmem:[#allocation8 + $0x400] sm:$0xff] }
 0x224   :  { %6556 = vmatpush1.bf16.msra.mxu1 %v8277_v11  ;;  %6385 = vmatprep.subr.bf16.mxu0 %v8284_v12  ;;  %v8331_v11 = vcombine.low %v3361_v61, %v3365_v0  ;;  %v8333_v12 = vcombine.low %v3362_v1, %v3366_v2  ;;  %v8342_v14 = vcombine.high %v3370_v9, %v3374_v10  ;;  %v3389_v25 = vld [vmem:[#allocation8 + $0x420] sm:$0xff]  ;;  %v3410_v52 = vld [vmem:[#allocation8 + $0x4c8] sm:$0xff] }
 0x225   :  { %6557 = vmatprep.subr.bf16.mxu1 %v8286_v13  ;;  %v8340_v13 = vcombine.high %v3369_v7, %v3373_v8  ;;  %v3393_v32 = vld [vmem:[#allocation8 + $0x440] sm:$0xff]  ;;  %v8355_v34 = vcombine.low %v3385_v24, %v3389_v25  ;;  %v3418_v2 = vld [vmem:[#allocation8 + $0x508] sm:$0xff] }
 0x226   :  { %v3397_v33 = vld [vmem:[#allocation8 + $0x460] sm:$0xff] }
 0x227   :  { %6386 = vmatpush1.bf16.msra.mxu0 %v8283_v18  ;;  %v3382_v18 = vld [vmem:[#allocation8 + $0x3e8] sm:$0xff]  ;;  %v3401_v39 = vld [vmem:[#allocation8 + $0x480] sm:$0xff] }
 0x228   :  { %6558 = vmatpush1.bf16.msra.mxu1 %v8285_v19  ;;  %6387 = vmatprep.subr.bf16.mxu0 %v8292_v21  ;;  %v8339_v19 = vcombine.low %v3369_v7, %v3373_v8  ;;  %v8341_v21 = vcombine.low %v3370_v9, %v3374_v10  ;;  %v8350_v23 = vcombine.high %v3378_v17, %v3382_v18  ;;  %v3405_v40 = vld [vmem:[#allocation8 + $0x4a0] sm:$0xff]  ;;  %v3426_v10 = vld [vmem:[#allocation8 + $0x548] sm:$0xff] }
 0x229   :  { %6559 = vmatprep.subr.bf16.mxu1 %v8294_v22  ;;  %v8348_v22 = vcombine.high %v3377_v15, %v3381_v16  ;;  %v3409_v49 = vld [vmem:[#allocation8 + $0x4c0] sm:$0xff] }
 0x22a   :  { %v3413_v50 = vld [vmem:[#allocation8 + $0x4e0] sm:$0xff] }
 0x22b   :  { %6388 = vmatpush1.bf16.msra.mxu0 %v8291_v27  ;;  %v3390_v27 = vld [vmem:[#allocation8 + $0x428] sm:$0xff]  ;;  %v3417_v0 = vld [vmem:[#allocation8 + $0x500] sm:$0xff] }
 0x22c   :  { %6560 = vmatpush1.bf16.msra.mxu1 %v8293_v28  ;;  %6389 = vmatprep.subr.bf16.mxu0 %v8300_v29  ;;  %v8347_v28 = vcombine.low %v3377_v15, %v3381_v16  ;;  %v8349_v29 = vcombine.low %v3378_v17, %v3382_v18  ;;  %v8358_v31 = vcombine.high %v3386_v26, %v3390_v27  ;;  %v3421_v1 = vld [vmem:[#allocation8 + $0x520] sm:$0xff]  ;;  %v3434_v18 = vld [vmem:[#allocation8 + $0x588] sm:$0xff] }
 0x22d   :  { %6561 = vmatprep.subr.bf16.mxu1 %v8302_v30  ;;  %v8356_v30 = vcombine.high %v3385_v24, %v3389_v25  ;;  %v3425_v8 = vld [vmem:[#allocation8 + $0x540] sm:$0xff] }
 0x22e   :  { %v3429_v9 = vld [vmem:[#allocation8 + $0x560] sm:$0xff] }
 0x22f   :  { %6390 = vmatpush1.bf16.msra.mxu0 %v8299_v35  ;;  %v3394_v35 = vld [vmem:[#allocation8 + $0x448] sm:$0xff]  ;;  %v3433_v16 = vld [vmem:[#allocation8 + $0x580] sm:$0xff] }
 0x230   :  { %6562 = vmatpush1.bf16.msra.mxu1 %v8301_v36  ;;  %6391 = vmatprep.subr.bf16.mxu0 %v8308_v37  ;;  %v3398_v36 = vld [vmem:[#allocation8 + $0x468] sm:$0xff]  ;;  %v8357_v37 = vcombine.low %v3386_v26, %v3390_v27  ;;  %v3437_v17 = vld [vmem:[#allocation8 + $0x5a0] sm:$0xff] }
 0x231   :  { %6563 = vmatprep.subr.bf16.mxu1 %v8310_v38  ;;  %v8364_v38 = vcombine.high %v3393_v32, %v3397_v33  ;;  %v8366_v41 = vcombine.high %v3394_v35, %v3398_v36  ;;  %v3441_v25 = vld [vmem:[#allocation8 + $0x5c0] sm:$0xff]  ;;  %v3442_v27 = vld [vmem:[#allocation8 + $0x5c8] sm:$0xff] }
 0x232   :  { %v3445_v26 = vld [vmem:[#allocation8 + $0x5e0] sm:$0xff] }
 0x233   :  { %6392 = vmatpush1.bf16.msra.mxu0 %v8307_v43  ;;  %v3406_v43 = vld [vmem:[#allocation8 + $0x4a8] sm:$0xff] }
 0x234   :  { %6564 = vmatpush1.bf16.msra.mxu1 %v8309_v44  ;;  %6393 = vmatprep.subr.bf16.mxu0 %v8316_v45  ;;  %v8363_v44 = vcombine.low %v3393_v32, %v3397_v33  ;;  %v8365_v45 = vcombine.low %v3394_v35, %v3398_v36  ;;  %v8374_v48 = vcombine.high %v3402_v42, %v3406_v43  ;;  %v3449_v33 = vld [vmem:[#allocation8 + $0x600] sm:$0xff]  ;;  %v3450_v35 = vld [vmem:[#allocation8 + $0x608] sm:$0xff] }
 0x235   :  { %6565 = vmatprep.subr.bf16.mxu1 %v8318_v46  ;;  %v8372_v46 = vcombine.high %v3401_v39, %v3405_v40  ;;  %v3454_v36 = vld [vmem:[#allocation8 + $0x628] sm:$0xff] }
 0x237   :  { %6394 = vmatpush1.bf16.msra.mxu0 %v8315_v53  ;;  %v3414_v53 = vld [vmem:[#allocation8 + $0x4e8] sm:$0xff] }
 0x238   :  { %6566 = vmatpush1.bf16.msra.mxu1 %v8317_v20  ;;  %6395 = vmatprep.subr.bf16.mxu0 %v8324_v57  ;;  %v8371_v20 = vcombine.low %v3401_v39, %v3405_v40  ;;  %v8373_v57 = vcombine.low %v3402_v42, %v3406_v43  ;;  %v8382_v61 = vcombine.high %v3410_v52, %v3414_v53  ;;  %v3461_v42 = vld [vmem:[#allocation8 + $0x660] sm:$0xff]  ;;  %v3458_v43 = vld [vmem:[#allocation8 + $0x648] sm:$0xff] }
 0x239   :  { %6567 = vmatprep.subr.bf16.mxu1 %v8326_v58  ;;  %v8380_v58 = vcombine.high %v3409_v49, %v3413_v50  ;;  %v8422_v40 = vcombine.high %v3450_v35, %v3454_v36 }
 0x23b   :  { %6396 = vmatpush1.bf16.msra.mxu0 %v8323_v3  ;;  %v3422_v3 = vld [vmem:[#allocation8 + $0x528] sm:$0xff] }
 0x23c   :  { %6568 = vmatpush1.bf16.msra.mxu1 %v8325_v4  ;;  %6397 = vmatprep.subr.bf16.mxu0 %v8332_v5  ;;  %v8379_v4 = vcombine.low %v3409_v49, %v3413_v50  ;;  %v8381_v5 = vcombine.low %v3410_v52, %v3414_v53  ;;  %v8390_v7 = vcombine.high %v3418_v2, %v3422_v3  ;;  %v3465_v50 = vld [vmem:[#allocation8 + $0x680] sm:$0xff]  ;;  %v3466_v53 = vld [vmem:[#allocation8 + $0x688] sm:$0xff] }
 0x23d   :  { %6569 = vmatprep.subr.bf16.mxu1 %v8334_v6  ;;  %v8388_v6 = vcombine.high %v3417_v0, %v3421_v1  ;;  %v3469_v52 = vld [vmem:[#allocation8 + $0x6a0] sm:$0xff] }
 0x23f   :  { %6398 = vmatpush1.bf16.msra.mxu0 %v8331_v11  ;;  %v3430_v11 = vld [vmem:[#allocation8 + $0x568] sm:$0xff] }
 0x240   :  { %6570 = vmatpush1.bf16.msra.mxu1 %v8333_v12  ;;  %6399 = vmatprep.subr.bf16.mxu0 %v8340_v13  ;;  %v8387_v12 = vcombine.low %v3417_v0, %v3421_v1  ;;  %v8389_v13 = vcombine.low %v3418_v2, %v3422_v3  ;;  %v8398_v15 = vcombine.high %v3426_v10, %v3430_v11  ;;  %v3473_v1 = vld [vmem:[#allocation8 + $0x6c0] sm:$0xff]  ;;  %v3474_v3 = vld [vmem:[#allocation8 + $0x6c8] sm:$0xff] }
 0x241   :  { %6571 = vmatprep.subr.bf16.mxu1 %v8342_v14  ;;  %v8396_v14 = vcombine.high %v3425_v8, %v3429_v9  ;;  %v3477_v2 = vld [vmem:[#allocation8 + $0x6e0] sm:$0xff] }
 0x243   :  { %6400 = vmatpush1.bf16.msra.mxu0 %v8339_v19  ;;  %v3438_v19 = vld [vmem:[#allocation8 + $0x5a8] sm:$0xff] }
 0x244   :  { %6572 = vmatpush1.bf16.msra.mxu1 %v8341_v21  ;;  %6401 = vmatprep.subr.bf16.mxu0 %v8348_v22  ;;  %v8395_v21 = vcombine.low %v3425_v8, %v3429_v9  ;;  %v8397_v22 = vcombine.low %v3426_v10, %v3430_v11  ;;  %v8406_v24 = vcombine.high %v3434_v18, %v3438_v19  ;;  %v3481_v9 = vld [vmem:[#allocation8 + $0x700] sm:$0xff]  ;;  %v3482_v11 = vld [vmem:[#allocation8 + $0x708] sm:$0xff] }
 0x245   :  { %6573 = vmatprep.subr.bf16.mxu1 %v8350_v23  ;;  %v8404_v23 = vcombine.high %v3433_v16, %v3437_v17  ;;  %v3485_v10 = vld [vmem:[#allocation8 + $0x720] sm:$0xff] }
 0x247   :  { %6402 = vmatpush1.bf16.msra.mxu0 %v8347_v28  ;;  %v3446_v28 = vld [vmem:[#allocation8 + $0x5e8] sm:$0xff] }
 0x248   :  { %6574 = vmatpush1.bf16.msra.mxu1 %v8349_v29  ;;  %6414 = vmatprep.subr.bf16.mxu0 %v8356_v30  ;;  %v8403_v29 = vcombine.low %v3433_v16, %v3437_v17  ;;  %v8405_v30 = vcombine.low %v3434_v18, %v3438_v19  ;;  %v8414_v32 = vcombine.high %v3442_v27, %v3446_v28  ;;  %v3489_v17 = vld [vmem:[#allocation8 + $0x740] sm:$0xff]  ;;  %v3490_v19 = vld [vmem:[#allocation8 + $0x748] sm:$0xff] }
 0x249   :  { %6586 = vmatprep.subr.bf16.mxu1 %v8358_v31  ;;  %v8412_v31 = vcombine.high %v3441_v25, %v3445_v26  ;;  %v3493_v18 = vld [vmem:[#allocation8 + $0x760] sm:$0xff] }
 0x24a   :  { %6404 = vmatmul.mubr.bf16.vlgmr.msra.gmra.mrb[8].mxu0 %v9438_v51 }
 0x24b   :  { %6576 = vmatmul.mubr.bf16.vlgmr.msra.gmra.mrb[8].mxu1 %v9438_v51  ;;  %6415 = vmatpush1.bf16.msra.mxu0 %v8355_v34  ;;  %v3453_v34 = vld [vmem:[#allocation8 + $0x620] sm:$0xff] }
 0x24c   :  { %6446 = vmatprep.mubr.bf16.mxu0 %v9444_v62  ;;  %6587 = vmatpush1.bf16.msra.mxu1 %v8357_v37  ;;  %v8411_v37 = vcombine.low %v3441_v25, %v3445_v26  ;;  %v8420_v39 = vcombine.high %v3449_v33, %v3453_v34  ;;  %v3497_v26 = vld [vmem:[#allocation8 + $0x780] sm:$0xff] }
 0x24d   :  { %6618 = vmatprep.mubr.bf16.mxu1 %v9444_v62  ;;  %6416 = vmatprep.subr.bf16.mxu0 %v8364_v38  ;;  %v8413_v38 = vcombine.low %v3442_v27, %v3446_v28  ;;  %v3501_v27 = vld [vmem:[#allocation8 + $0x7a0] sm:$0xff]  ;;  %v3498_v28 = vld [vmem:[#allocation8 + $0x788] sm:$0xff] }
 0x24e   :  { %6588 = vmatprep.subr.bf16.mxu1 %v8366_v41  ;;  %v3457_v41 = vld [vmem:[#allocation8 + $0x640] sm:$0xff] }
 0x24f   :  { %6417 = vmatpush1.bf16.msra.mxu0 %v8363_v44  ;;  %v3462_v44 = vld [vmem:[#allocation8 + $0x668] sm:$0xff] }
 0x250   :  { %6589 = vmatpush1.bf16.msra.mxu1 %v8365_v45  ;;  %6418 = vmatprep.subr.bf16.mxu0 %v8372_v46  ;;  %v8419_v45 = vcombine.low %v3449_v33, %v3453_v34  ;;  %v8421_v46 = vcombine.low %v3450_v35, %v3454_v36  ;;  %v8430_v49 = vcombine.high %v3458_v43, %v3462_v44  ;;  %v3505_v34 = vld [vmem:[#allocation8 + $0x7c0] sm:$0xff]  ;;  %v3506_v36 = vld [vmem:[#allocation8 + $0x7c8] sm:$0xff] }
 0x251   :  { %6590 = vmatprep.subr.bf16.mxu1 %v8374_v48  ;;  %v8428_v48 = vcombine.high %v3457_v41, %v3461_v42  ;;  %v3509_v35 = vld [vmem:[#allocation8 + $0x7e0] sm:$0xff] }
 0x253   :  { %6419 = vmatpush1.bf16.msra.mxu0 %v8371_v20  ;;  %v3470_v20 = vld [vmem:[#allocation8 + $0x6a8] sm:$0xff] }
 0x254   :  { %6591 = vmatpush1.bf16.msra.mxu1 %v8373_v57  ;;  %6420 = vmatprep.subr.bf16.mxu0 %v8380_v58  ;;  %v8427_v57 = vcombine.low %v3457_v41, %v3461_v42  ;;  %v8429_v58 = vcombine.low %v3458_v43, %v3462_v44  ;;  %v8438_v0 = vcombine.high %v3466_v53, %v3470_v20  ;;  %v3513_v42 = vld [vmem:[#allocation8 + $0x800] sm:$0xff]  ;;  %v3514_v44 = vld [vmem:[#allocation8 + $0x808] sm:$0xff] }
 0x255   :  { %6592 = vmatprep.subr.bf16.mxu1 %v8382_v61  ;;  %v8436_v61 = vcombine.high %v3465_v50, %v3469_v52  ;;  %v3517_v43 = vld [vmem:[#allocation8 + $0x820] sm:$0xff] }
 0x257   :  { %6421 = vmatpush1.bf16.msra.mxu0 %v8379_v4  ;;  %v3478_v4 = vld [vmem:[#allocation8 + $0x6e8] sm:$0xff] }
 0x258   :  { %6593 = vmatpush1.bf16.msra.mxu1 %v8381_v5  ;;  %6422 = vmatprep.subr.bf16.mxu0 %v8388_v6  ;;  %v8435_v5 = vcombine.low %v3465_v50, %v3469_v52  ;;  %v8437_v6 = vcombine.low %v3466_v53, %v3470_v20  ;;  %v8446_v8 = vcombine.high %v3474_v3, %v3478_v4  ;;  %v3521_v52 = vld [vmem:[#allocation8 + $0x840] sm:$0xff]  ;;  %v3522_v20 = vld [vmem:[#allocation8 + $0x848] sm:$0xff] }
 0x259   :  { %6594 = vmatprep.subr.bf16.mxu1 %v8390_v7  ;;  %v8444_v7 = vcombine.high %v3473_v1, %v3477_v2  ;;  %v3525_v53 = vld [vmem:[#allocation8 + $0x860] sm:$0xff] }
 0x25b   :  { %6423 = vmatpush1.bf16.msra.mxu0 %v8387_v12  ;;  %v3486_v12 = vld [vmem:[#allocation8 + $0x728] sm:$0xff] }
 0x25c   :  { %6595 = vmatpush1.bf16.msra.mxu1 %v8389_v13  ;;  %6424 = vmatprep.subr.bf16.mxu0 %v8396_v14  ;;  %v8443_v13 = vcombine.low %v3473_v1, %v3477_v2  ;;  %v8445_v14 = vcombine.low %v3474_v3, %v3478_v4  ;;  %v8454_v16 = vcombine.high %v3482_v11, %v3486_v12  ;;  %v3529_v2 = vld [vmem:[#allocation8 + $0x880] sm:$0xff]  ;;  %v3530_v4 = vld [vmem:[#allocation8 + $0x888] sm:$0xff] }
 0x25d   :  { %6596 = vmatprep.subr.bf16.mxu1 %v8398_v15  ;;  %v8452_v15 = vcombine.high %v3481_v9, %v3485_v10  ;;  %v3533_v3 = vld [vmem:[#allocation8 + $0x8a0] sm:$0xff] }
 0x25f   :  { %6425 = vmatpush1.bf16.msra.mxu0 %v8395_v21  ;;  %v3494_v21 = vld [vmem:[#allocation8 + $0x768] sm:$0xff] }
 0x260   :  { %6597 = vmatpush1.bf16.msra.mxu1 %v8397_v22  ;;  %6426 = vmatprep.subr.bf16.mxu0 %v8404_v23  ;;  %v8451_v22 = vcombine.low %v3481_v9, %v3485_v10  ;;  %v8453_v23 = vcombine.low %v3482_v11, %v3486_v12  ;;  %v8462_v25 = vcombine.high %v3490_v19, %v3494_v21  ;;  %v3537_v10 = vld [vmem:[#allocation8 + $0x8c0] sm:$0xff]  ;;  %v3538_v12 = vld [vmem:[#allocation8 + $0x8c8] sm:$0xff] }
 0x261   :  { %6598 = vmatprep.subr.bf16.mxu1 %v8406_v24  ;;  %v8460_v24 = vcombine.high %v3489_v17, %v3493_v18  ;;  %v3541_v11 = vld [vmem:[#allocation8 + $0x8e0] sm:$0xff] }
 0x263   :  { %6427 = vmatpush1.bf16.msra.mxu0 %v8403_v29  ;;  %v3502_v29 = vld [vmem:[#allocation8 + $0x7a8] sm:$0xff] }
 0x264   :  { %6599 = vmatpush1.bf16.msra.mxu1 %v8405_v30  ;;  %6428 = vmatprep.subr.bf16.mxu0 %v8412_v31  ;;  %v8459_v30 = vcombine.low %v3489_v17, %v3493_v18  ;;  %v8461_v31 = vcombine.low %v3490_v19, %v3494_v21  ;;  %v8470_v33 = vcombine.high %v3498_v28, %v3502_v29  ;;  %v3545_v18 = vld [vmem:[#allocation8 + $0x900] sm:$0xff]  ;;  %v3546_v21 = vld [vmem:[#allocation8 + $0x908] sm:$0xff] }
 0x265   :  { %6600 = vmatprep.subr.bf16.mxu1 %v8414_v32  ;;  %v8468_v32 = vcombine.high %v3497_v26, %v3501_v27  ;;  %v3549_v19 = vld [vmem:[#allocation8 + $0x920] sm:$0xff] }
 0x267   :  { %6429 = vmatpush1.bf16.msra.mxu0 %v8411_v37  ;;  %v3510_v37 = vld [vmem:[#allocation8 + $0x7e8] sm:$0xff] }
 0x268   :  { %6601 = vmatpush1.bf16.msra.mxu1 %v8413_v38  ;;  %6430 = vmatprep.subr.bf16.mxu0 %v8420_v39  ;;  %v8467_v38 = vcombine.low %v3497_v26, %v3501_v27  ;;  %v8469_v39 = vcombine.low %v3498_v28, %v3502_v29  ;;  %v8478_v41 = vcombine.high %v3506_v36, %v3510_v37  ;;  %v3553_v27 = vld [vmem:[#allocation8 + $0x940] sm:$0xff]  ;;  %v3554_v29 = vld [vmem:[#allocation8 + $0x948] sm:$0xff] }
 0x269   :  { %6602 = vmatprep.subr.bf16.mxu1 %v8422_v40  ;;  %v8476_v40 = vcombine.high %v3505_v34, %v3509_v35  ;;  %v3557_v28 = vld [vmem:[#allocation8 + $0x960] sm:$0xff] }
 0x26b   :  { %6431 = vmatpush1.bf16.msra.mxu0 %v8419_v45  ;;  %v3518_v45 = vld [vmem:[#allocation8 + $0x828] sm:$0xff] }
 0x26c   :  { %6603 = vmatpush1.bf16.msra.mxu1 %v8421_v46  ;;  %6432 = vmatprep.subr.bf16.mxu0 %v8428_v48  ;;  %v8475_v46 = vcombine.low %v3505_v34, %v3509_v35  ;;  %v8477_v48 = vcombine.low %v3506_v36, %v3510_v37  ;;  %v8486_v50 = vcombine.high %v3514_v44, %v3518_v45  ;;  %v3561_v35 = vld [vmem:[#allocation8 + $0x980] sm:$0xff]  ;;  %v3562_v37 = vld [vmem:[#allocation8 + $0x988] sm:$0xff] }
 0x26d   :  { %6604 = vmatprep.subr.bf16.mxu1 %v8430_v49  ;;  %v8484_v49 = vcombine.high %v3513_v42, %v3517_v43  ;;  %v3565_v36 = vld [vmem:[#allocation8 + $0x9a0] sm:$0xff] }
 0x26f   :  { %6433 = vmatpush1.bf16.msra.mxu0 %v8427_v57  ;;  %v3526_v57 = vld [vmem:[#allocation8 + $0x868] sm:$0xff] }
 0x270   :  { %6605 = vmatpush1.bf16.msra.mxu1 %v8429_v58  ;;  %6434 = vmatprep.subr.bf16.mxu0 %v8436_v61  ;;  %v8483_v58 = vcombine.low %v3513_v42, %v3517_v43  ;;  %v8485_v61 = vcombine.low %v3514_v44, %v3518_v45  ;;  %v8494_v1 = vcombine.high %v3522_v20, %v3526_v57  ;;  %v3569_v43 = vld [vmem:[#allocation8 + $0x9c0] sm:$0xff]  ;;  %v3570_v45 = vld [vmem:[#allocation8 + $0x9c8] sm:$0xff] }
 0x271   :  { %6606 = vmatprep.subr.bf16.mxu1 %v8438_v0  ;;  %v8492_v0 = vcombine.high %v3521_v52, %v3525_v53  ;;  %v3573_v44 = vld [vmem:[#allocation8 + $0x9e0] sm:$0xff] }
 0x273   :  { %6435 = vmatpush1.bf16.msra.mxu0 %v8435_v5  ;;  %v3534_v5 = vld [vmem:[#allocation8 + $0x8a8] sm:$0xff] }
 0x274   :  { %6607 = vmatpush1.bf16.msra.mxu1 %v8437_v6  ;;  %6436 = vmatprep.subr.bf16.mxu0 %v8444_v7  ;;  %v8491_v6 = vcombine.low %v3521_v52, %v3525_v53  ;;  %v8493_v7 = vcombine.low %v3522_v20, %v3526_v57  ;;  %v8502_v9 = vcombine.high %v3530_v4, %v3534_v5  ;;  %v3577_v53 = vld [vmem:[#allocation8 + $0xa00] sm:$0xff]  ;;  %v3578_v57 = vld [vmem:[#allocation8 + $0xa08] sm:$0xff] }
 0x275   :  { %6608 = vmatprep.subr.bf16.mxu1 %v8446_v8  ;;  %v8500_v8 = vcombine.high %v3529_v2, %v3533_v3  ;;  %v3581_v20 = vld [vmem:[#allocation8 + $0xa20] sm:$0xff] }
 0x277   :  { %6437 = vmatpush1.bf16.msra.mxu0 %v8443_v13  ;;  %v3542_v13 = vld [vmem:[#allocation8 + $0x8e8] sm:$0xff] }
 0x278   :  { %6609 = vmatpush1.bf16.msra.mxu1 %v8445_v14  ;;  %6438 = vmatprep.subr.bf16.mxu0 %v8452_v15  ;;  %v8499_v14 = vcombine.low %v3529_v2, %v3533_v3  ;;  %v8501_v15 = vcombine.low %v3530_v4, %v3534_v5  ;;  %v8510_v17 = vcombine.high %v3538_v12, %v3542_v13  ;;  %v3585_v3 = vld [vmem:[#allocation8 + $0xa40] sm:$0xff]  ;;  %v3586_v5 = vld [vmem:[#allocation8 + $0xa48] sm:$0xff] }
 0x279   :  { %6610 = vmatprep.subr.bf16.mxu1 %v8454_v16  ;;  %v8508_v16 = vcombine.high %v3537_v10, %v3541_v11  ;;  %v3589_v4 = vld [vmem:[#allocation8 + $0xa60] sm:$0xff] }
 0x27b   :  { %6439 = vmatpush1.bf16.msra.mxu0 %v8451_v22  ;;  %v3550_v22 = vld [vmem:[#allocation8 + $0x928] sm:$0xff] }
 0x27c   :  { %6611 = vmatpush1.bf16.msra.mxu1 %v8453_v23  ;;  %6440 = vmatprep.subr.bf16.mxu0 %v8460_v24  ;;  %v8507_v23 = vcombine.low %v3537_v10, %v3541_v11  ;;  %v8509_v24 = vcombine.low %v3538_v12, %v3542_v13  ;;  %v8518_v26 = vcombine.high %v3546_v21, %v3550_v22  ;;  %v3593_v11 = vld [vmem:[#allocation8 + $0xa80] sm:$0xff]  ;;  %v3594_v13 = vld [vmem:[#allocation8 + $0xa88] sm:$0xff] }
 0x27d   :  { %6612 = vmatprep.subr.bf16.mxu1 %v8462_v25  ;;  %v8516_v25 = vcombine.high %v3545_v18, %v3549_v19  ;;  %v3597_v12 = vld [vmem:[#allocation8 + $0xaa0] sm:$0xff] }
 0x27f   :  { %6441 = vmatpush1.bf16.msra.mxu0 %v8459_v30  ;;  %v3558_v30 = vld [vmem:[#allocation8 + $0x968] sm:$0xff] }
 0x280   :  { %6613 = vmatpush1.bf16.msra.mxu1 %v8461_v31  ;;  %6442 = vmatprep.subr.bf16.mxu0 %v8468_v32  ;;  %v8515_v31 = vcombine.low %v3545_v18, %v3549_v19  ;;  %v8517_v32 = vcombine.low %v3546_v21, %v3550_v22  ;;  %v8526_v34 = vcombine.high %v3554_v29, %v3558_v30  ;;  %v3601_v19 = vld [vmem:[#allocation8 + $0xac0] sm:$0xff]  ;;  %v3602_v22 = vld [vmem:[#allocation8 + $0xac8] sm:$0xff] }
 0x281   :  { %6614 = vmatprep.subr.bf16.mxu1 %v8470_v33  ;;  %v8524_v33 = vcombine.high %v3553_v27, %v3557_v28  ;;  %v3605_v21 = vld [vmem:[#allocation8 + $0xae0] sm:$0xff] }
 0x283   :  { %6443 = vmatpush1.bf16.msra.mxu0 %v8467_v38  ;;  %v3566_v38 = vld [vmem:[#allocation8 + $0x9a8] sm:$0xff] }
 0x284   :  { %6615 = vmatpush1.bf16.msra.mxu1 %v8469_v39  ;;  %6444 = vmatprep.subr.bf16.mxu0 %v8476_v40  ;;  %v8523_v39 = vcombine.low %v3553_v27, %v3557_v28  ;;  %v8525_v40 = vcombine.low %v3554_v29, %v3558_v30  ;;  %v8534_v42 = vcombine.high %v3562_v37, %v3566_v38  ;;  %v3609_v28 = vld [vmem:[#allocation8 + $0xb00] sm:$0xff]  ;;  %v3610_v30 = vld [vmem:[#allocation8 + $0xb08] sm:$0xff] }
 0x285   :  { %6616 = vmatprep.subr.bf16.mxu1 %v8478_v41  ;;  %v8532_v41 = vcombine.high %v3561_v35, %v3565_v36  ;;  %v3613_v29 = vld [vmem:[#allocation8 + $0xb20] sm:$0xff] }
 0x287   :  { %6445 = vmatpush1.bf16.msra.mxu0 %v8475_v46  ;;  %v3574_v46 = vld [vmem:[#allocation8 + $0x9e8] sm:$0xff] }
 0x288   :  { %6617 = vmatpush1.bf16.msra.mxu1 %v8477_v48  ;;  %6457 = vmatprep.subr.bf16.mxu0 %v8484_v49  ;;  %v8531_v48 = vcombine.low %v3561_v35, %v3565_v36  ;;  %v8533_v49 = vcombine.low %v3562_v37, %v3566_v38  ;;  %v8542_v52 = vcombine.high %v3570_v45, %v3574_v46  ;;  %v3617_v36 = vld [vmem:[#allocation8 + $0xb40] sm:$0xff]  ;;  %v3618_v38 = vld [vmem:[#allocation8 + $0xb48] sm:$0xff] }
 0x289   :  { %6629 = vmatprep.subr.bf16.mxu1 %v8486_v50  ;;  %v8540_v50 = vcombine.high %v3569_v43, %v3573_v44  ;;  %v3621_v37 = vld [vmem:[#allocation8 + $0xb60] sm:$0xff] }
 0x28a   :  { %6447 = vmatmul.mubr.bf16.vlgmr.msra.gmra.mrb[8].mxu0 %v9440_v54 }
 0x28b   :  { %6619 = vmatmul.mubr.bf16.vlgmr.msra.gmra.mrb[8].mxu1 %v9440_v54  ;;  %6458 = vmatpush1.bf16.msra.mxu0 %v8483_v58  ;;  %v3582_v58 = vld [vmem:[#allocation8 + $0xa28] sm:$0xff] }
 0x28c   :  { %6630 = vmatpush1.bf16.msra.mxu1 %v8485_v61  ;;  %6459 = vmatprep.subr.bf16.mxu0 %v8492_v0  ;;  %v8539_v61 = vcombine.low %v3569_v43, %v3573_v44  ;;  %v8541_v0 = vcombine.low %v3570_v45, %v3574_v46  ;;  %v8550_v2 = vcombine.high %v3578_v57, %v3582_v58  ;;  %v3625_v44 = vld [vmem:[#allocation8 + $0xb80] sm:$0xff]  ;;  %v3626_v46 = vld [vmem:[#allocation8 + $0xb88] sm:$0xff] }
 0x28d   :  { %6631 = vmatprep.subr.bf16.mxu1 %v8494_v1  ;;  %v8548_v1 = vcombine.high %v3577_v53, %v3581_v20  ;;  %v3629_v45 = vld [vmem:[#allocation8 + $0xba0] sm:$0xff] }
 0x28f   :  { %6460 = vmatpush1.bf16.msra.mxu0 %v8491_v6  ;;  %v3590_v6 = vld [vmem:[#allocation8 + $0xa68] sm:$0xff] }
 0x290   :  { %6632 = vmatpush1.bf16.msra.mxu1 %v8493_v7  ;;  %6461 = vmatprep.subr.bf16.mxu0 %v8500_v8  ;;  %v8547_v7 = vcombine.low %v3577_v53, %v3581_v20  ;;  %v8549_v8 = vcombine.low %v3578_v57, %v3582_v58  ;;  %v8558_v10 = vcombine.high %v3586_v5, %v3590_v6  ;;  %v3633_v20 = vld [vmem:[#allocation8 + $0xbc0] sm:$0xff]  ;;  %v3634_v58 = vld [vmem:[#allocation8 + $0xbc8] sm:$0xff] }
 0x291   :  { %6633 = vmatprep.subr.bf16.mxu1 %v8502_v9  ;;  %v8556_v9 = vcombine.high %v3585_v3, %v3589_v4  ;;  %v3637_v57 = vld [vmem:[#allocation8 + $0xbe0] sm:$0xff] }
 0x293   :  { %6462 = vmatpush1.bf16.msra.mxu0 %v8499_v14  ;;  %v3598_v14 = vld [vmem:[#allocation8 + $0xaa8] sm:$0xff] }
 0x294   :  { %6634 = vmatpush1.bf16.msra.mxu1 %v8501_v15  ;;  %6463 = vmatprep.subr.bf16.mxu0 %v8508_v16  ;;  %v8555_v15 = vcombine.low %v3585_v3, %v3589_v4  ;;  %v8557_v16 = vcombine.low %v3586_v5, %v3590_v6  ;;  %v8566_v18 = vcombine.high %v3594_v13, %v3598_v14  ;;  %v9454_v4 = vld [vmem:[#allocation8 + $0xc00] sm:$0xff]  ;;  %v9458_v6 = vld [vmem:[#allocation8 + $0xc08] sm:$0xff] }
 0x295   :  { %6635 = vmatprep.subr.bf16.mxu1 %v8510_v17  ;;  %v8564_v17 = vcombine.high %v3593_v11, %v3597_v12  ;;  %v9456_v5 = vld [vmem:[#allocation8 + $0xc20] sm:$0xff] }
 0x297   :  { %6464 = vmatpush1.bf16.msra.mxu0 %v8507_v23  ;;  %v3606_v23 = vld [vmem:[#allocation8 + $0xae8] sm:$0xff] }
 0x298   :  { %6636 = vmatpush1.bf16.msra.mxu1 %v8509_v24  ;;  %6465 = vmatprep.subr.bf16.mxu0 %v8516_v25  ;;  %v8563_v24 = vcombine.low %v3593_v11, %v3597_v12  ;;  %v8565_v25 = vcombine.low %v3594_v13, %v3598_v14  ;;  %v8574_v27 = vcombine.high %v3602_v22, %v3606_v23  ;;  %v524_v12 = vsub.s32 4, %v9422_v47 }
 0x299   :  { %6637 = vmatprep.subr.bf16.mxu1 %v8518_v26  ;;  %v8572_v26 = vcombine.high %v3601_v19, %v3605_v21  ;;  %v532_v13 = vsub.s32 6, %v9422_v47  ;;  %v528_v14 = vsub.s32 5, %v9422_v47 }
 0x29b   :  { %6466 = vmatpush1.bf16.msra.mxu0 %v8515_v31  ;;  %v3614_v31 = vld [vmem:[#allocation8 + $0xb28] sm:$0xff] }
 0x29c   :  { %6638 = vmatpush1.bf16.msra.mxu1 %v8517_v32  ;;  %6467 = vmatprep.subr.bf16.mxu0 %v8524_v33  ;;  %v8571_v32 = vcombine.low %v3601_v19, %v3605_v21  ;;  %v8573_v33 = vcombine.low %v3602_v22, %v3606_v23  ;;  %v8582_v35 = vcombine.high %v3610_v30, %v3614_v31 }
 0x29d   :  { %6639 = vmatprep.subr.bf16.mxu1 %v8526_v34  ;;  %v8580_v34 = vcombine.high %v3609_v28, %v3613_v29 }
 0x29f   :  { %6468 = vmatpush1.bf16.msra.mxu0 %v8523_v39  ;;  %v3622_v39 = vld [vmem:[#allocation8 + $0xb68] sm:$0xff] }
 0x2a0   :  { %6640 = vmatpush1.bf16.msra.mxu1 %v8525_v40  ;;  %6469 = vmatprep.subr.bf16.mxu0 %v8532_v41  ;;  %v8579_v40 = vcombine.low %v3609_v28, %v3613_v29  ;;  %v8581_v41 = vcombine.low %v3610_v30, %v3614_v31  ;;  %v8590_v43 = vcombine.high %v3618_v38, %v3622_v39 }
 0x2a1   :  { %6641 = vmatprep.subr.bf16.mxu1 %v8534_v42  ;;  %v8588_v42 = vcombine.high %v3617_v36, %v3621_v37 }
 0x2a3   :  { %6470 = vmatpush1.bf16.msra.mxu0 %v8531_v48  ;;  %v3630_v48 = vld [vmem:[#allocation8 + $0xba8] sm:$0xff] }
 0x2a4   :  { %6642 = vmatpush1.bf16.msra.mxu1 %v8533_v49  ;;  %6471 = vmatprep.subr.bf16.mxu0 %v8540_v50  ;;  %v8587_v49 = vcombine.low %v3617_v36, %v3621_v37  ;;  %v8589_v50 = vcombine.low %v3618_v38, %v3622_v39  ;;  %v8598_v53 = vcombine.high %v3626_v46, %v3630_v48 }
 0x2a5   :  { %6643 = vmatprep.subr.bf16.mxu1 %v8542_v52  ;;  %v8596_v52 = vcombine.high %v3625_v44, %v3629_v45 }
 0x2a7   :  { %6472 = vmatpush1.bf16.msra.mxu0 %v8539_v61  ;;  %v3638_v61 = vld [vmem:[#allocation8 + $0xbe8] sm:$0xff] }
 0x2a8   :  { %6644 = vmatpush1.bf16.msra.mxu1 %v8541_v0  ;;  %6473 = vmatprep.subr.bf16.mxu0 %v8548_v1  ;;  %v8595_v0 = vcombine.low %v3625_v44, %v3629_v45  ;;  %v8597_v1 = vcombine.low %v3626_v46, %v3630_v48  ;;  %v8606_v3 = vcombine.high %v3634_v58, %v3638_v61  ;;  %v3649_v44 = vld [vmem:[#allocation8 + $0xc40] sm:$0xff] }
 0x2a9   :  { %6645 = vmatprep.subr.bf16.mxu1 %v8550_v2  ;;  %v8604_v2 = vcombine.high %v3633_v20, %v3637_v57 }
 0x2ab   :  { %6474 = vmatpush1.bf16.msra.mxu0 %v8547_v7  ;;  %v9460_v7 = vld [vmem:[#allocation8 + $0xc28] sm:$0xff] }
 0x2ac   :  { %6646 = vmatpush1.bf16.msra.mxu1 %v8549_v8  ;;  %6475 = vmatprep.subr.bf16.mxu0 %v8556_v9  ;;  %v8603_v8 = vcombine.low %v3633_v20, %v3637_v57  ;;  %v8605_v9 = vcombine.low %v3634_v58, %v3638_v61  ;;  %v8614_v11 = vcombine.high %v9458_v6, %v9460_v7 }
 0x2ad   :  { %6647 = vmatprep.subr.bf16.mxu1 %v8558_v10  ;;  %v8612_v10 = vcombine.high %v9454_v4, %v9456_v5  ;;  %v8611_v57 = vcombine.low %v9454_v4, %v9456_v5  ;;  %v8613_v58 = vcombine.low %v9458_v6, %v9460_v7 }
 0x2af   :  { %6476 = vmatpush1.bf16.msra.mxu0 %v8555_v15  ;;  %v536_v15 = vsub.s32 7, %v9422_v47 }
 0x2b0   :  { %6648 = vmatpush1.bf16.msra.mxu1 %v8557_v16  ;;  %6477 = vmatprep.subr.bf16.mxu0 %v8564_v17  ;;  %v9124_v16 = vld [vmem:[#allocation7] sm:$0xff] }
 0x2b1   :  { %6649 = vmatprep.subr.bf16.mxu1 %v8566_v18  ;;  %v525_v17 = vrot.slane %v9124_v16, %v524_v12  ;;  %v533_v18 = vrot.slane %v9124_v16, %v532_v13  ;;  %v529_v19 = vrot.slane %v9124_v16, %v528_v14  ;;  %v537_v21 = vrot.slane %v9124_v16, %v536_v15  ;;  %v3666_v16 = vld [vmem:[#allocation8 + $0xcc8] sm:$0xff] }
 0x2b3   :  { %6478 = vmatpush1.bf16.msra.mxu0 %v8563_v24 }
 0x2b4   :  { %6650 = vmatpush1.bf16.msra.mxu1 %v8565_v25  ;;  %6479 = vmatprep.subr.bf16.mxu0 %v8572_v26 }
 0x2b5   :  { %6651 = vmatprep.subr.bf16.mxu1 %v8574_v27 }
 0x2b7   :  { %6480 = vmatpush1.bf16.msra.mxu0 %v8571_v32 }
 0x2b8   :  { %6652 = vmatpush1.bf16.msra.mxu1 %v8573_v33  ;;  %6481 = vmatprep.subr.bf16.mxu0 %v8580_v34 }
 0x2b9   :  { %6653 = vmatprep.subr.bf16.mxu1 %v8582_v35 }
 0x2bb   :  { %6482 = vmatpush1.bf16.msra.mxu0 %v8579_v40 }
 0x2bc   :  { %6654 = vmatpush1.bf16.msra.mxu1 %v8581_v41  ;;  %6483 = vmatprep.subr.bf16.mxu0 %v8588_v42 }
 0x2bd   :  { %6655 = vmatprep.subr.bf16.mxu1 %v8590_v43 }
 0x2bf   :  { %6484 = vmatpush1.bf16.msra.mxu0 %v8587_v49  ;;  %v3653_v49 = vld [vmem:[#allocation8 + $0xc60] sm:$0xff] }
 0x2c0   :  { %6656 = vmatpush1.bf16.msra.mxu1 %v8589_v50  ;;  %6485 = vmatprep.subr.bf16.mxu0 %v8596_v52  ;;  %v3650_v50 = vld [vmem:[#allocation8 + $0xc48] sm:$0xff]  ;;  %v8619_v4 = vcombine.low %v3649_v44, %v3653_v49 }
 0x2c1   :  { %6657 = vmatprep.subr.bf16.mxu1 %v8598_v53  ;;  %v3654_v52 = vld [vmem:[#allocation8 + $0xc68] sm:$0xff] }
 0x2c2   :  { %v8621_v5 = vcombine.low %v3650_v50, %v3654_v52 }
 0x2c3   :  { %6486 = vmatpush1.bf16.msra.mxu0 %v8595_v0  ;;  %v3657_v0 = vld [vmem:[#allocation8 + $0xc80] sm:$0xff] }
 0x2c4   :  { %6658 = vmatpush1.bf16.msra.mxu1 %v8597_v1  ;;  %6487 = vmatprep.subr.bf16.mxu0 %v8604_v2  ;;  %v8620_v1 = vcombine.high %v3649_v44, %v3653_v49  ;;  %v8622_v2 = vcombine.high %v3650_v50, %v3654_v52  ;;  %v3697_v49 = vld [vmem:[#allocation8 + $0xdc0] sm:$0xff]  ;;  %v3698_v52 = vld [vmem:[#allocation8 + $0xdc8] sm:$0xff] }
 0x2c5   :  { %6659 = vmatprep.subr.bf16.mxu1 %v8606_v3  ;;  %v3661_v3 = vld [vmem:[#allocation8 + $0xca0] sm:$0xff] }
 0x2c6   :  { %v8628_v6 = vcombine.high %v3657_v0, %v3661_v3  ;;  %v3701_v50 = vld [vmem:[#allocation8 + $0xde0] sm:$0xff] }
 0x2c7   :  { %6488 = vmatpush1.bf16.msra.mxu0 %v8603_v8  ;;  %v3658_v8 = vld [vmem:[#allocation8 + $0xc88] sm:$0xff] }
 0x2c8   :  { %6660 = vmatpush1.bf16.msra.mxu1 %v8605_v9  ;;  %6500 = vmatprep.subr.bf16.mxu0 %v8612_v10  ;;  %v3662_v9 = vld [vmem:[#allocation8 + $0xca8] sm:$0xff]  ;;  %v3665_v10 = vld [vmem:[#allocation8 + $0xcc0] sm:$0xff] }
 0x2c9   :  { %6672 = vmatprep.subr.bf16.mxu1 %v8614_v11  ;;  %v8630_v7 = vcombine.high %v3658_v8, %v3662_v9  ;;  %v3669_v11 = vld [vmem:[#allocation8 + $0xce0] sm:$0xff] }
 0x2dd   :  { %v3052_v22 = vpop.f32.mrb[4].mxu0  ;;  %v3224_v24 = vpop.f32.mrb[4].mxu1 }
 0x2de   :  { %v8900_v23 = vadd.f32 %v3052_v22, %v525_v17  ;;  %v3054_v25 = vpop.f32.mrb[5].mxu0  ;;  %v8904_v26 = vadd.f32 %v3224_v24, %v533_v18  ;;  %v3226_v28 = vpop.f32.mrb[5].mxu1  ;;  %v3677_v24 = vld [vmem:[#allocation8 + $0xd20] sm:$0xff] }
 0x2df   :  { %v8901_v27 = vadd.f32 %v3054_v25, %v529_v19  ;;  %v3056_v29 = vpop.f32.mrb[6].mxu0  ;;  %v8905_v30 = vadd.f32 %v3226_v28, %v537_v21  ;;  %v3228_v32 = vpop.f32.mrb[6].mxu1  ;;  %v3674_v25 = vld [vmem:[#allocation8 + $0xd08] sm:$0xff] }
 0x2e0   :  { %v8902_v31 = vadd.f32 %v3056_v29, %v525_v17  ;;  %v3058_v33 = vpop.f32.mrb[7].mxu0  ;;  %v8906_v34 = vadd.f32 %v3228_v32, %v533_v18  ;;  %v3230_v36 = vpop.f32.mrb[7].mxu1  ;;  %v3237_v37 = vmax.f32 %v8900_v23, 0.0  ;;  %v3239_v40 = vmax.f32 %v8904_v26, 0.0  ;;  %v3670_v17 = vld [vmem:[#allocation8 + $0xce8] sm:$0xff]  ;;  %v3673_v23 = vld [vmem:[#allocation8 + $0xd00] sm:$0xff] }
 0x2e1   :  { %v8903_v35 = vadd.f32 %v3058_v33, %v529_v19  ;;  %v8907_v39 = vadd.f32 %v3230_v36, %v537_v21  ;;  %v3238_v41 = vmax.f32 %v8901_v27, 0.0  ;;  %v3240_v45 = vmax.f32 %v8905_v30, 0.0  ;;  %v3678_v26 = vld [vmem:[#allocation8 + $0xd28] sm:$0xff]  ;;  %v3685_v32 = vld [vmem:[#allocation8 + $0xd60] sm:$0xff] }
 0x2e2   :  { %v3245_v38 = vmax.f32 %v8902_v31, 0.0  ;;  %v3247_v42 = vmax.f32 %v8906_v34, 0.0  ;;  %v8627_v18 = vcombine.low %v3657_v0, %v3661_v3  ;;  %v8629_v19 = vcombine.low %v3658_v8, %v3662_v9  ;;  %v3681_v31 = vld [vmem:[#allocation8 + $0xd40] sm:$0xff]  ;;  %v3682_v33 = vld [vmem:[#allocation8 + $0xd48] sm:$0xff] }
 0x2e3   :  { %v3246_v43 = vmax.f32 %v8903_v35, 0.0  ;;  %v3248_v48 = vmax.f32 %v8907_v39, 0.0  ;;  %v8636_v21 = vcombine.high %v3665_v10, %v3669_v11  ;;  %v8638_v22 = vcombine.high %v3666_v16, %v3670_v17  ;;  %v3686_v34 = vld [vmem:[#allocation8 + $0xd68] sm:$0xff]  ;;  %v3689_v39 = vld [vmem:[#allocation8 + $0xd80] sm:$0xff] }
 0x2e4   :  { %v9478_v46 = vpack.c.bf16 %v3245_v38, %v3237_v37  ;;  %v9480_v53 = vpack.c.bf16 %v3247_v42, %v3239_v40  ;;  %v8635_v27 = vcombine.low %v3665_v10, %v3669_v11  ;;  %v8637_v28 = vcombine.low %v3666_v16, %v3670_v17  ;;  %v3693_v40 = vld [vmem:[#allocation8 + $0xda0] sm:$0xff]  ;;  %v3694_v42 = vld [vmem:[#allocation8 + $0xda8] sm:$0xff] }
 0x2e5   :  { %v9482_v20 = vpack.c.bf16 %v3246_v43, %v3238_v41  ;;  %v9488_v61 = vpack.c.bf16 %v3248_v48, %v3240_v45  ;;  %v8644_v29 = vcombine.high %v3673_v23, %v3677_v24  ;;  %v8646_v30 = vcombine.high %v3674_v25, %v3678_v26  ;;  %v3690_v41 = vld [vmem:[#allocation8 + $0xd88] sm:$0xff]  ;;  %v3705_v3 = vld [vmem:[#allocation8 + $0xe00] sm:$0xff] }
 0x2e6   :  { %v8643_v35 = vcombine.low %v3673_v23, %v3677_v24  ;;  %v8645_v36 = vcombine.low %v3674_v25, %v3678_v26  ;;  %v8652_v37 = vcombine.high %v3681_v31, %v3685_v32  ;;  %v8654_v38 = vcombine.high %v3682_v33, %v3686_v34  ;;  %v3709_v8 = vld [vmem:[#allocation8 + $0xe20] sm:$0xff]  ;;  %v3706_v9 = vld [vmem:[#allocation8 + $0xe08] sm:$0xff] }
 0x2e7   :  { %6489 = vmatprep.mubr.bf16.mxu0 %v9482_v20  ;;  %6661 = vmatprep.mubr.bf16.mxu1 %v9482_v20  ;;  %v8651_v43 = vcombine.low %v3681_v31, %v3685_v32  ;;  %v8653_v44 = vcombine.low %v3682_v33, %v3686_v34  ;;  %v8660_v45 = vcombine.high %v3689_v39, %v3693_v40  ;;  %v3713_v11 = vld [vmem:[#allocation8 + $0xe40] sm:$0xff]  ;;  %v3714_v17 = vld [vmem:[#allocation8 + $0xe48] sm:$0xff] }
 0x2e8   :  { %6490 = vmatmul.mubr.bf16.vlgmr.msra.gmra.mrb[8].mxu0 %v9478_v46  ;;  %6662 = vmatmul.mubr.bf16.vlgmr.msra.gmra.mrb[8].mxu1 %v9478_v46  ;;  %v8662_v48 = vcombine.high %v3690_v41, %v3694_v42  ;;  %v8661_v0 = vcombine.low %v3690_v41, %v3694_v42  ;;  %v3717_v16 = vld [vmem:[#allocation8 + $0xe60] sm:$0xff]  ;;  %v3722_v26 = vld [vmem:[#allocation8 + $0xe88] sm:$0xff] }
 0x2e9   :  { %6501 = vmatpush1.bf16.msra.mxu0 %v8611_v57  ;;  %6673 = vmatpush1.bf16.msra.mxu1 %v8613_v58  ;;  %v3702_v57 = vld [vmem:[#allocation8 + $0xde8] sm:$0xff]  ;;  %v8659_v58 = vcombine.low %v3689_v39, %v3693_v40  ;;  %v3721_v24 = vld [vmem:[#allocation8 + $0xe80] sm:$0xff] }
 0x2ea   :  { %6532 = vmatprep.mubr.bf16.mxu0 %v9488_v61  ;;  %6704 = vmatprep.mubr.bf16.mxu1 %v9488_v61  ;;  %v3725_v25 = vld [vmem:[#allocation8 + $0xea0] sm:$0xff]  ;;  %v3730_v34 = vld [vmem:[#allocation8 + $0xec8] sm:$0xff] }
 0x2eb   :  { %6502 = vmatprep.subr.bf16.mxu0 %v8620_v1  ;;  %6674 = vmatprep.subr.bf16.mxu1 %v8622_v2  ;;  %v8668_v1 = vcombine.high %v3697_v49, %v3701_v50  ;;  %v8670_v2 = vcombine.high %v3698_v52, %v3702_v57  ;;  %v3729_v32 = vld [vmem:[#allocation8 + $0xec0] sm:$0xff]  ;;  %v3738_v42 = vld [vmem:[#allocation8 + $0xf08] sm:$0xff] }
 0x2ec   :  { %v3733_v33 = vld [vmem:[#allocation8 + $0xee0] sm:$0xff] }
 0x2ed   :  { %6503 = vmatpush1.bf16.msra.mxu0 %v8619_v4  ;;  %6675 = vmatpush1.bf16.msra.mxu1 %v8621_v5  ;;  %v3710_v4 = vld [vmem:[#allocation8 + $0xe28] sm:$0xff]  ;;  %v8667_v5 = vcombine.low %v3697_v49, %v3701_v50  ;;  %v3737_v40 = vld [vmem:[#allocation8 + $0xf00] sm:$0xff] }
 0x2ee   :  { %6504 = vmatprep.subr.bf16.mxu0 %v8628_v6  ;;  %6676 = vmatprep.subr.bf16.mxu1 %v8630_v7  ;;  %v8669_v6 = vcombine.low %v3698_v52, %v3702_v57  ;;  %v8676_v7 = vcombine.high %v3705_v3, %v3709_v8  ;;  %v8678_v10 = vcombine.high %v3706_v9, %v3710_v4  ;;  %v3741_v41 = vld [vmem:[#allocation8 + $0xf20] sm:$0xff]  ;;  %v3746_v57 = vld [vmem:[#allocation8 + $0xf48] sm:$0xff] }
 0x2ef   :  { %v3745_v50 = vld [vmem:[#allocation8 + $0xf40] sm:$0xff] }
 0x2f0   :  { %v3749_v52 = vld [vmem:[#allocation8 + $0xf60] sm:$0xff] }
 0x2f1   :  { %6505 = vmatpush1.bf16.msra.mxu0 %v8627_v18  ;;  %6677 = vmatpush1.bf16.msra.mxu1 %v8629_v19  ;;  %v3718_v18 = vld [vmem:[#allocation8 + $0xe68] sm:$0xff]  ;;  %v8675_v19 = vcombine.low %v3705_v3, %v3709_v8  ;;  %v3753_v8 = vld [vmem:[#allocation8 + $0xf80] sm:$0xff] }
 0x2f2   :  { %6506 = vmatprep.subr.bf16.mxu0 %v8636_v21  ;;  %6678 = vmatprep.subr.bf16.mxu1 %v8638_v22  ;;  %v8677_v21 = vcombine.low %v3706_v9, %v3710_v4  ;;  %v8684_v22 = vcombine.high %v3713_v11, %v3717_v16  ;;  %v8686_v23 = vcombine.high %v3714_v17, %v3718_v18  ;;  %v3757_v9 = vld [vmem:[#allocation8 + $0xfa0] sm:$0xff]  ;;  %v3754_v4 = vld [vmem:[#allocation8 + $0xf88] sm:$0xff] }
 0x2f5   :  { %6507 = vmatpush1.bf16.msra.mxu0 %v8635_v27  ;;  %6679 = vmatpush1.bf16.msra.mxu1 %v8637_v28  ;;  %v3726_v27 = vld [vmem:[#allocation8 + $0xea8] sm:$0xff]  ;;  %v8683_v28 = vcombine.low %v3713_v11, %v3717_v16  ;;  %v3761_v16 = vld [vmem:[#allocation8 + $0xfc0] sm:$0xff] }
 0x2f6   :  { %6508 = vmatprep.subr.bf16.mxu0 %v8644_v29  ;;  %6680 = vmatprep.subr.bf16.mxu1 %v8646_v30  ;;  %v8685_v29 = vcombine.low %v3714_v17, %v3718_v18  ;;  %v8692_v30 = vcombine.high %v3721_v24, %v3725_v25  ;;  %v8694_v31 = vcombine.high %v3722_v26, %v3726_v27  ;;  %v3765_v17 = vld [vmem:[#allocation8 + $0xfe0] sm:$0xff]  ;;  %v3762_v18 = vld [vmem:[#allocation8 + $0xfc8] sm:$0xff] }
 0x2f9   :  { %6509 = vmatpush1.bf16.msra.mxu0 %v8643_v35  ;;  %6681 = vmatpush1.bf16.msra.mxu1 %v8645_v36  ;;  %v3734_v35 = vld [vmem:[#allocation8 + $0xee8] sm:$0xff]  ;;  %v8691_v36 = vcombine.low %v3721_v24, %v3725_v25  ;;  %v3259_v25 = vld [vmem:[#allocation8 + $0x10] sm:$0xff] }
 0x2fa   :  { %6510 = vmatprep.subr.bf16.mxu0 %v8652_v37  ;;  %6682 = vmatprep.subr.bf16.mxu1 %v8654_v38  ;;  %v8693_v37 = vcombine.low %v3722_v26, %v3726_v27  ;;  %v8700_v38 = vcombine.high %v3729_v32, %v3733_v33  ;;  %v8702_v39 = vcombine.high %v3730_v34, %v3734_v35  ;;  %v3263_v26 = vld [vmem:[#allocation8 + $0x30] sm:$0xff]  ;;  %v3260_v27 = vld [vmem:[#allocation8 + $0x18] sm:$0xff] }
 0x2fd   :  { %6511 = vmatpush1.bf16.msra.mxu0 %v8651_v43  ;;  %6683 = vmatpush1.bf16.msra.mxu1 %v8653_v44  ;;  %v3742_v43 = vld [vmem:[#allocation8 + $0xf28] sm:$0xff]  ;;  %v8699_v44 = vcombine.low %v3729_v32, %v3733_v33  ;;  %v3267_v33 = vld [vmem:[#allocation8 + $0x50] sm:$0xff] }
 0x2fe   :  { %6512 = vmatprep.subr.bf16.mxu0 %v8660_v45  ;;  %6684 = vmatprep.subr.bf16.mxu1 %v8662_v48  ;;  %v8701_v45 = vcombine.low %v3730_v34, %v3734_v35  ;;  %v8708_v48 = vcombine.high %v3737_v40, %v3741_v41  ;;  %v8710_v49 = vcombine.high %v3738_v42, %v3742_v43  ;;  %v3271_v34 = vld [vmem:[#allocation8 + $0x70] sm:$0xff]  ;;  %v3268_v35 = vld [vmem:[#allocation8 + $0x58] sm:$0xff] }
 0x301   :  { %6513 = vmatpush1.bf16.msra.mxu0 %v8659_v58  ;;  %6685 = vmatpush1.bf16.msra.mxu1 %v8661_v0  ;;  %v3750_v58 = vld [vmem:[#allocation8 + $0xf68] sm:$0xff]  ;;  %v8707_v0 = vcombine.low %v3737_v40, %v3741_v41  ;;  %v3275_v41 = vld [vmem:[#allocation8 + $0x90] sm:$0xff] }
 0x302   :  { %6514 = vmatprep.subr.bf16.mxu0 %v8668_v1  ;;  %6686 = vmatprep.subr.bf16.mxu1 %v8670_v2  ;;  %v8709_v1 = vcombine.low %v3738_v42, %v3742_v43  ;;  %v8716_v2 = vcombine.high %v3745_v50, %v3749_v52  ;;  %v8718_v3 = vcombine.high %v3746_v57, %v3750_v58  ;;  %v3279_v42 = vld [vmem:[#allocation8 + $0xb0] sm:$0xff]  ;;  %v3276_v43 = vld [vmem:[#allocation8 + $0x98] sm:$0xff] }
 0x305   :  { %6515 = vmatpush1.bf16.msra.mxu0 %v8667_v5  ;;  %6687 = vmatpush1.bf16.msra.mxu1 %v8669_v6  ;;  %v3758_v5 = vld [vmem:[#allocation8 + $0xfa8] sm:$0xff]  ;;  %v8715_v6 = vcombine.low %v3745_v50, %v3749_v52  ;;  %v3283_v52 = vld [vmem:[#allocation8 + $0xd0] sm:$0xff] }
 0x306   :  { %6516 = vmatprep.subr.bf16.mxu0 %v8676_v7  ;;  %6688 = vmatprep.subr.bf16.mxu1 %v8678_v10  ;;  %v8717_v7 = vcombine.low %v3746_v57, %v3750_v58  ;;  %v8724_v10 = vcombine.high %v3753_v8, %v3757_v9  ;;  %v8726_v11 = vcombine.high %v3754_v4, %v3758_v5  ;;  %v3287_v57 = vld [vmem:[#allocation8 + $0xf0] sm:$0xff]  ;;  %v3284_v58 = vld [vmem:[#allocation8 + $0xd8] sm:$0xff] }
 0x309   :  { %6517 = vmatpush1.bf16.msra.mxu0 %v8675_v19  ;;  %6689 = vmatpush1.bf16.msra.mxu1 %v8677_v21  ;;  %v3766_v19 = vld [vmem:[#allocation8 + $0xfe8] sm:$0xff]  ;;  %v8723_v21 = vcombine.low %v3753_v8, %v3757_v9  ;;  %v3291_v9 = vld [vmem:[#allocation8 + $0x110] sm:$0xff] }
 0x30a   :  { %6518 = vmatprep.subr.bf16.mxu0 %v8684_v22  ;;  %6690 = vmatprep.subr.bf16.mxu1 %v8686_v23  ;;  %v8725_v22 = vcombine.low %v3754_v4, %v3758_v5  ;;  %v8732_v23 = vcombine.high %v3761_v16, %v3765_v17  ;;  %v8734_v24 = vcombine.high %v3762_v18, %v3766_v19  ;;  %v3295_v4 = vld [vmem:[#allocation8 + $0x130] sm:$0xff]  ;;  %v3296_v5 = vld [vmem:[#allocation8 + $0x138] sm:$0xff] }
 0x30d   :  { %6519 = vmatpush1.bf16.msra.mxu0 %v8683_v28  ;;  %6691 = vmatpush1.bf16.msra.mxu1 %v8685_v29  ;;  %v3264_v28 = vld [vmem:[#allocation8 + $0x38] sm:$0xff]  ;;  %v8731_v29 = vcombine.low %v3761_v16, %v3765_v17  ;;  %v3299_v16 = vld [vmem:[#allocation8 + $0x150] sm:$0xff] }
 0x30e   :  { %6520 = vmatprep.subr.bf16.mxu0 %v8692_v30  ;;  %6692 = vmatprep.subr.bf16.mxu1 %v8694_v31  ;;  %v8733_v30 = vcombine.low %v3762_v18, %v3766_v19  ;;  %v8232_v31 = vcombine.high %v3259_v25, %v3263_v26  ;;  %v8234_v32 = vcombine.high %v3260_v27, %v3264_v28  ;;  %v3303_v17 = vld [vmem:[#allocation8 + $0x170] sm:$0xff]  ;;  %v3300_v18 = vld [vmem:[#allocation8 + $0x158] sm:$0xff] }
 0x30f   :  { %v3304_v19 = vld [vmem:[#allocation8 + $0x178] sm:$0xff] }
 0x311   :  { %6521 = vmatpush1.bf16.msra.mxu0 %v8691_v36  ;;  %6693 = vmatpush1.bf16.msra.mxu1 %v8693_v37  ;;  %v3272_v36 = vld [vmem:[#allocation8 + $0x78] sm:$0xff]  ;;  %v8231_v37 = vcombine.low %v3259_v25, %v3263_v26  ;;  %v3307_v25 = vld [vmem:[#allocation8 + $0x190] sm:$0xff] }
 0x312   :  { %6522 = vmatprep.subr.bf16.mxu0 %v8700_v38  ;;  %6694 = vmatprep.subr.bf16.mxu1 %v8702_v39  ;;  %v8233_v38 = vcombine.low %v3260_v27, %v3264_v28  ;;  %v8240_v39 = vcombine.high %v3267_v33, %v3271_v34  ;;  %v8242_v40 = vcombine.high %v3268_v35, %v3272_v36  ;;  %v3311_v26 = vld [vmem:[#allocation8 + $0x1b0] sm:$0xff]  ;;  %v3308_v27 = vld [vmem:[#allocation8 + $0x198] sm:$0xff] }
 0x313   :  { %v3312_v28 = vld [vmem:[#allocation8 + $0x1b8] sm:$0xff] }
 0x315   :  { %6523 = vmatpush1.bf16.msra.mxu0 %v8699_v44  ;;  %6695 = vmatpush1.bf16.msra.mxu1 %v8701_v45  ;;  %v3280_v44 = vld [vmem:[#allocation8 + $0xb8] sm:$0xff]  ;;  %v8239_v45 = vcombine.low %v3267_v33, %v3271_v34  ;;  %v3315_v33 = vld [vmem:[#allocation8 + $0x1d0] sm:$0xff] }
 0x316   :  { %6524 = vmatprep.subr.bf16.mxu0 %v8708_v48  ;;  %6696 = vmatprep.subr.bf16.mxu1 %v8710_v49  ;;  %v8241_v48 = vcombine.low %v3268_v35, %v3272_v36  ;;  %v8248_v49 = vcombine.high %v3275_v41, %v3279_v42  ;;  %v8250_v50 = vcombine.high %v3276_v43, %v3280_v44  ;;  %v3319_v34 = vld [vmem:[#allocation8 + $0x1f0] sm:$0xff]  ;;  %v3316_v35 = vld [vmem:[#allocation8 + $0x1d8] sm:$0xff] }
 0x317   :  { %v3320_v36 = vld [vmem:[#allocation8 + $0x1f8] sm:$0xff] }
 0x319   :  { %6525 = vmatpush1.bf16.msra.mxu0 %v8707_v0  ;;  %6697 = vmatpush1.bf16.msra.mxu1 %v8709_v1  ;;  %v3288_v0 = vld [vmem:[#allocation8 + $0xf8] sm:$0xff]  ;;  %v8247_v1 = vcombine.low %v3275_v41, %v3279_v42  ;;  %v3323_v41 = vld [vmem:[#allocation8 + $0x210] sm:$0xff] }
 0x31a   :  { %6526 = vmatprep.subr.bf16.mxu0 %v8716_v2  ;;  %6698 = vmatprep.subr.bf16.mxu1 %v8718_v3  ;;  %v8249_v2 = vcombine.low %v3276_v43, %v3280_v44  ;;  %v8256_v3 = vcombine.high %v3283_v52, %v3287_v57  ;;  %v8258_v8 = vcombine.high %v3284_v58, %v3288_v0  ;;  %v3327_v42 = vld [vmem:[#allocation8 + $0x230] sm:$0xff]  ;;  %v3324_v43 = vld [vmem:[#allocation8 + $0x218] sm:$0xff] }
 0x31b   :  { %v3328_v44 = vld [vmem:[#allocation8 + $0x238] sm:$0xff] }
 0x31d   :  { %6527 = vmatpush1.bf16.msra.mxu0 %v8715_v6  ;;  %6699 = vmatpush1.bf16.msra.mxu1 %v8717_v7  ;;  %v8255_v6 = vcombine.low %v3283_v52, %v3287_v57  ;;  %v8257_v7 = vcombine.low %v3284_v58, %v3288_v0  ;;  %v3331_v52 = vld [vmem:[#allocation8 + $0x250] sm:$0xff]  ;;  %v3332_v58 = vld [vmem:[#allocation8 + $0x258] sm:$0xff] }
 0x31e   :  { %6528 = vmatprep.subr.bf16.mxu0 %v8724_v10  ;;  %6700 = vmatprep.subr.bf16.mxu1 %v8726_v11  ;;  %v8264_v10 = vcombine.high %v3291_v9, %v3295_v4  ;;  %v3335_v57 = vld [vmem:[#allocation8 + $0x270] sm:$0xff]  ;;  %v3336_v0 = vld [vmem:[#allocation8 + $0x278] sm:$0xff] }
 0x321   :  { %6529 = vmatpush1.bf16.msra.mxu0 %v8723_v21  ;;  %6701 = vmatpush1.bf16.msra.mxu1 %v8725_v22  ;;  %v8263_v21 = vcombine.low %v3291_v9, %v3295_v4  ;;  %v3339_v9 = vld [vmem:[#allocation8 + $0x290] sm:$0xff] }
 0x322   :  { %6530 = vmatprep.subr.bf16.mxu0 %v8732_v23  ;;  %6702 = vmatprep.subr.bf16.mxu1 %v8734_v24  ;;  %v8272_v23 = vcombine.high %v3299_v16, %v3303_v17  ;;  %v8274_v24 = vcombine.high %v3300_v18, %v3304_v19  ;;  %v3343_v4 = vld [vmem:[#allocation8 + $0x2b0] sm:$0xff] }
 0x325   :  { %6531 = vmatpush1.bf16.msra.mxu0 %v8731_v29  ;;  %6703 = vmatpush1.bf16.msra.mxu1 %v8733_v30  ;;  %v8271_v29 = vcombine.low %v3299_v16, %v3303_v17  ;;  %v8273_v30 = vcombine.low %v3300_v18, %v3304_v19  ;;  %v3347_v16 = vld [vmem:[#allocation8 + $0x2d0] sm:$0xff]  ;;  %v3348_v18 = vld [vmem:[#allocation8 + $0x2d8] sm:$0xff] }
 0x326   :  { %6715 = vmatprep.subr.bf16.mxu0 %v8232_v31  ;;  %6887 = vmatprep.subr.bf16.mxu1 %v8234_v32  ;;  %v8280_v31 = vcombine.high %v3307_v25, %v3311_v26  ;;  %v8282_v32 = vcombine.high %v3308_v27, %v3312_v28  ;;  %v3351_v17 = vld [vmem:[#allocation8 + $0x2f0] sm:$0xff]  ;;  %v3352_v19 = vld [vmem:[#allocation8 + $0x2f8] sm:$0xff] }
 0x328   :  { %6533 = vmatmul.mubr.bf16.vlgmr.msra.gmra.mrb[8].mxu0 %v9480_v53  ;;  %6705 = vmatmul.mubr.bf16.vlgmr.msra.gmra.mrb[8].mxu1 %v9480_v53 }
 0x329   :  { %6716 = vmatpush1.bf16.msra.mxu0 %v8231_v37  ;;  %6747 = vmatprep.mubr.bf16.mxu0 %v9442_v55  ;;  %v8279_v37 = vcombine.low %v3307_v25, %v3311_v26  ;;  %v3355_v25 = vld [vmem:[#allocation8 + $0x310] sm:$0xff] }
 0x32a   :  { %6888 = vmatpush1.bf16.msra.mxu1 %v8233_v38  ;;  %6919 = vmatprep.mubr.bf16.mxu1 %v9442_v55  ;;  %v3292_v55 = vld [vmem:[#allocation8 + $0x118] sm:$0xff]  ;;  %v8281_v38 = vcombine.low %v3308_v27, %v3312_v28  ;;  %v3359_v26 = vld [vmem:[#allocation8 + $0x330] sm:$0xff] }
 0x32b   :  { %6717 = vmatprep.subr.bf16.mxu0 %v8240_v39  ;;  %6889 = vmatprep.subr.bf16.mxu1 %v8242_v40  ;;  %v8266_v11 = vcombine.high %v3292_v55, %v3296_v5  ;;  %v8265_v22 = vcombine.low %v3292_v55, %v3296_v5  ;;  %v8288_v39 = vcombine.high %v3315_v33, %v3319_v34  ;;  %v3340_v55 = vld [vmem:[#allocation8 + $0x298] sm:$0xff] }
 0x32c   :  { %v8290_v40 = vcombine.high %v3316_v35, %v3320_v36  ;;  %v3344_v5 = vld [vmem:[#allocation8 + $0x2b8] sm:$0xff] }
 0x32d   :  { %6718 = vmatpush1.bf16.msra.mxu0 %v8239_v45  ;;  %v8287_v45 = vcombine.low %v3315_v33, %v3319_v34  ;;  %v3356_v27 = vld [vmem:[#allocation8 + $0x318] sm:$0xff]  ;;  %v3363_v33 = vld [vmem:[#allocation8 + $0x350] sm:$0xff] }
 0x32e   :  { %6890 = vmatpush1.bf16.msra.mxu1 %v8241_v48  ;;  %6719 = vmatprep.subr.bf16.mxu0 %v8248_v49  ;;  %v8289_v48 = vcombine.low %v3316_v35, %v3320_v36  ;;  %v8296_v49 = vcombine.high %v3323_v41, %v3327_v42  ;;  %v3360_v28 = vld [vmem:[#allocation8 + $0x338] sm:$0xff]  ;;  %v3367_v34 = vld [vmem:[#allocation8 + $0x370] sm:$0xff] }
 0x32f   :  { %6891 = vmatprep.subr.bf16.mxu1 %v8250_v50  ;;  %v8298_v50 = vcombine.high %v3324_v43, %v3328_v44  ;;  %v3364_v35 = vld [vmem:[#allocation8 + $0x358] sm:$0xff] }
 0x330   :  { %v3368_v36 = vld [vmem:[#allocation8 + $0x378] sm:$0xff] }
 0x331   :  { %6720 = vmatpush1.bf16.msra.mxu0 %v8247_v1  ;;  %v8295_v1 = vcombine.low %v3323_v41, %v3327_v42  ;;  %v3371_v41 = vld [vmem:[#allocation8 + $0x390] sm:$0xff] }
 0x332   :  { %6892 = vmatpush1.bf16.msra.mxu1 %v8249_v2  ;;  %6721 = vmatprep.subr.bf16.mxu0 %v8256_v3  ;;  %v8297_v2 = vcombine.low %v3324_v43, %v3328_v44  ;;  %v8304_v3 = vcombine.high %v3331_v52, %v3335_v57  ;;  %v3375_v42 = vld [vmem:[#allocation8 + $0x3b0] sm:$0xff]  ;;  %v3372_v43 = vld [vmem:[#allocation8 + $0x398] sm:$0xff] }
 0x333   :  { %6893 = vmatprep.subr.bf16.mxu1 %v8258_v8  ;;  %v8306_v8 = vcombine.high %v3332_v58, %v3336_v0  ;;  %v3376_v44 = vld [vmem:[#allocation8 + $0x3b8] sm:$0xff] }
 0x335   :  { %6722 = vmatpush1.bf16.msra.mxu0 %v8255_v6  ;;  %v8303_v6 = vcombine.low %v3331_v52, %v3335_v57  ;;  %v3379_v52 = vld [vmem:[#allocation8 + $0x3d0] sm:$0xff] }
 0x336   :  { %6894 = vmatpush1.bf16.msra.mxu1 %v8257_v7  ;;  %6723 = vmatprep.subr.bf16.mxu0 %v8264_v10  ;;  %v8305_v7 = vcombine.low %v3332_v58, %v3336_v0  ;;  %v8312_v10 = vcombine.high %v3339_v9, %v3343_v4  ;;  %v3383_v57 = vld [vmem:[#allocation8 + $0x3f0] sm:$0xff]  ;;  %v3380_v58 = vld [vmem:[#allocation8 + $0x3d8] sm:$0xff] }
 0x337   :  { %6895 = vmatprep.subr.bf16.mxu1 %v8266_v11  ;;  %v8314_v11 = vcombine.high %v3340_v55, %v3344_v5  ;;  %v3384_v0 = vld [vmem:[#allocation8 + $0x3f8] sm:$0xff] }
 0x339   :  { %6724 = vmatpush1.bf16.msra.mxu0 %v8263_v21  ;;  %v8311_v21 = vcombine.low %v3339_v9, %v3343_v4  ;;  %v3387_v9 = vld [vmem:[#allocation8 + $0x410] sm:$0xff] }
 0x33a   :  { %6896 = vmatpush1.bf16.msra.mxu1 %v8265_v22  ;;  %6725 = vmatprep.subr.bf16.mxu0 %v8272_v23  ;;  %v8313_v22 = vcombine.low %v3340_v55, %v3344_v5  ;;  %v8320_v23 = vcombine.high %v3347_v16, %v3351_v17  ;;  %v3391_v4 = vld [vmem:[#allocation8 + $0x430] sm:$0xff]  ;;  %v3388_v55 = vld [vmem:[#allocation8 + $0x418] sm:$0xff] }
 0x33b   :  { %6897 = vmatprep.subr.bf16.mxu1 %v8274_v24  ;;  %v8322_v24 = vcombine.high %v3348_v18, %v3352_v19  ;;  %v3392_v5 = vld [vmem:[#allocation8 + $0x438] sm:$0xff] }
 0x33d   :  { %6726 = vmatpush1.bf16.msra.mxu0 %v8271_v29  ;;  %v8319_v29 = vcombine.low %v3347_v16, %v3351_v17  ;;  %v3395_v16 = vld [vmem:[#allocation8 + $0x450] sm:$0xff] }
 0x33e   :  { %6898 = vmatpush1.bf16.msra.mxu1 %v8273_v30  ;;  %6727 = vmatprep.subr.bf16.mxu0 %v8280_v31  ;;  %v8321_v30 = vcombine.low %v3348_v18, %v3352_v19  ;;  %v8328_v31 = vcombine.high %v3355_v25, %v3359_v26  ;;  %v3399_v17 = vld [vmem:[#allocation8 + $0x470] sm:$0xff]  ;;  %v8359_v18 = vcombine.low %v3387_v9, %v3391_v4  ;;  %v3396_v19 = vld [vmem:[#allocation8 + $0x458] sm:$0xff] }
 0x33f   :  { %6899 = vmatprep.subr.bf16.mxu1 %v8282_v32  ;;  %v8330_v32 = vcombine.high %v3356_v27, %v3360_v28 }
 0x341   :  { %6728 = vmatpush1.bf16.msra.mxu0 %v8279_v37  ;;  %v8327_v37 = vcombine.low %v3355_v25, %v3359_v26  ;;  %v3407_v25 = vld [vmem:[#allocation8 + $0x4b0] sm:$0xff] }
 0x342   :  { %6900 = vmatpush1.bf16.msra.mxu1 %v8281_v38  ;;  %6729 = vmatprep.subr.bf16.mxu0 %v8288_v39  ;;  %v8329_v38 = vcombine.low %v3356_v27, %v3360_v28  ;;  %v8336_v39 = vcombine.high %v3363_v33, %v3367_v34  ;;  %v3404_v27 = vld [vmem:[#allocation8 + $0x498] sm:$0xff] }
 0x343   :  { %6901 = vmatprep.subr.bf16.mxu1 %v8290_v40  ;;  %v8338_v40 = vcombine.high %v3364_v35, %v3368_v36  ;;  %v3408_v28 = vld [vmem:[#allocation8 + $0x4b8] sm:$0xff] }
 0x345   :  { %6730 = vmatpush1.bf16.msra.mxu0 %v8287_v45  ;;  %v8335_v45 = vcombine.low %v3363_v33, %v3367_v34  ;;  %v3411_v33 = vld [vmem:[#allocation8 + $0x4d0] sm:$0xff] }
 0x346   :  { %6902 = vmatpush1.bf16.msra.mxu1 %v8289_v48  ;;  %6731 = vmatprep.subr.bf16.mxu0 %v8296_v49  ;;  %v8337_v48 = vcombine.low %v3364_v35, %v3368_v36  ;;  %v8344_v49 = vcombine.high %v3371_v41, %v3375_v42  ;;  %v3415_v34 = vld [vmem:[#allocation8 + $0x4f0] sm:$0xff]  ;;  %v3412_v35 = vld [vmem:[#allocation8 + $0x4d8] sm:$0xff] }
 0x347   :  { %6903 = vmatprep.subr.bf16.mxu1 %v8298_v50  ;;  %v8346_v50 = vcombine.high %v3372_v43, %v3376_v44  ;;  %v3416_v36 = vld [vmem:[#allocation8 + $0x4f8] sm:$0xff] }
 0x349   :  { %6732 = vmatpush1.bf16.msra.mxu0 %v8295_v1  ;;  %v8343_v1 = vcombine.low %v3371_v41, %v3375_v42  ;;  %v3423_v41 = vld [vmem:[#allocation8 + $0x530] sm:$0xff]  ;;  %v3420_v42 = vld [vmem:[#allocation8 + $0x518] sm:$0xff] }
 0x34a   :  { %6904 = vmatpush1.bf16.msra.mxu1 %v8297_v2  ;;  %6733 = vmatprep.subr.bf16.mxu0 %v8304_v3  ;;  %v8345_v2 = vcombine.low %v3372_v43, %v3376_v44  ;;  %v8352_v3 = vcombine.high %v3379_v52, %v3383_v57  ;;  %v3424_v43 = vld [vmem:[#allocation8 + $0x538] sm:$0xff]  ;;  %v8385_v44 = vcombine.low %v3412_v35, %v3416_v36 }
 0x34b   :  { %6905 = vmatprep.subr.bf16.mxu1 %v8306_v8  ;;  %v8354_v8 = vcombine.high %v3380_v58, %v3384_v0 }
 0x34d   :  { %6734 = vmatpush1.bf16.msra.mxu0 %v8303_v6  ;;  %v8351_v6 = vcombine.low %v3379_v52, %v3383_v57  ;;  %v3428_v52 = vld [vmem:[#allocation8 + $0x558] sm:$0xff] }
 0x34e   :  { %6906 = vmatpush1.bf16.msra.mxu1 %v8305_v7  ;;  %6735 = vmatprep.subr.bf16.mxu0 %v8312_v10  ;;  %v8353_v7 = vcombine.low %v3380_v58, %v3384_v0  ;;  %v8360_v10 = vcombine.high %v3387_v9, %v3391_v4  ;;  %v3432_v57 = vld [vmem:[#allocation8 + $0x578] sm:$0xff]  ;;  %v8393_v0 = vcombine.low %v3420_v42, %v3424_v43 }
 0x34f   :  { %6907 = vmatprep.subr.bf16.mxu1 %v8314_v11  ;;  %v8362_v11 = vcombine.high %v3388_v55, %v3392_v5  ;;  %v3436_v9 = vld [vmem:[#allocation8 + $0x598] sm:$0xff] }
 0x350   :  { %v3440_v4 = vld [vmem:[#allocation8 + $0x5b8] sm:$0xff] }
 0x351   :  { %6736 = vmatpush1.bf16.msra.mxu0 %v8311_v21  ;;  %v3400_v21 = vld [vmem:[#allocation8 + $0x478] sm:$0xff] }
 0x352   :  { %6908 = vmatpush1.bf16.msra.mxu1 %v8313_v22  ;;  %6737 = vmatprep.subr.bf16.mxu0 %v8320_v23  ;;  %v8361_v22 = vcombine.low %v3388_v55, %v3392_v5  ;;  %v8368_v23 = vcombine.high %v3395_v16, %v3399_v17  ;;  %v8370_v26 = vcombine.high %v3396_v19, %v3400_v21 }
 0x353   :  { %6909 = vmatprep.subr.bf16.mxu1 %v8322_v24  ;;  %v3403_v24 = vld [vmem:[#allocation8 + $0x490] sm:$0xff]  ;;  %v8401_v5 = vcombine.low %v3428_v52, %v3432_v57 }
 0x355   :  { %6738 = vmatpush1.bf16.msra.mxu0 %v8319_v29  ;;  %v8367_v29 = vcombine.low %v3395_v16, %v3399_v17  ;;  %v3444_v16 = vld [vmem:[#allocation8 + $0x5d8] sm:$0xff] }
 0x356   :  { %6910 = vmatpush1.bf16.msra.mxu1 %v8321_v30  ;;  %6739 = vmatprep.subr.bf16.mxu0 %v8328_v31  ;;  %v8369_v30 = vcombine.low %v3396_v19, %v3400_v21  ;;  %v8376_v31 = vcombine.high %v3403_v24, %v3407_v25  ;;  %v3448_v17 = vld [vmem:[#allocation8 + $0x5f8] sm:$0xff]  ;;  %v8409_v19 = vcombine.low %v3436_v9, %v3440_v4 }
 0x357   :  { %6911 = vmatprep.subr.bf16.mxu1 %v8330_v32  ;;  %v8378_v32 = vcombine.high %v3404_v27, %v3408_v28 }
 0x359   :  { %6740 = vmatpush1.bf16.msra.mxu0 %v8327_v37  ;;  %v8375_v37 = vcombine.low %v3403_v24, %v3407_v25  ;;  %v3455_v24 = vld [vmem:[#allocation8 + $0x630] sm:$0xff]  ;;  %v3452_v25 = vld [vmem:[#allocation8 + $0x618] sm:$0xff] }
 0x35a   :  { %6912 = vmatpush1.bf16.msra.mxu1 %v8329_v38  ;;  %6741 = vmatprep.subr.bf16.mxu0 %v8336_v39  ;;  %v8384_v38 = vcombine.high %v3411_v33, %v3415_v34  ;;  %v8386_v39 = vcombine.high %v3412_v35, %v3416_v36 }
 0x35b   :  { %6913 = vmatprep.subr.bf16.mxu1 %v8338_v40  ;;  %v3419_v40 = vld [vmem:[#allocation8 + $0x510] sm:$0xff] }
 0x35c   :  { %v8391_v58 = vcombine.low %v3419_v40, %v3423_v41 }
 0x35d   :  { %6742 = vmatpush1.bf16.msra.mxu0 %v8335_v45  ;;  %v8392_v45 = vcombine.high %v3419_v40, %v3423_v41  ;;  %v3468_v40 = vld [vmem:[#allocation8 + $0x698] sm:$0xff] }
 0x35e   :  { %6914 = vmatpush1.bf16.msra.mxu1 %v8337_v48  ;;  %6743 = vmatprep.subr.bf16.mxu0 %v8344_v49  ;;  %v8394_v48 = vcombine.high %v3420_v42, %v3424_v43  ;;  %v3427_v49 = vld [vmem:[#allocation8 + $0x550] sm:$0xff]  ;;  %v3472_v41 = vld [vmem:[#allocation8 + $0x6b8] sm:$0xff] }
 0x35f   :  { %6915 = vmatprep.subr.bf16.mxu1 %v8346_v50  ;;  %v3431_v50 = vld [vmem:[#allocation8 + $0x570] sm:$0xff] }
 0x360   :  { %v8399_v55 = vcombine.low %v3427_v49, %v3431_v50 }
 0x361   :  { %6744 = vmatpush1.bf16.msra.mxu0 %v8343_v1  ;;  %v8400_v1 = vcombine.high %v3427_v49, %v3431_v50  ;;  %v3476_v49 = vld [vmem:[#allocation8 + $0x6d8] sm:$0xff] }
 0x362   :  { %6916 = vmatpush1.bf16.msra.mxu1 %v8345_v2  ;;  %6745 = vmatprep.subr.bf16.mxu0 %v8352_v3  ;;  %v8402_v2 = vcombine.high %v3428_v52, %v3432_v57  ;;  %v3435_v3 = vld [vmem:[#allocation8 + $0x590] sm:$0xff]  ;;  %v3480_v50 = vld [vmem:[#allocation8 + $0x6f8] sm:$0xff]  ;;  %v8441_v57 = vcombine.low %v3468_v40, %v3472_v41 }
 0x363   :  { %6917 = vmatprep.subr.bf16.mxu1 %v8354_v8  ;;  %v3439_v8 = vld [vmem:[#allocation8 + $0x5b0] sm:$0xff] }
 0x365   :  { %6746 = vmatpush1.bf16.msra.mxu0 %v8351_v6  ;;  %v8408_v6 = vcombine.high %v3435_v3, %v3439_v8 }
 0x366   :  { %6918 = vmatpush1.bf16.msra.mxu1 %v8353_v7  ;;  %6758 = vmatprep.subr.bf16.mxu0 %v8360_v10  ;;  %v8410_v7 = vcombine.high %v3436_v9, %v3440_v4  ;;  %v3443_v10 = vld [vmem:[#allocation8 + $0x5d0] sm:$0xff]  ;;  %v8449_v4 = vcombine.low %v3476_v49, %v3480_v50 }
 0x367   :  { %6930 = vmatprep.subr.bf16.mxu1 %v8362_v11  ;;  %v3447_v11 = vld [vmem:[#allocation8 + $0x5f0] sm:$0xff] }
 0x368   :  { %6748 = vmatmul.mubr.bf16.vlgmr.msra.gmra.mrb[12].mxu0 %v9438_v51  ;;  %v8416_v21 = vcombine.high %v3443_v10, %v3447_v11 }
 0x369   :  { %6920 = vmatmul.mubr.bf16.vlgmr.msra.gmra.mrb[12].mxu1 %v9438_v51  ;;  %6759 = vmatpush1.bf16.msra.mxu0 %v8359_v18  ;;  %v8377_v51 = vcombine.low %v3404_v27, %v3408_v28  ;;  %v8407_v18 = vcombine.low %v3435_v3, %v3439_v8  ;;  %v8415_v27 = vcombine.low %v3443_v10, %v3447_v11  ;;  %v3484_v3 = vld [vmem:[#allocation8 + $0x718] sm:$0xff] }
 0x36a   :  { %6790 = vmatprep.mubr.bf16.mxu0 %v9444_v62  ;;  %6931 = vmatpush1.bf16.msra.mxu1 %v8361_v22  ;;  %v8418_v22 = vcombine.high %v3444_v16, %v3448_v17  ;;  %v8417_v28 = vcombine.low %v3444_v16, %v3448_v17  ;;  %v3488_v8 = vld [vmem:[#allocation8 + $0x738] sm:$0xff] }
 0x36b   :  { %6962 = vmatprep.mubr.bf16.mxu1 %v9444_v62  ;;  %6760 = vmatprep.subr.bf16.mxu0 %v8368_v23  ;;  %v8383_v62 = vcombine.low %v3411_v33, %v3415_v34  ;;  %v3451_v23 = vld [vmem:[#allocation8 + $0x610] sm:$0xff]  ;;  %v3460_v33 = vld [vmem:[#allocation8 + $0x658] sm:$0xff]  ;;  %v8457_v17 = vcombine.low %v3484_v3, %v3488_v8 }
 0x36c   :  { %6932 = vmatprep.subr.bf16.mxu1 %v8370_v26  ;;  %v3456_v26 = vld [vmem:[#allocation8 + $0x638] sm:$0xff]  ;;  %v8423_v35 = vcombine.low %v3451_v23, %v3455_v24 }
 0x36d   :  { %6761 = vmatpush1.bf16.msra.mxu0 %v8367_v29  ;;  %v8424_v29 = vcombine.high %v3451_v23, %v3455_v24  ;;  %v3464_v34 = vld [vmem:[#allocation8 + $0x678] sm:$0xff]  ;;  %v8425_v36 = vcombine.low %v3452_v25, %v3456_v26 }
 0x36e   :  { %6933 = vmatpush1.bf16.msra.mxu1 %v8369_v30  ;;  %6762 = vmatprep.subr.bf16.mxu0 %v8376_v31  ;;  %v8426_v30 = vcombine.high %v3452_v25, %v3456_v26  ;;  %v3459_v31 = vld [vmem:[#allocation8 + $0x650] sm:$0xff]  ;;  %v8433_v43 = vcombine.low %v3460_v33, %v3464_v34  ;;  %v3492_v10 = vld [vmem:[#allocation8 + $0x758] sm:$0xff] }
 0x36f   :  { %6934 = vmatprep.subr.bf16.mxu1 %v8378_v32  ;;  %v3463_v32 = vld [vmem:[#allocation8 + $0x670] sm:$0xff]  ;;  %v3496_v11 = vld [vmem:[#allocation8 + $0x778] sm:$0xff] }
 0x370   :  { %v8431_v42 = vcombine.low %v3459_v31, %v3463_v32  ;;  %v3500_v23 = vld [vmem:[#allocation8 + $0x798] sm:$0xff]  ;;  %v8465_v26 = vcombine.low %v3492_v10, %v3496_v11 }
 0x371   :  { %6763 = vmatpush1.bf16.msra.mxu0 %v8375_v37  ;;  %v8432_v37 = vcombine.high %v3459_v31, %v3463_v32  ;;  %v3504_v24 = vld [vmem:[#allocation8 + $0x7b8] sm:$0xff] }
 0x372   :  { %6935 = vmatpush1.bf16.msra.mxu1 %v8377_v51  ;;  %6764 = vmatprep.subr.bf16.mxu0 %v8384_v38  ;;  %v8434_v51 = vcombine.high %v3460_v33, %v3464_v34  ;;  %v3467_v38 = vld [vmem:[#allocation8 + $0x690] sm:$0xff]  ;;  %v3508_v31 = vld [vmem:[#allocation8 + $0x7d8] sm:$0xff]  ;;  %v8473_v34 = vcombine.low %v3500_v23, %v3504_v24 }
 0x373   :  { %6936 = vmatprep.subr.bf16.mxu1 %v8386_v39  ;;  %v3471_v39 = vld [vmem:[#allocation8 + $0x6b0] sm:$0xff]  ;;  %v3512_v32 = vld [vmem:[#allocation8 + $0x7f8] sm:$0xff] }
 0x374   :  { %v8439_v52 = vcombine.low %v3467_v38, %v3471_v39 }
 0x375   :  { %6765 = vmatpush1.bf16.msra.mxu0 %v8383_v62  ;;  %v8440_v62 = vcombine.high %v3467_v38, %v3471_v39  ;;  %v3516_v38 = vld [vmem:[#allocation8 + $0x818] sm:$0xff] }
 0x376   :  { %6937 = vmatpush1.bf16.msra.mxu1 %v8385_v44  ;;  %6766 = vmatprep.subr.bf16.mxu0 %v8392_v45  ;;  %v8442_v44 = vcombine.high %v3468_v40, %v3472_v41  ;;  %v3475_v45 = vld [vmem:[#allocation8 + $0x6d0] sm:$0xff]  ;;  %v3520_v39 = vld [vmem:[#allocation8 + $0x838] sm:$0xff]  ;;  %v8481_v41 = vcombine.low %v3508_v31, %v3512_v32 }
 0x377   :  { %6938 = vmatprep.subr.bf16.mxu1 %v8394_v48  ;;  %v3479_v48 = vld [vmem:[#allocation8 + $0x6f0] sm:$0xff] }
 0x378   :  { %v8447_v9 = vcombine.low %v3475_v45, %v3479_v48 }
 0x379   :  { %6767 = vmatpush1.bf16.msra.mxu0 %v8391_v58  ;;  %v8448_v58 = vcombine.high %v3475_v45, %v3479_v48  ;;  %v3524_v48 = vld [vmem:[#allocation8 + $0x858] sm:$0xff] }
 0x37a   :  { %6939 = vmatpush1.bf16.msra.mxu1 %v8393_v0  ;;  %6768 = vmatprep.subr.bf16.mxu0 %v8400_v1  ;;  %v8450_v0 = vcombine.high %v3476_v49, %v3480_v50  ;;  %v3483_v1 = vld [vmem:[#allocation8 + $0x710] sm:$0xff]  ;;  %v3528_v49 = vld [vmem:[#allocation8 + $0x878] sm:$0xff]  ;;  %v8489_v50 = vcombine.low %v3516_v38, %v3520_v39 }
 0x37b   :  { %6940 = vmatprep.subr.bf16.mxu1 %v8402_v2  ;;  %v3487_v2 = vld [vmem:[#allocation8 + $0x730] sm:$0xff] }
 0x37c   :  { %v8455_v16 = vcombine.low %v3483_v1, %v3487_v2 }
 0x37d   :  { %6769 = vmatpush1.bf16.msra.mxu0 %v8399_v55  ;;  %v8456_v55 = vcombine.high %v3483_v1, %v3487_v2  ;;  %v3532_v1 = vld [vmem:[#allocation8 + $0x898] sm:$0xff] }
 0x37e   :  { %6941 = vmatpush1.bf16.msra.mxu1 %v8401_v5  ;;  %6770 = vmatprep.subr.bf16.mxu0 %v8408_v6  ;;  %v8458_v5 = vcombine.high %v3484_v3, %v3488_v8  ;;  %v3491_v6 = vld [vmem:[#allocation8 + $0x750] sm:$0xff]  ;;  %v3536_v2 = vld [vmem:[#allocation8 + $0x8b8] sm:$0xff]  ;;  %v8497_v8 = vcombine.low %v3524_v48, %v3528_v49 }
 0x37f   :  { %6942 = vmatprep.subr.bf16.mxu1 %v8410_v7  ;;  %v3495_v7 = vld [vmem:[#allocation8 + $0x770] sm:$0xff] }
 0x380   :  { %v8463_v25 = vcombine.low %v3491_v6, %v3495_v7 }
 0x381   :  { %6771 = vmatpush1.bf16.msra.mxu0 %v8407_v18  ;;  %v8464_v18 = vcombine.high %v3491_v6, %v3495_v7  ;;  %v3540_v6 = vld [vmem:[#allocation8 + $0x8d8] sm:$0xff] }
 0x382   :  { %6943 = vmatpush1.bf16.msra.mxu1 %v8409_v19  ;;  %6772 = vmatprep.subr.bf16.mxu0 %v8416_v21  ;;  %v8466_v19 = vcombine.high %v3492_v10, %v3496_v11  ;;  %v3499_v21 = vld [vmem:[#allocation8 + $0x790] sm:$0xff]  ;;  %v3544_v7 = vld [vmem:[#allocation8 + $0x8f8] sm:$0xff] }
 0x383   :  { %6944 = vmatprep.subr.bf16.mxu1 %v8418_v22  ;;  %v3503_v22 = vld [vmem:[#allocation8 + $0x7b0] sm:$0xff] }
 0x384   :  { %v8471_v33 = vcombine.low %v3499_v21, %v3503_v22 }
 0x385   :  { %6773 = vmatpush1.bf16.msra.mxu0 %v8415_v27  ;;  %v8472_v27 = vcombine.high %v3499_v21, %v3503_v22  ;;  %v3552_v21 = vld [vmem:[#allocation8 + $0x938] sm:$0xff]  ;;  %v8513_v22 = vcombine.low %v3540_v6, %v3544_v7 }
 0x386   :  { %6945 = vmatpush1.bf16.msra.mxu1 %v8417_v28  ;;  %6774 = vmatprep.subr.bf16.mxu0 %v8424_v29  ;;  %v8474_v28 = vcombine.high %v3500_v23, %v3504_v24  ;;  %v3507_v29 = vld [vmem:[#allocation8 + $0x7d0] sm:$0xff] }
 0x387   :  { %6946 = vmatprep.subr.bf16.mxu1 %v8426_v30  ;;  %v3511_v30 = vld [vmem:[#allocation8 + $0x7f0] sm:$0xff] }
 0x388   :  { %v8479_v40 = vcombine.low %v3507_v29, %v3511_v30 }
 0x389   :  { %6775 = vmatpush1.bf16.msra.mxu0 %v8423_v35  ;;  %v8480_v35 = vcombine.high %v3507_v29, %v3511_v30 }
 0x38a   :  { %6947 = vmatpush1.bf16.msra.mxu1 %v8425_v36  ;;  %6776 = vmatprep.subr.bf16.mxu0 %v8432_v37  ;;  %v8482_v36 = vcombine.high %v3508_v31, %v3512_v32  ;;  %v3515_v37 = vld [vmem:[#allocation8 + $0x810] sm:$0xff] }
 0x38b   :  { %6948 = vmatprep.subr.bf16.mxu1 %v8434_v51  ;;  %v3519_v51 = vld [vmem:[#allocation8 + $0x830] sm:$0xff] }
 0x38c   :  { %v8487_v45 = vcombine.low %v3515_v37, %v3519_v51 }
 0x38d   :  { %6777 = vmatpush1.bf16.msra.mxu0 %v8431_v42  ;;  %v8488_v42 = vcombine.high %v3515_v37, %v3519_v51 }
 0x38e   :  { %6949 = vmatpush1.bf16.msra.mxu1 %v8433_v43  ;;  %6778 = vmatprep.subr.bf16.mxu0 %v8440_v62  ;;  %v8490_v43 = vcombine.high %v3516_v38, %v3520_v39  ;;  %v3523_v62 = vld [vmem:[#allocation8 + $0x850] sm:$0xff] }
 0x38f   :  { %6950 = vmatprep.subr.bf16.mxu1 %v8442_v44  ;;  %v3527_v44 = vld [vmem:[#allocation8 + $0x870] sm:$0xff] }
 0x390   :  { %v8495_v3 = vcombine.low %v3523_v62, %v3527_v44 }
 0x391   :  { %6779 = vmatpush1.bf16.msra.mxu0 %v8439_v52  ;;  %v8496_v52 = vcombine.high %v3523_v62, %v3527_v44 }
 0x392   :  { %6951 = vmatpush1.bf16.msra.mxu1 %v8441_v57  ;;  %6780 = vmatprep.subr.bf16.mxu0 %v8448_v58  ;;  %v3531_v57 = vld [vmem:[#allocation8 + $0x890] sm:$0xff] }
 0x393   :  { %6952 = vmatprep.subr.bf16.mxu1 %v8450_v0  ;;  %v3535_v58 = vld [vmem:[#allocation8 + $0x8b0] sm:$0xff]  ;;  %v8498_v0 = vcombine.high %v3524_v48, %v3528_v49 }
 0x394   :  { %v8503_v10 = vcombine.low %v3531_v57, %v3535_v58  ;;  %v3579_v49 = vld [vmem:[#allocation8 + $0xa10] sm:$0xff] }
 0x395   :  { %6781 = vmatpush1.bf16.msra.mxu0 %v8447_v9  ;;  %v8504_v9 = vcombine.high %v3531_v57, %v3535_v58  ;;  %v3584_v57 = vld [vmem:[#allocation8 + $0xa38] sm:$0xff] }
 0x396   :  { %6953 = vmatpush1.bf16.msra.mxu1 %v8449_v4  ;;  %6782 = vmatprep.subr.bf16.mxu0 %v8456_v55  ;;  %v8506_v4 = vcombine.high %v3532_v1, %v3536_v2  ;;  %v3539_v55 = vld [vmem:[#allocation8 + $0x8d0] sm:$0xff] }
 0x397   :  { %6954 = vmatprep.subr.bf16.mxu1 %v8458_v5  ;;  %v3543_v5 = vld [vmem:[#allocation8 + $0x8f0] sm:$0xff] }
 0x398   :  { %v8512_v11 = vcombine.high %v3539_v55, %v3543_v5 }
 0x399   :  { %6783 = vmatpush1.bf16.msra.mxu0 %v8455_v16  ;;  %v8514_v16 = vcombine.high %v3540_v6, %v3544_v7 }
 0x39a   :  { %6955 = vmatpush1.bf16.msra.mxu1 %v8457_v17  ;;  %6784 = vmatprep.subr.bf16.mxu0 %v8464_v18  ;;  %v3547_v17 = vld [vmem:[#allocation8 + $0x910] sm:$0xff] }
 0x39b   :  { %6956 = vmatprep.subr.bf16.mxu1 %v8466_v19  ;;  %v3551_v18 = vld [vmem:[#allocation8 + $0x930] sm:$0xff]  ;;  %v3548_v19 = vld [vmem:[#allocation8 + $0x918] sm:$0xff] }
 0x39c   :  { %v8520_v23 = vcombine.high %v3547_v17, %v3551_v18  ;;  %v8522_v24 = vcombine.high %v3548_v19, %v3552_v21  ;;  %v8519_v29 = vcombine.low %v3547_v17, %v3551_v18  ;;  %v8521_v30 = vcombine.low %v3548_v19, %v3552_v21 }
 0x39d   :  { %6785 = vmatpush1.bf16.msra.mxu0 %v8463_v25  ;;  %v3555_v25 = vld [vmem:[#allocation8 + $0x950] sm:$0xff] }
 0x39e   :  { %6957 = vmatpush1.bf16.msra.mxu1 %v8465_v26  ;;  %6786 = vmatprep.subr.bf16.mxu0 %v8472_v27  ;;  %v3559_v26 = vld [vmem:[#allocation8 + $0x970] sm:$0xff]  ;;  %v3556_v27 = vld [vmem:[#allocation8 + $0x958] sm:$0xff] }
 0x39f   :  { %6958 = vmatprep.subr.bf16.mxu1 %v8474_v28  ;;  %v3560_v28 = vld [vmem:[#allocation8 + $0x978] sm:$0xff]  ;;  %v8528_v31 = vcombine.high %v3555_v25, %v3559_v26  ;;  %v8527_v37 = vcombine.low %v3555_v25, %v3559_v26 }
 0x3a0   :  { %v8530_v32 = vcombine.high %v3556_v27, %v3560_v28  ;;  %v8529_v51 = vcombine.low %v3556_v27, %v3560_v28 }
 0x3a1   :  { %6787 = vmatpush1.bf16.msra.mxu0 %v8471_v33  ;;  %v3563_v33 = vld [vmem:[#allocation8 + $0x990] sm:$0xff] }
 0x3a2   :  { %6959 = vmatpush1.bf16.msra.mxu1 %v8473_v34  ;;  %6788 = vmatprep.subr.bf16.mxu0 %v8480_v35  ;;  %v3567_v34 = vld [vmem:[#allocation8 + $0x9b0] sm:$0xff]  ;;  %v3564_v35 = vld [vmem:[#allocation8 + $0x998] sm:$0xff] }
 0x3a3   :  { %6960 = vmatprep.subr.bf16.mxu1 %v8482_v36  ;;  %v3568_v36 = vld [vmem:[#allocation8 + $0x9b8] sm:$0xff]  ;;  %v8536_v38 = vcombine.high %v3563_v33, %v3567_v34  ;;  %v8535_v62 = vcombine.low %v3563_v33, %v3567_v34 }
 0x3a4   :  { %v8538_v39 = vcombine.high %v3564_v35, %v3568_v36  ;;  %v8537_v44 = vcombine.low %v3564_v35, %v3568_v36 }
 0x3a5   :  { %6789 = vmatpush1.bf16.msra.mxu0 %v8479_v40  ;;  %v3571_v40 = vld [vmem:[#allocation8 + $0x9d0] sm:$0xff] }
 0x3a6   :  { %6961 = vmatpush1.bf16.msra.mxu1 %v8481_v41  ;;  %6801 = vmatprep.subr.bf16.mxu0 %v8488_v42  ;;  %v3575_v41 = vld [vmem:[#allocation8 + $0x9f0] sm:$0xff]  ;;  %v3572_v42 = vld [vmem:[#allocation8 + $0x9d8] sm:$0xff] }
 0x3a7   :  { %6973 = vmatprep.subr.bf16.mxu1 %v8490_v43  ;;  %v3576_v43 = vld [vmem:[#allocation8 + $0x9f8] sm:$0xff]  ;;  %v8543_v58 = vcombine.low %v3571_v40, %v3575_v41 }
 0x3a8   :  { %6791 = vmatmul.mubr.bf16.vlgmr.msra.gmra.mrb[12].mxu0 %v9440_v54  ;;  %v8546_v48 = vcombine.high %v3572_v42, %v3576_v43 }
 0x3a9   :  { %6963 = vmatmul.mubr.bf16.vlgmr.msra.gmra.mrb[12].mxu1 %v9440_v54  ;;  %6802 = vmatpush1.bf16.msra.mxu0 %v8487_v45  ;;  %v8505_v54 = vcombine.low %v3532_v1, %v3536_v2  ;;  %v8544_v45 = vcombine.high %v3571_v40, %v3575_v41 }
 0x3aa   :  { %6833 = vmatprep.mubr.bf16.mxu0 %v9482_v20  ;;  %6974 = vmatpush1.bf16.msra.mxu1 %v8489_v50  ;;  %v3583_v50 = vld [vmem:[#allocation8 + $0xa30] sm:$0xff] }
 0x3ab   :  { %7005 = vmatprep.mubr.bf16.mxu1 %v9482_v20  ;;  %6803 = vmatprep.subr.bf16.mxu0 %v8496_v52  ;;  %v8511_v20 = vcombine.low %v3539_v55, %v3543_v5  ;;  %v3580_v52 = vld [vmem:[#allocation8 + $0xa18] sm:$0xff]  ;;  %v8552_v1 = vcombine.high %v3579_v49, %v3583_v50  ;;  %v8551_v55 = vcombine.low %v3579_v49, %v3583_v50 }
 0x3ac   :  { %6975 = vmatprep.subr.bf16.mxu1 %v8498_v0  ;;  %v8545_v0 = vcombine.low %v3572_v42, %v3576_v43  ;;  %v8554_v2 = vcombine.high %v3580_v52, %v3584_v57  ;;  %v8553_v5 = vcombine.low %v3580_v52, %v3584_v57 }
 0x3ad   :  { %6804 = vmatpush1.bf16.msra.mxu0 %v8495_v3  ;;  %v3587_v3 = vld [vmem:[#allocation8 + $0xa50] sm:$0xff] }
 0x3ae   :  { %6976 = vmatpush1.bf16.msra.mxu1 %v8497_v8  ;;  %6805 = vmatprep.subr.bf16.mxu0 %v8504_v9  ;;  %v3591_v8 = vld [vmem:[#allocation8 + $0xa70] sm:$0xff]  ;;  %v3588_v9 = vld [vmem:[#allocation8 + $0xa58] sm:$0xff] }
 0x3af   :  { %6977 = vmatprep.subr.bf16.mxu1 %v8506_v4  ;;  %v3592_v4 = vld [vmem:[#allocation8 + $0xa78] sm:$0xff]  ;;  %v8560_v6 = vcombine.high %v3587_v3, %v3591_v8  ;;  %v8559_v17 = vcombine.low %v3587_v3, %v3591_v8 }
 0x3b0   :  { %v8562_v7 = vcombine.high %v3588_v9, %v3592_v4  ;;  %v8561_v18 = vcombine.low %v3588_v9, %v3592_v4 }
 0x3b1   :  { %6806 = vmatpush1.bf16.msra.mxu0 %v8503_v10  ;;  %v3595_v10 = vld [vmem:[#allocation8 + $0xa90] sm:$0xff] }
 0x3b2   :  { %6978 = vmatpush1.bf16.msra.mxu1 %v8505_v54  ;;  %6807 = vmatprep.subr.bf16.mxu0 %v8512_v11  ;;  %v3599_v54 = vld [vmem:[#allocation8 + $0xab0] sm:$0xff]  ;;  %v3596_v11 = vld [vmem:[#allocation8 + $0xa98] sm:$0xff] }
 0x3b3   :  { %6979 = vmatprep.subr.bf16.mxu1 %v8514_v16  ;;  %v3600_v16 = vld [vmem:[#allocation8 + $0xab8] sm:$0xff]  ;;  %v8568_v19 = vcombine.high %v3595_v10, %v3599_v54  ;;  %v8567_v25 = vcombine.low %v3595_v10, %v3599_v54 }
 0x3b4   :  { %v8570_v21 = vcombine.high %v3596_v11, %v3600_v16  ;;  %v8569_v26 = vcombine.low %v3596_v11, %v3600_v16 }
 0x3b5   :  { %6808 = vmatpush1.bf16.msra.mxu0 %v8511_v20  ;;  %v3603_v20 = vld [vmem:[#allocation8 + $0xad0] sm:$0xff] }
 0x3b6   :  { %6980 = vmatpush1.bf16.msra.mxu1 %v8513_v22  ;;  %6809 = vmatprep.subr.bf16.mxu0 %v8520_v23  ;;  %v3607_v22 = vld [vmem:[#allocation8 + $0xaf0] sm:$0xff]  ;;  %v3604_v23 = vld [vmem:[#allocation8 + $0xad8] sm:$0xff] }
 0x3b7   :  { %6981 = vmatprep.subr.bf16.mxu1 %v8522_v24  ;;  %v3608_v24 = vld [vmem:[#allocation8 + $0xaf8] sm:$0xff]  ;;  %v8576_v27 = vcombine.high %v3603_v20, %v3607_v22  ;;  %v8575_v33 = vcombine.low %v3603_v20, %v3607_v22 }
 0x3b8   :  { %v8578_v28 = vcombine.high %v3604_v23, %v3608_v24  ;;  %v8577_v34 = vcombine.low %v3604_v23, %v3608_v24  ;;  %v3656_v20 = vld [vmem:[#allocation8 + $0xc78] sm:$0xff]  ;;  %v3659_v24 = vld [vmem:[#allocation8 + $0xc90] sm:$0xff] }
 0x3b9   :  { %6810 = vmatpush1.bf16.msra.mxu0 %v8519_v29  ;;  %v3611_v29 = vld [vmem:[#allocation8 + $0xb10] sm:$0xff] }
 0x3ba   :  { %6982 = vmatpush1.bf16.msra.mxu1 %v8521_v30  ;;  %6811 = vmatprep.subr.bf16.mxu0 %v8528_v31  ;;  %v3615_v30 = vld [vmem:[#allocation8 + $0xb30] sm:$0xff]  ;;  %v3612_v31 = vld [vmem:[#allocation8 + $0xb18] sm:$0xff] }
 0x3bb   :  { %6983 = vmatprep.subr.bf16.mxu1 %v8530_v32  ;;  %v3616_v32 = vld [vmem:[#allocation8 + $0xb38] sm:$0xff]  ;;  %v8584_v35 = vcombine.high %v3611_v29, %v3615_v30  ;;  %v8583_v40 = vcombine.low %v3611_v29, %v3615_v30 }
 0x3bc   :  { %v8586_v36 = vcombine.high %v3612_v31, %v3616_v32  ;;  %v8585_v41 = vcombine.low %v3612_v31, %v3616_v32 }
 0x3bd   :  { %6812 = vmatpush1.bf16.msra.mxu0 %v8527_v37  ;;  %v3619_v37 = vld [vmem:[#allocation8 + $0xb50] sm:$0xff] }
 0x3be   :  { %6984 = vmatpush1.bf16.msra.mxu1 %v8529_v51  ;;  %6813 = vmatprep.subr.bf16.mxu0 %v8536_v38  ;;  %v3623_v51 = vld [vmem:[#allocation8 + $0xb70] sm:$0xff]  ;;  %v3620_v38 = vld [vmem:[#allocation8 + $0xb58] sm:$0xff] }
 0x3bf   :  { %6985 = vmatprep.subr.bf16.mxu1 %v8538_v39  ;;  %v3624_v39 = vld [vmem:[#allocation8 + $0xb78] sm:$0xff]  ;;  %v8592_v42 = vcombine.high %v3619_v37, %v3623_v51  ;;  %v8591_v49 = vcombine.low %v3619_v37, %v3623_v51 }
 0x3c0   :  { %v8594_v43 = vcombine.high %v3620_v38, %v3624_v39  ;;  %v8593_v50 = vcombine.low %v3620_v38, %v3624_v39  ;;  %v3675_v39 = vld [vmem:[#allocation8 + $0xd10] sm:$0xff] }
 0x3c1   :  { %6814 = vmatpush1.bf16.msra.mxu0 %v8535_v62  ;;  %v3627_v62 = vld [vmem:[#allocation8 + $0xb90] sm:$0xff] }
 0x3c2   :  { %6986 = vmatpush1.bf16.msra.mxu1 %v8537_v44  ;;  %6815 = vmatprep.subr.bf16.mxu0 %v8544_v45  ;;  %v3631_v44 = vld [vmem:[#allocation8 + $0xbb0] sm:$0xff]  ;;  %v3628_v45 = vld [vmem:[#allocation8 + $0xb98] sm:$0xff] }
 0x3c3   :  { %6987 = vmatprep.subr.bf16.mxu1 %v8546_v48  ;;  %v3632_v48 = vld [vmem:[#allocation8 + $0xbb8] sm:$0xff]  ;;  %v8600_v52 = vcombine.high %v3627_v62, %v3631_v44  ;;  %v8599_v3 = vcombine.low %v3627_v62, %v3631_v44 }
 0x3c4   :  { %v8602_v57 = vcombine.high %v3628_v45, %v3632_v48  ;;  %v8601_v8 = vcombine.low %v3628_v45, %v3632_v48  ;;  %v3683_v45 = vld [vmem:[#allocation8 + $0xd50] sm:$0xff] }
 0x3c5   :  { %6816 = vmatpush1.bf16.msra.mxu0 %v8543_v58  ;;  %v3635_v58 = vld [vmem:[#allocation8 + $0xbd0] sm:$0xff] }
 0x3c6   :  { %6988 = vmatpush1.bf16.msra.mxu1 %v8545_v0  ;;  %6817 = vmatprep.subr.bf16.mxu0 %v8552_v1  ;;  %v3639_v0 = vld [vmem:[#allocation8 + $0xbf0] sm:$0xff]  ;;  %v3636_v1 = vld [vmem:[#allocation8 + $0xbd8] sm:$0xff] }
 0x3c7   :  { %6989 = vmatprep.subr.bf16.mxu1 %v8554_v2  ;;  %v3640_v2 = vld [vmem:[#allocation8 + $0xbf8] sm:$0xff]  ;;  %v8608_v9 = vcombine.high %v3635_v58, %v3639_v0  ;;  %v8607_v10 = vcombine.low %v3635_v58, %v3639_v0  ;;  %v3687_v48 = vld [vmem:[#allocation8 + $0xd70] sm:$0xff] }
 0x3c8   :  { %v8610_v4 = vcombine.high %v3636_v1, %v3640_v2  ;;  %v8609_v54 = vcombine.low %v3636_v1, %v3640_v2  ;;  %v8656_v0 = vcombine.high %v3683_v45, %v3687_v48  ;;  %v3691_v2 = vld [vmem:[#allocation8 + $0xd90] sm:$0xff] }
 0x3c9   :  { %6818 = vmatpush1.bf16.msra.mxu0 %v8551_v55  ;;  %v3643_v55 = vld [vmem:[#allocation8 + $0xc10] sm:$0xff] }
 0x3ca   :  { %6990 = vmatpush1.bf16.msra.mxu1 %v8553_v5  ;;  %6819 = vmatprep.subr.bf16.mxu0 %v8560_v6  ;;  %v3647_v5 = vld [vmem:[#allocation8 + $0xc30] sm:$0xff]  ;;  %v3644_v6 = vld [vmem:[#allocation8 + $0xc18] sm:$0xff] }
 0x3cb   :  { %6991 = vmatprep.subr.bf16.mxu1 %v8562_v7  ;;  %v3648_v7 = vld [vmem:[#allocation8 + $0xc38] sm:$0xff]  ;;  %v8616_v11 = vcombine.high %v3643_v55, %v3647_v5 }
 0x3cc   :  { %v8618_v16 = vcombine.high %v3644_v6, %v3648_v7  ;;  %v8617_v22 = vcombine.low %v3644_v6, %v3648_v7  ;;  %v8655_v7 = vcombine.low %v3683_v45, %v3687_v48 }
 0x3cd   :  { %6820 = vmatpush1.bf16.msra.mxu0 %v8559_v17  ;;  %v3651_v17 = vld [vmem:[#allocation8 + $0xc50] sm:$0xff] }
 0x3ce   :  { %6992 = vmatpush1.bf16.msra.mxu1 %v8561_v18  ;;  %6821 = vmatprep.subr.bf16.mxu0 %v8568_v19  ;;  %v3655_v18 = vld [vmem:[#allocation8 + $0xc70] sm:$0xff]  ;;  %v8615_v19 = vcombine.low %v3643_v55, %v3647_v5  ;;  %v3696_v55 = vld [vmem:[#allocation8 + $0xdb8] sm:$0xff] }
 0x3cf   :  { %6993 = vmatprep.subr.bf16.mxu1 %v8570_v21  ;;  %v3652_v21 = vld [vmem:[#allocation8 + $0xc58] sm:$0xff]  ;;  %v8624_v23 = vcombine.high %v3651_v17, %v3655_v18  ;;  %v8623_v29 = vcombine.low %v3651_v17, %v3655_v18 }
 0x3d0   :  { %v8625_v30 = vcombine.low %v3652_v21, %v3656_v20 }
 0x3d1   :  { %6822 = vmatpush1.bf16.msra.mxu0 %v8567_v25  ;;  %v3663_v25 = vld [vmem:[#allocation8 + $0xcb0] sm:$0xff] }
 0x3d2   :  { %6994 = vmatpush1.bf16.msra.mxu1 %v8569_v26  ;;  %6823 = vmatprep.subr.bf16.mxu0 %v8576_v27  ;;  %v8626_v26 = vcombine.high %v3652_v21, %v3656_v20  ;;  %v3660_v27 = vld [vmem:[#allocation8 + $0xc98] sm:$0xff]  ;;  %v8632_v31 = vcombine.high %v3659_v24, %v3663_v25  ;;  %v8631_v37 = vcombine.low %v3659_v24, %v3663_v25 }
 0x3d3   :  { %6995 = vmatprep.subr.bf16.mxu1 %v8578_v28  ;;  %v3664_v28 = vld [vmem:[#allocation8 + $0xcb8] sm:$0xff] }
 0x3d4   :  { %v8634_v32 = vcombine.high %v3660_v27, %v3664_v28 }
 0x3d5   :  { %6824 = vmatpush1.bf16.msra.mxu0 %v8575_v33  ;;  %v3667_v33 = vld [vmem:[#allocation8 + $0xcd0] sm:$0xff] }
 0x3d6   :  { %6996 = vmatpush1.bf16.msra.mxu1 %v8577_v34  ;;  %6825 = vmatprep.subr.bf16.mxu0 %v8584_v35  ;;  %v3671_v34 = vld [vmem:[#allocation8 + $0xcf0] sm:$0xff]  ;;  %v3668_v35 = vld [vmem:[#allocation8 + $0xcd8] sm:$0xff] }
 0x3d7   :  { %6997 = vmatprep.subr.bf16.mxu1 %v8586_v36  ;;  %v3672_v36 = vld [vmem:[#allocation8 + $0xcf8] sm:$0xff]  ;;  %v8640_v51 = vcombine.high %v3667_v33, %v3671_v34 }
 0x3d8   :  { %v8642_v38 = vcombine.high %v3668_v35, %v3672_v36 }
 0x3d9   :  { %6826 = vmatpush1.bf16.msra.mxu0 %v8583_v40  ;;  %v3679_v40 = vld [vmem:[#allocation8 + $0xd30] sm:$0xff] }
 0x3da   :  { %6998 = vmatpush1.bf16.msra.mxu1 %v8585_v41  ;;  %6827 = vmatprep.subr.bf16.mxu0 %v8592_v42  ;;  %v3676_v41 = vld [vmem:[#allocation8 + $0xd18] sm:$0xff]  ;;  %v8648_v62 = vcombine.high %v3675_v39, %v3679_v40 }
 0x3db   :  { %6999 = vmatprep.subr.bf16.mxu1 %v8594_v43  ;;  %v3680_v42 = vld [vmem:[#allocation8 + $0xd38] sm:$0xff]  ;;  %v8641_v43 = vcombine.low %v3668_v35, %v3672_v36 }
 0x3dc   :  { %v8650_v44 = vcombine.high %v3676_v41, %v3680_v42  ;;  %v8649_v58 = vcombine.low %v3676_v41, %v3680_v42  ;;  %v3708_v42 = vld [vmem:[#allocation8 + $0xe18] sm:$0xff] }
 0x3dd   :  { %6828 = vmatpush1.bf16.msra.mxu0 %v8591_v49  ;;  %v3684_v49 = vld [vmem:[#allocation8 + $0xd58] sm:$0xff] }
 0x3de   :  { %7000 = vmatpush1.bf16.msra.mxu1 %v8593_v50  ;;  %6829 = vmatprep.subr.bf16.mxu0 %v8600_v52  ;;  %v3688_v50 = vld [vmem:[#allocation8 + $0xd78] sm:$0xff]  ;;  %v8647_v52 = vcombine.low %v3675_v39, %v3679_v40 }
 0x3df   :  { %7001 = vmatprep.subr.bf16.mxu1 %v8602_v57  ;;  %v9512_v57 = vld [vmem:[#allocation10] sm:$0xff]  ;;  %v8658_v1 = vcombine.high %v3684_v49, %v3688_v50 }
 0x3e0   :  { %v3778_v5 = vrot.slane %v9512_v57, %v512_v60  ;;  %v3786_v6 = vrot.slane %v9512_v57, %v520_v63 }
 0x3e1   :  { %6830 = vmatpush1.bf16.msra.mxu0 %v8599_v3  ;;  %v3695_v3 = vld [vmem:[#allocation8 + $0xdb0] sm:$0xff] }
 0x3e2   :  { %7002 = vmatpush1.bf16.msra.mxu1 %v8601_v8  ;;  %6831 = vmatprep.subr.bf16.mxu0 %v8608_v9  ;;  %v3774_v8 = vrot.slane %v9512_v57, %v508_v56  ;;  %v3782_v9 = vrot.slane %v9512_v57, %v516_v59  ;;  %v8664_v56 = vcombine.high %v3691_v2, %v3695_v3 }
 0x3e3   :  { %7003 = vmatprep.subr.bf16.mxu1 %v8610_v4  ;;  %v3692_v4 = vld [vmem:[#allocation8 + $0xd98] sm:$0xff]  ;;  %v8663_v60 = vcombine.low %v3691_v2, %v3695_v3  ;;  %v3719_v2 = vld [vmem:[#allocation8 + $0xe70] sm:$0xff] }
 0x3e4   :  { %v8666_v17 = vcombine.high %v3692_v4, %v3696_v55  ;;  %v3716_v3 = vld [vmem:[#allocation8 + $0xe58] sm:$0xff] }
 0x3e5   :  { %6832 = vmatpush1.bf16.msra.mxu0 %v8607_v10  ;;  %v8657_v10 = vcombine.low %v3684_v49, %v3688_v50 }
 0x3e6   :  { %7004 = vmatpush1.bf16.msra.mxu1 %v8609_v54  ;;  %6844 = vmatprep.subr.bf16.mxu0 %v8616_v11  ;;  %v3699_v54 = vld [vmem:[#allocation8 + $0xdd0] sm:$0xff] }
 0x3e7   :  { %7016 = vmatprep.subr.bf16.mxu1 %v8618_v16  ;;  %v3703_v11 = vld [vmem:[#allocation8 + $0xdf0] sm:$0xff] }
 0x3e8   :  { %6834 = vmatmul.mubr.bf16.vlgmr.msra.gmra.mrb[12].mxu0 %v9478_v46 }
 0x3e9   :  { %7006 = vmatmul.mubr.bf16.vlgmr.msra.gmra.mrb[12].mxu1 %v9478_v46  ;;  %6845 = vmatpush1.bf16.msra.mxu0 %v8615_v19  ;;  %v8633_v46 = vcombine.low %v3660_v27, %v3664_v28  ;;  %v8665_v27 = vcombine.low %v3692_v4, %v3696_v55  ;;  %v8671_v28 = vcombine.low %v3699_v54, %v3703_v11 }
 0x3ea   :  { %6876 = vmatprep.mubr.bf16.mxu0 %v9488_v61  ;;  %7017 = vmatpush1.bf16.msra.mxu1 %v8617_v22  ;;  %v3700_v22 = vld [vmem:[#allocation8 + $0xdd8] sm:$0xff] }
 0x3eb   :  { %7048 = vmatprep.mubr.bf16.mxu1 %v9488_v61  ;;  %6846 = vmatprep.subr.bf16.mxu0 %v8624_v23  ;;  %v8639_v61 = vcombine.low %v3667_v33, %v3671_v34  ;;  %v3704_v23 = vld [vmem:[#allocation8 + $0xdf8] sm:$0xff]  ;;  %v8672_v33 = vcombine.high %v3699_v54, %v3703_v11 }
 0x3ec   :  { %7018 = vmatprep.subr.bf16.mxu1 %v8626_v26  ;;  %v8673_v36 = vcombine.low %v3700_v22, %v3704_v23 }
 0x3ed   :  { %6847 = vmatpush1.bf16.msra.mxu0 %v8623_v29 }
 0x3ee   :  { %7019 = vmatpush1.bf16.msra.mxu1 %v8625_v30  ;;  %6848 = vmatprep.subr.bf16.mxu0 %v8632_v31 }
 0x3ef   :  { %7020 = vmatprep.subr.bf16.mxu1 %v8634_v32 }
 0x3f1   :  { %6849 = vmatpush1.bf16.msra.mxu0 %v8631_v37  ;;  %v8674_v37 = vcombine.high %v3700_v22, %v3704_v23 }
 0x3f2   :  { %7021 = vmatpush1.bf16.msra.mxu1 %v8633_v46  ;;  %6850 = vmatprep.subr.bf16.mxu0 %v8640_v51  ;;  %v3707_v46 = vld [vmem:[#allocation8 + $0xe10] sm:$0xff] }
 0x3f3   :  { %7022 = vmatprep.subr.bf16.mxu1 %v8642_v38  ;;  %v3711_v51 = vld [vmem:[#allocation8 + $0xe30] sm:$0xff] }
 0x3f4   :  { %v8680_v50 = vcombine.high %v3707_v46, %v3711_v51 }
 0x3f5   :  { %6851 = vmatpush1.bf16.msra.mxu0 %v8639_v61  ;;  %v3712_v61 = vld [vmem:[#allocation8 + $0xe38] sm:$0xff] }
 0x3f6   :  { %7023 = vmatpush1.bf16.msra.mxu1 %v8641_v43  ;;  %6852 = vmatprep.subr.bf16.mxu0 %v8648_v62  ;;  %v8681_v4 = vcombine.low %v3708_v42, %v3712_v61 }
 0x3f7   :  { %7024 = vmatprep.subr.bf16.mxu1 %v8650_v44 }
 0x3f9   :  { %6853 = vmatpush1.bf16.msra.mxu0 %v8647_v52 }
 0x3fa   :  { %7025 = vmatpush1.bf16.msra.mxu1 %v8649_v58  ;;  %6854 = vmatprep.subr.bf16.mxu0 %v8656_v0  ;;  %v8682_v0 = vcombine.high %v3708_v42, %v3712_v61 }
 0x3fb   :  { %v6534_v16 = vpop.f32.mrb[8].mxu0  ;;  %v6706_v59 = vpop.f32.mrb[8].mxu1  ;;  %7026 = vmatprep.subr.bf16.mxu1 %v8658_v1  ;;  %v3715_v1 = vld [vmem:[#allocation8 + $0xe50] sm:$0xff] }
 0x3fc   :  { %v8908_v18 = vadd.f32 %v6534_v16, %v3774_v8  ;;  %v8912_v19 = vadd.f32 %v6706_v59, %v3782_v9  ;;  %v6536_v21 = vpop.f32.mrb[9].mxu0  ;;  %v6708_v20 = vpop.f32.mrb[9].mxu1  ;;  %v8688_v55 = vcombine.high %v3715_v1, %v3719_v2  ;;  %v8687_v54 = vcombine.low %v3715_v1, %v3719_v2 }
 0x3fd   :  { %v8909_v24 = vadd.f32 %v6536_v21, %v3778_v5  ;;  %v8913_v63 = vadd.f32 %v6708_v20, %v3786_v6  ;;  %v6538_v25 = vpop.f32.mrb[10].mxu0  ;;  %v6710_v26 = vpop.f32.mrb[10].mxu1  ;;  %6855 = vmatpush1.bf16.msra.mxu0 %v8655_v7  ;;  %v3727_v7 = vld [vmem:[#allocation8 + $0xeb0] sm:$0xff]  ;;  %v3736_v21 = vld [vmem:[#allocation8 + $0xef8] sm:$0xff] }
 0x3fe   :  { %v8910_v29 = vadd.f32 %v6538_v25, %v3774_v8  ;;  %v8914_v30 = vadd.f32 %v6710_v26, %v3782_v9  ;;  %7027 = vmatpush1.bf16.msra.mxu1 %v8657_v10  ;;  %v6540_v31 = vpop.f32.mrb[11].mxu0  ;;  %v6712_v32 = vpop.f32.mrb[11].mxu1  ;;  %6856 = vmatprep.subr.bf16.mxu0 %v8664_v56  ;;  %v7059_v38 = vmax.f32 %v8908_v18, 0.0  ;;  %v7061_v39 = vmax.f32 %v8912_v19, 0.0  ;;  %v3720_v8 = vld [vmem:[#allocation8 + $0xe78] sm:$0xff]  ;;  %v3735_v18 = vld [vmem:[#allocation8 + $0xef0] sm:$0xff] }
 0x3ff   :  { %v8911_v34 = vadd.f32 %v6540_v31, %v3778_v5  ;;  %v8915_v35 = vadd.f32 %v6712_v32, %v3786_v6  ;;  %7028 = vmatprep.subr.bf16.mxu1 %v8666_v17  ;;  %v7060_v43 = vmax.f32 %v8909_v24, 0.0  ;;  %v7062_v62 = vmax.f32 %v8913_v63, 0.0  ;;  %v3723_v6 = vld [vmem:[#allocation8 + $0xe90] sm:$0xff]  ;;  %v3724_v10 = vld [vmem:[#allocation8 + $0xe98] sm:$0xff] }
 0x400   :  { %v7067_v40 = vmax.f32 %v8910_v29, 0.0  ;;  %v7069_v41 = vmax.f32 %v8914_v30, 0.0  ;;  %v8679_v9 = vcombine.low %v3707_v46, %v3711_v51  ;;  %v8690_v5 = vcombine.high %v3716_v3, %v3720_v8  ;;  %v3728_v56 = vld [vmem:[#allocation8 + $0xeb8] sm:$0xff]  ;;  %v3731_v17 = vld [vmem:[#allocation8 + $0xed0] sm:$0xff] }
 0x401   :  { %v7068_v44 = vmax.f32 %v8911_v34, 0.0  ;;  %v7070_v45 = vmax.f32 %v8915_v35, 0.0  ;;  %6857 = vmatpush1.bf16.msra.mxu0 %v8663_v60  ;;  %v8689_v11 = vcombine.low %v3716_v3, %v3720_v8  ;;  %v8696_v16 = vcombine.high %v3723_v6, %v3727_v7  ;;  %v3732_v19 = vld [vmem:[#allocation8 + $0xed8] sm:$0xff]  ;;  %v3739_v24 = vld [vmem:[#allocation8 + $0xf10] sm:$0xff] }
 0x402   :  { %v9526_v48 = vpack.c.bf16 %v7067_v40, %v7059_v38  ;;  %v9528_v49 = vpack.c.bf16 %v7069_v41, %v7061_v39  ;;  %7029 = vmatpush1.bf16.msra.mxu1 %v8665_v27  ;;  %6858 = vmatprep.subr.bf16.mxu0 %v8672_v33  ;;  %v8698_v59 = vcombine.high %v3724_v10, %v3728_v56  ;;  %v3743_v63 = vld [vmem:[#allocation8 + $0xf30] sm:$0xff]  ;;  %v3740_v25 = vld [vmem:[#allocation8 + $0xf18] sm:$0xff] }
 0x403   :  { %v9530_v52 = vpack.c.bf16 %v7068_v44, %v7060_v43  ;;  %v9532_v58 = vpack.c.bf16 %v7070_v45, %v7062_v62  ;;  %7030 = vmatprep.subr.bf16.mxu1 %v8674_v37  ;;  %v8695_v20 = vcombine.low %v3723_v6, %v3727_v7  ;;  %v8697_v60 = vcombine.low %v3724_v10, %v3728_v56  ;;  %v3744_v26 = vld [vmem:[#allocation8 + $0xf38] sm:$0xff]  ;;  %v3747_v31 = vld [vmem:[#allocation8 + $0xf50] sm:$0xff]  ;;  %v9048_v6 = vld [vmem:[%s9761_s5 + $0x80] sm:$0xff]  }
 0x404   :  { %v8704_v22 = vcombine.high %v3731_v17, %v3735_v18  ;;  %v8706_v23 = vcombine.high %v3732_v19, %v3736_v21  ;;  %v8703_v27 = vcombine.low %v3731_v17, %v3735_v18  ;;  %v8712_v29 = vcombine.high %v3739_v24, %v3743_v63  ;;  %v3751_v32 = vld [vmem:[#allocation8 + $0xf70] sm:$0xff]  ;;  %v3748_v33 = vld [vmem:[#allocation8 + $0xf58] sm:$0xff]  ;;  %v9049_v7 = vld [vmem:[%s9761_s5 + $0x48] sm:$0xff]  }
 0x405   :  { %6859 = vmatpush1.bf16.msra.mxu0 %v8671_v28  ;;  %v8705_v28 = vcombine.low %v3732_v19, %v3736_v21  ;;  %v8714_v30 = vcombine.high %v3740_v25, %v3744_v26  ;;  %v3752_v34 = vld [vmem:[#allocation8 + $0xf78] sm:$0xff]  ;;  %v8711_v35 = vcombine.low %v3739_v24, %v3743_v63  ;;  %v8720_v37 = vcombine.high %v3747_v31, %v3751_v32  ;;  %v3755_v51 = vld [vmem:[#allocation8 + $0xf90] sm:$0xff]  ;;  %v9050_v10 = vld [vmem:[%s9761_s5 + $0xc8] sm:$0xff]  }
 0x406   :  { %7031 = vmatpush1.bf16.msra.mxu1 %v8673_v36  ;;  %6860 = vmatprep.subr.bf16.mxu0 %v8680_v50  ;;  %v8713_v36 = vcombine.low %v3740_v25, %v3744_v26  ;;  %v8722_v46 = vcombine.high %v3748_v33, %v3752_v34  ;;  %v3759_v38 = vld [vmem:[#allocation8 + $0xfb0] sm:$0xff]  ;;  %v3756_v39 = vld [vmem:[#allocation8 + $0xf98] sm:$0xff]  ;;  %v8719_v41 = vcombine.low %v3747_v31, %v3751_v32  ;;  %v9051_v56 = vld [vmem:[%s9761_s5 + $0x8] sm:$0xff]  }
 0x407   :  { %7032 = vmatprep.subr.bf16.mxu1 %v8682_v0  ;;  %v3760_v40 = vld [vmem:[#allocation8 + $0xfb8] sm:$0xff]  ;;  %v8721_v42 = vcombine.low %v3748_v33, %v3752_v34  ;;  %v8728_v61 = vcombine.high %v3755_v51, %v3759_v38  ;;  %v3763_v62 = vld [vmem:[#allocation8 + $0xfd0] sm:$0xff]  ;;  %v8727_v0 = vcombine.low %v3755_v51, %v3759_v38  ;;  %v9061_v19 = vld [vmem:[%s9761_s5 + $0x60] sm:$0xff]  }
 0x408   :  { %v8730_v43 = vcombine.high %v3756_v39, %v3760_v40  ;;  %v3767_v44 = vld [vmem:[#allocation8 + $0xff0] sm:$0xff]  ;;  %v3764_v45 = vld [vmem:[#allocation8 + $0xfd8] sm:$0xff]  ;;  %v8729_v1 = vcombine.low %v3756_v39, %v3760_v40  ;;  %v9062_v21 = vld [vmem:[%s9761_s5 + $0xe0] sm:$0xff]  }
 0x409   :  { %6861 = vmatpush1.bf16.msra.mxu0 %v8679_v9  ;;  %v3768_v50 = vld [vmem:[#allocation8 + $0xff8] sm:$0xff]  ;;  %v8736_v2 = vcombine.high %v3763_v62, %v3767_v44  ;;  %v8735_v8 = vcombine.low %v3763_v62, %v3767_v44  ;;  %v9067_v24 = vld [vmem:[%s9761_s5 + $0x28] sm:$0xff]   ;;  %v9069_v25 = vld [vmem:[%s9761_s5 + $0x70] sm:$0xff]  }
 0x40a   :  { %7033 = vmatpush1.bf16.msra.mxu1 %v8681_v4  ;;  %6862 = vmatprep.subr.bf16.mxu0 %v8688_v55  ;;  %v8738_v3 = vcombine.high %v3764_v45, %v3768_v50  ;;  %v8737_v9 = vcombine.low %v3764_v45, %v3768_v50  ;;  %v9045_v4 = vld [vmem:[%s9761_s5 + $0x40] sm:$0xff]   ;;  %v9059_v17 = vld [vmem:[%s9761_s5 + $0x18] sm:$0xff]   ;;  %v9068_v63 = vld [vmem:[%s9761_s5 + $0xa8] sm:$0xff]  }
 0x40b   :  { %7034 = vmatprep.subr.bf16.mxu1 %v8690_v5  ;;  %v9046_v55 = vld [vmem:[%s9761_s5 + $0xc0] sm:$0xff]   ;;  %v9060_v18 = vld [vmem:[%s9761_s5 + $0x98] sm:$0xff]   ;;  %v9070_v26 = vld [vmem:[%s9761_s5 + $0xf0] sm:$0xff]  }
 0x40c   :  { %v9047_v5 = vld [vmem:[%s9761_s5] sm:$0xff]   ;;  %v9075_v31 = vld [vmem:[%s9761_s5 + $0x38] sm:$0xff]   ;;  %v9083_v51 = vld [vmem:[%s9761_s5 + $0x108] sm:$0xff]  }
 0x40d   :  { %6863 = vmatpush1.bf16.msra.mxu0 %v8687_v54  ;;  %v9052_v54 = vld [vmem:[%s9761_s5 + $0x88] sm:$0xff]   ;;  %v9076_v32 = vld [vmem:[%s9761_s5 + $0xb8] sm:$0xff]   ;;  %v9077_v33 = vld [vmem:[%s9761_s5 + $0x140] sm:$0xff]  }
 0x40e   :  { %7035 = vmatpush1.bf16.msra.mxu1 %v8689_v11  ;;  %6864 = vmatprep.subr.bf16.mxu0 %v8696_v16  ;;  %v9053_v11 = vld [vmem:[%s9761_s5 + $0x50] sm:$0xff]   ;;  %v9078_v34 = vld [vmem:[%s9761_s5 + $0x1c0] sm:$0xff]   ;;  %v9084_v38 = vld [vmem:[%s9761_s5 + $0x188] sm:$0xff]  }
 0x40f   :  { %7036 = vmatprep.subr.bf16.mxu1 %v8698_v59  ;;  %v9056_v16 = vld [vmem:[%s9761_s5 + $0x90] sm:$0xff]   ;;  %v9058_v59 = vld [vmem:[%s9761_s5 + $0xd8] sm:$0xff]   ;;  %v9093_v62 = vld [vmem:[%s9761_s5 + $0x160] sm:$0xff]  }
 0x410   :  { %v9085_v39 = vld [vmem:[%s9761_s5 + $0x150] sm:$0xff]   ;;  %v9094_v44 = vld [vmem:[%s9761_s5 + $0x1e0] sm:$0xff]  }
 0x411   :  { %6865 = vmatpush1.bf16.msra.mxu0 %v8695_v20  ;;  %v9063_v20 = vld [vmem:[%s9761_s5 + $0x20] sm:$0xff]   ;;  %v9088_v40 = vld [vmem:[%s9761_s5 + $0x190] sm:$0xff]  }
 0x412   :  { %7037 = vmatpush1.bf16.msra.mxu1 %v8697_v60  ;;  %6866 = vmatprep.subr.bf16.mxu0 %v8704_v22  ;;  %v9064_v60 = vld [vmem:[%s9761_s5 + $0xa0] sm:$0xff]   ;;  %v9065_v22 = vld [vmem:[%s9761_s5 + $0x68] sm:$0xff]  }
 0x413   :  { %7038 = vmatprep.subr.bf16.mxu1 %v8706_v23  ;;  %v9066_v23 = vld [vmem:[%s9761_s5 + $0xe8] sm:$0xff]   ;;  %v9095_v45 = vld [vmem:[%s9761_s5 + $0x120] sm:$0xff]  }
 0x414   :  { %v9096_v50 = vld [vmem:[%s9761_s5 + $0x1a0] sm:$0xff]  }
 0x415   :  { %6867 = vmatpush1.bf16.msra.mxu0 %v8703_v27  ;;  %v9071_v27 = vld [vmem:[%s9761_s5 + $0x30] sm:$0xff]  }
 0x416   :  { %7039 = vmatpush1.bf16.msra.mxu1 %v8705_v28  ;;  %6868 = vmatprep.subr.bf16.mxu0 %v8712_v29  ;;  %v9072_v28 = vld [vmem:[%s9761_s5 + $0xb0] sm:$0xff]   ;;  %v9073_v29 = vld [vmem:[%s9761_s5 + $0x78] sm:$0xff]  }
 0x417   :  { %7040 = vmatprep.subr.bf16.mxu1 %v8714_v30  ;;  %v9074_v30 = vld [vmem:[%s9761_s5 + $0xf8] sm:$0xff]  }
 0x419   :  { %6869 = vmatpush1.bf16.msra.mxu0 %v8711_v35  ;;  %v9079_v35 = vld [vmem:[%s9761_s5 + $0x100] sm:$0xff]  }
 0x41a   :  { %7041 = vmatpush1.bf16.msra.mxu1 %v8713_v36  ;;  %6870 = vmatprep.subr.bf16.mxu0 %v8720_v37  ;;  %v9080_v36 = vld [vmem:[%s9761_s5 + $0x180] sm:$0xff]   ;;  %v9081_v37 = vld [vmem:[%s9761_s5 + $0x148] sm:$0xff]  }
 0x41b   :  { %7042 = vmatprep.subr.bf16.mxu1 %v8722_v46  ;;  %v9082_v46 = vld [vmem:[%s9761_s5 + $0x1c8] sm:$0xff]  }
 0x41d   :  { %6871 = vmatpush1.bf16.msra.mxu0 %v8719_v41  ;;  %v9089_v41 = vld [vmem:[%s9761_s5 + $0x158] sm:$0xff]  }
 0x41e   :  { %7043 = vmatpush1.bf16.msra.mxu1 %v8721_v42  ;;  %6872 = vmatprep.subr.bf16.mxu0 %v8728_v61  ;;  %v9090_v42 = vld [vmem:[%s9761_s5 + $0x1d8] sm:$0xff]  }
 0x41f   :  { %7044 = vmatprep.subr.bf16.mxu1 %v8730_v43  ;;  %v9091_v61 = vld [vmem:[%s9761_s5 + $0x118] sm:$0xff]  }
 0x420   :  { %v9092_v43 = vld [vmem:[%s9761_s5 + $0x198] sm:$0xff]  }
 0x421   :  { %6873 = vmatpush1.bf16.msra.mxu0 %v8727_v0  ;;  %v9097_v0 = vld [vmem:[%s9761_s5 + $0x168] sm:$0xff]  }
 0x422   :  { %7045 = vmatpush1.bf16.msra.mxu1 %v8729_v1  ;;  %6874 = vmatprep.subr.bf16.mxu0 %v8736_v2  ;;  %v9098_v1 = vld [vmem:[%s9761_s5 + $0x1e8] sm:$0xff]  }
 0x423   :  { %7046 = vmatprep.subr.bf16.mxu1 %v8738_v3  ;;  %v9099_v2 = vld [vmem:[%s9761_s5 + $0x128] sm:$0xff]  }
 0x424   :  { %v9100_v3 = vld [vmem:[%s9761_s5 + $0x1a8] sm:$0xff]  }
 0x425   :  { %6875 = vmatpush1.bf16.msra.mxu0 %v8735_v8  ;;  %v9101_v8 = vld [vmem:[%s9761_s5 + $0x170] sm:$0xff]  }
 0x426   :  { %7047 = vmatpush1.bf16.msra.mxu1 %v8737_v9  ;;  %8804 = vmatprep.subr.bf16.mxu0 %v9045_v4  ;;  %v9102_v9 = vld [vmem:[%s9761_s5 + $0x1f0] sm:$0xff]  }
 0x427   :  { %8826 = vmatprep.subr.bf16.mxu1 %v9046_v55  ;;  %v9103_v4 = vld [vmem:[%s9761_s5 + $0x130] sm:$0xff]  }
 0x428   :  { %6877 = vmatmul.mubr.bf16.vlgmr.msra.gmra.mrb[12].mxu0 %v9480_v53  ;;  %v9104_v55 = vld [vmem:[%s9761_s5 + $0x1b0] sm:$0xff]  }
 0x429   :  { %7049 = vmatmul.mubr.bf16.vlgmr.msra.gmra.mrb[12].mxu1 %v9480_v53  ;;  %8805 = vmatpush3.bf16.msra.mxu0 %v9047_v5  ;;  %v9054_v53 = vld [vmem:[%s9761_s5 + $0xd0] sm:$0xff]   ;;  %v9105_v5 = vld [vmem:[%s9761_s5 + $0x178] sm:$0xff]  }
 0x42a   :  { %7634 = vmatprep.mubr.bf16.mxu0 %v9530_v52  ;;  %8827 = vmatpush3.bf16.msra.mxu1 %v9048_v6  ;;  %v9055_v52 = vld [vmem:[%s9761_s5 + $0x10] sm:$0xff]   ;;  %v9106_v6 = vld [vmem:[%s9761_s5 + $0x1f8] sm:$0xff]  }
 0x42b   :  { %7675 = vmatprep.mubr.bf16.mxu1 %v9532_v58  ;;  %8806 = vmatprep.subr.bf16.mxu0 %v9049_v7  ;;  %v9057_v58 = vld [vmem:[%s9761_s5 + $0x58] sm:$0xff]  }
 0x42c   :  { %8828 = vmatprep.subr.bf16.mxu1 %v9050_v10  ;;  %v9107_v7 = vld [vmem:[%s9761_s5 + $0x138] sm:$0xff]  }
 0x42d   :  { %8807 = vmatpush3.bf16.msra.mxu0 %v9051_v56  ;;  %v9108_v10 = vld [vmem:[%s9761_s5 + $0x1b8] sm:$0xff]   ;;  %v3790_v56 = vrot.slane %v9512_v57, %v524_v12 }
 0x42e   :  { %8829 = vmatpush3.bf16.msra.mxu1 %v9052_v54  ;;  %8808 = vmatprep.subr.bf16.mxu0 %v9053_v11  ;;  %v3798_v54 = vrot.slane %v9512_v57, %v532_v13  ;;  %v3794_v11 = vrot.slane %v9512_v57, %v528_v14 }
 0x42f   :  { %8830 = vmatprep.subr.bf16.mxu1 %v9054_v53  ;;  %v3802_v53 = vrot.slane %v9512_v57, %v536_v15 }
 0x431   :  { %8809 = vmatpush3.bf16.msra.mxu0 %v9055_v52 }
 0x432   :  { %8831 = vmatpush3.bf16.msra.mxu1 %v9056_v16  ;;  %8810 = vmatprep.subr.bf16.mxu0 %v9057_v58 }
 0x433   :  { %8832 = vmatprep.subr.bf16.mxu1 %v9058_v59 }
 0x435   :  { %8811 = vmatpush3.bf16.msra.mxu0 %v9059_v17 }
 0x436   :  { %8833 = vmatpush3.bf16.msra.mxu1 %v9060_v18  ;;  %8812 = vmatprep.subr.bf16.mxu0 %v9061_v19 }
 0x437   :  { %8834 = vmatprep.subr.bf16.mxu1 %v9062_v21 }
 0x439   :  { %8813 = vmatpush3.bf16.msra.mxu0 %v9063_v20 }
 0x43a   :  { %8835 = vmatpush3.bf16.msra.mxu1 %v9064_v60  ;;  %8814 = vmatprep.subr.bf16.mxu0 %v9065_v22 }
 0x43b   :  { %8836 = vmatprep.subr.bf16.mxu1 %v9066_v23 }
 0x43d   :  { %8815 = vmatpush3.bf16.msra.mxu0 %v9067_v24 }
 0x43e   :  { %8837 = vmatpush3.bf16.msra.mxu1 %v9068_v63  ;;  %8816 = vmatprep.subr.bf16.mxu0 %v9069_v25 }
 0x43f   :  { %8838 = vmatprep.subr.bf16.mxu1 %v9070_v26 }
 0x441   :  { %8817 = vmatpush3.bf16.msra.mxu0 %v9071_v27 }
 0x442   :  { %8839 = vmatpush3.bf16.msra.mxu1 %v9072_v28  ;;  %8818 = vmatprep.subr.bf16.mxu0 %v9073_v29 }
 0x443   :  { %8840 = vmatprep.subr.bf16.mxu1 %v9074_v30 }
 0x445   :  { %8819 = vmatpush3.bf16.msra.mxu0 %v9075_v31 }
 0x446   :  { %8841 = vmatpush3.bf16.msra.mxu1 %v9076_v32  ;;  %8848 = vmatprep.subr.bf16.mxu0 %v9077_v33 }
 0x447   :  { %8870 = vmatprep.subr.bf16.mxu1 %v9078_v34 }
 0x448   :  { %7635 = vmatmul.mubr.bf16.vlgmr.msra.gmra.mrb[16].mxu0 %v9526_v48  ;;  %v9086_v48 = vld [vmem:[%s9761_s5 + $0x1d0] sm:$0xff]  }
 0x449   :  { %7676 = vmatmul.mubr.bf16.vlgmr.msra.gmra.mrb[16].mxu1 %v9528_v49  ;;  %8849 = vmatpush3.bf16.msra.mxu0 %v9079_v35  ;;  %v9087_v49 = vld [vmem:[%s9761_s5 + $0x110] sm:$0xff]   ;;  %v8739_v35 = vld [vmem:[#allocation11] ss:$0 sm:$0xff]  ;;  %s9300_s5 = smov 126  }
 0x44a   :  { %8871 = vmatpush3.bf16.msra.mxu1 %v9080_v36  ;;  %8850 = vmatprep.subr.bf16.mxu0 %v9081_v37 }
 0x44b   :  { %8872 = vmatprep.subr.bf16.mxu1 %v9082_v46 }
 0x44d   :  { %8851 = vmatpush3.bf16.msra.mxu0 %v9083_v51 }
 0x44e   :  { %8873 = vmatpush3.bf16.msra.mxu1 %v9084_v38  ;;  %8852 = vmatprep.subr.bf16.mxu0 %v9085_v39 }
 0x44f   :  { %8874 = vmatprep.subr.bf16.mxu1 %v9086_v48 }
 0x451   :  { %8853 = vmatpush3.bf16.msra.mxu0 %v9087_v49 }
 0x452   :  { %8875 = vmatpush3.bf16.msra.mxu1 %v9088_v40  ;;  %8854 = vmatprep.subr.bf16.mxu0 %v9089_v41 }
 0x453   :  { %8876 = vmatprep.subr.bf16.mxu1 %v9090_v42 }
 0x455   :  { %8855 = vmatpush3.bf16.msra.mxu0 %v9091_v61 }
 0x456   :  { %8877 = vmatpush3.bf16.msra.mxu1 %v9092_v43  ;;  %8856 = vmatprep.subr.bf16.mxu0 %v9093_v62 }
 0x457   :  { %8878 = vmatprep.subr.bf16.mxu1 %v9094_v44 }
 0x459   :  { %8857 = vmatpush3.bf16.msra.mxu0 %v9095_v45 }
 0x45a   :  { %8879 = vmatpush3.bf16.msra.mxu1 %v9096_v50  ;;  %8858 = vmatprep.subr.bf16.mxu0 %v9097_v0 }
 0x45b   :  { %8880 = vmatprep.subr.bf16.mxu1 %v9098_v1 }
 0x45d   :  { %8859 = vmatpush3.bf16.msra.mxu0 %v9099_v2 }
 0x45e   :  { %8881 = vmatpush3.bf16.msra.mxu1 %v9100_v3  ;;  %8860 = vmatprep.subr.bf16.mxu0 %v9101_v8 }
 0x45f   :  { %8882 = vmatprep.subr.bf16.mxu1 %v9102_v9 }
 0x461   :  { %8861 = vmatpush3.bf16.msra.mxu0 %v9103_v4 }
 0x462   :  { %8883 = vmatpush3.bf16.msra.mxu1 %v9104_v55  ;;  %8862 = vmatprep.subr.bf16.mxu0 %v9105_v5 }
 0x463   :  { %8884 = vmatprep.subr.bf16.mxu1 %v9106_v6 }
 0x465   :  { %8863 = vmatpush3.bf16.msra.mxu0 %v9107_v7 }
 0x466   :  { %8885 = vmatpush3.bf16.msra.mxu1 %v9108_v10 }
 0x4fb   :  { %v6878_v52 = vpop.f32.mrb[12].mxu0 }
 0x4fc   :  { %v8916_v16 = vadd.f32 %v6878_v52, %v3790_v56  ;;  %v7050_v58 = vpop.f32.mrb[12].mxu1  ;;  %v6880_v59 = vpop.f32.mrb[13].mxu0 }
 0x4fd   :  { %v8920_v17 = vadd.f32 %v7050_v58, %v3798_v54  ;;  %v8917_v18 = vadd.f32 %v6880_v59, %v3794_v11  ;;  %v7052_v19 = vpop.f32.mrb[13].mxu1  ;;  %v6882_v12 = vpop.f32.mrb[14].mxu0 }
 0x4fe   :  { %v8921_v21 = vadd.f32 %v7052_v19, %v3802_v53  ;;  %v8918_v20 = vadd.f32 %v6882_v12, %v3790_v56  ;;  %v7054_v60 = vpop.f32.mrb[14].mxu1  ;;  %v6884_v13 = vpop.f32.mrb[15].mxu0  ;;  %v7063_v14 = vmax.f32 %v8916_v16, 0.0 }
 0x4ff   :  { %v8922_v22 = vadd.f32 %v7054_v60, %v3798_v54  ;;  %v8919_v23 = vadd.f32 %v6884_v13, %v3794_v11  ;;  %v7056_v24 = vpop.f32.mrb[15].mxu1  ;;  %v7065_v25 = vmax.f32 %v8920_v17, 0.0  ;;  %v7064_v15 = vmax.f32 %v8917_v18, 0.0 }
 0x500   :  { %v7071_v63 = vmax.f32 %v8918_v20, 0.0  ;;  %v8923_v47 = vadd.f32 %v7056_v24, %v3802_v53  ;;  %v7066_v27 = vmax.f32 %v8921_v21, 0.0 }
 0x501   :  { %v7073_v57 = vmax.f32 %v8922_v22, 0.0  ;;  %v7072_v26 = vmax.f32 %v8919_v23, 0.0 }
 0x502   :  { %v7079_v28 = vpack.c.bf16 %v7071_v63, %v7063_v14  ;;  %v7074_v29 = vmax.f32 %v8923_v47, 0.0 }
 0x503   :  { %v7081_v30 = vpack.c.bf16 %v7073_v57, %v7065_v25  ;;  %v7080_v31 = vpack.c.bf16 %v7072_v26, %v7064_v15 }
 0x504   :  { %v7082_v32 = vpack.c.bf16 %v7074_v29, %v7066_v27 }
 0x505   :  { %7716 = vmatprep.mubr.bf16.mxu0 %v7080_v31 }
 0x506   :  { %7757 = vmatprep.mubr.bf16.mxu1 %v7082_v32  ;;  %7717 = vmatmul.mubr.bf16.vlgmr.msra.gmra.mrb[20].mxu0 %v7079_v28 }
 0x507   :  { %7758 = vmatmul.mubr.bf16.vlgmr.msra.gmra.mrb[20].mxu1 %v7081_v30 }
 0x51b   :  { %v8820_v33 = vpop.f32.mrb[16].mxu0 }
 0x51c   :  { %v8842_v34 = vpop.f32.mrb[16].mxu1  ;;  %v8821_v36 = vpop.f32.mrb[17].mxu0 }
 0x51d   :  { %v8822_v37 = vadd.f32 %v8821_v36, %v8820_v33  ;;  %v8843_v46 = vpop.f32.mrb[17].mxu1  ;;  %v8823_v51 = vpop.f32.mrb[18].mxu0 }
 0x51e   :  { %v8844_v38 = vadd.f32 %v8843_v46, %v8842_v34  ;;  %v8845_v39 = vpop.f32.mrb[18].mxu1  ;;  %v8824_v48 = vpop.f32.mrb[19].mxu0 }
 0x51f   :  { %v7637_v49 = vadd.f32 %v8822_v37, %v8739_v35  ;;  %v8825_v40 = vadd.f32 %v8824_v48, %v8823_v51  ;;  %v8846_v41 = vpop.f32.mrb[19].mxu1 }
 0x520   :  { %v8847_v42 = vadd.f32 %v8846_v41, %v8845_v39 }
 0x521   :  { %v7678_v61 = vadd.f32 %v8844_v38, %v7637_v49  ;;  %v7640_v43 = vadd.f32 %v8825_v40, %v8739_v35 }
 0x523   :  { %v7681_v62 = vadd.f32 %v8847_v42, %v7640_v43 }
 0x5d9   :  { %v8864_v44 = vpop.f32.mrb[20].mxu0 }
 0x5da   :  { %v8886_v45 = vpop.f32.mrb[20].mxu1  ;;  %v8865_v50 = vpop.f32.mrb[21].mxu0 }
 0x5db   :  { %v8866_v0 = vadd.f32 %v8865_v50, %v8864_v44  ;;  %v8887_v1 = vpop.f32.mrb[21].mxu1  ;;  %v8867_v2 = vpop.f32.mrb[22].mxu0 }
 0x5dc   :  { %v8888_v3 = vadd.f32 %v8887_v1, %v8886_v45  ;;  %v8889_v8 = vpop.f32.mrb[22].mxu1  ;;  %v8868_v9 = vpop.f32.mrb[23].mxu0 }
 0x5dd   :  { %v7719_v4 = vadd.f32 %v8866_v0, %v7678_v61  ;;  %v8869_v55 = vadd.f32 %v8868_v9, %v8867_v2  ;;  %v8890_v5 = vpop.f32.mrb[23].mxu1 }
 0x5de   :  { %v8891_v6 = vadd.f32 %v8890_v5, %v8889_v8 }
 0x5df   :  { %v7760_v7 = vadd.f32 %v8888_v3, %v7719_v4  ;;  %v7722_v10 = vadd.f32 %v8869_v55, %v7681_v62 }
 0x5e1   :  { %v7763_v56 = vadd.f32 %v8891_v6, %v7722_v10  ;;  %v7767_v54 = vsel %vm7766_vm1, %v7760_v7, -inf }
 0x5e2   :  { %7768 = vmax.xlane.f32.xlu0 %v7767_v54 }
 0x5e3   :  { %v7770_v11 = vsel %vm7766_vm1, %v7763_v56, -inf }
 0x5e6   :  { %7771 = vmax.xlane.f32.xlu0 %v7770_v11 }
 0x66f   :  { %v7769_v53 = vpop.xlane.xlu0 %7768 }
 0x670   :  { %v7773_v52 = vsub.f32 %v7760_v7, %v7769_v53 }
 0x672   :  { %v7775_v16 = vmul.f32 1.442695, %v7773_v52 }
 0x673   :  { %v7772_v58 = vpop.xlane.xlu0 %7771 }
 0x674   :  { %9109 = vpow2.f32 %v7775_v16  ;;  %v7774_v59 = vsub.f32 %v7763_v56, %v7772_v58 }
 0x676   :  { %v7777_v17 = vmul.f32 1.442695, %v7774_v59 }
 0x678   :  { %9111 = vpow2.f32 %v7777_v17 }
 0x67e   :  { %v9110_v18 = vpop.eup %9109 }
 0x67f   :  { %7781 = vrot.lane.b32.xlu1 %v9110_v18, %s9300_s5 }
 0x682   :  { %v9112_v19 = vpop.eup %9111 }
 0x683   :  { %7783 = vrot.lane.b32.xlu1 %v9112_v19, %s9300_s5 }
 0x6f1   :  { %v7782_v12 = vpop.permute.xlu1 %7781 }
 0x6f2   :  { %v7788_v21 = vsel %vm7787_vm2, %v7782_v12, 0.0 }
 0x6f3   :  { %7789 = vadd.xlane.f32.xlu0 %v7788_v21 }
 0x6f5   :  { %v7784_v20 = vpop.permute.xlu1 %7783 }
 0x6f6   :  { %v7791_v60 = vsel %vm7787_vm2, %v7784_v20, 0.0 }
 0x6f7   :  { %7792 = vadd.xlane.f32.xlu1 %v7791_v60 }
 0x780   :  { %v7790_v13 = vpop.xlane.xlu0 %7789 }
 0x781   :  { %9113 = vrcp.f32 %v7790_v13 }
 0x784   :  { %v7793_v22 = vpop.xlane.xlu1 %7792 }
 0x785   :  { %9115 = vrcp.f32 %v7793_v22 }
 0x78b   :  { %v9114_v23 = vpop.eup %9113 }
 0x78c   :  { %v7795_v24 = vmul.f32 %v9114_v23, %v9110_v18 }
 0x78e   :  { %v7799_v14 = vsel %vm7798_vm3, %v7760_v7, %v7795_v24 }
 0x78f   :  { %v9116_v63 = vpop.eup %9115  ;;  %7802 = vst.msk [vmem:[#allocation13] sm:$0xff] %vm7801_vm4, %v7799_v14 }
 0x790   :  { %v7797_v47 = vmul.f32 %v9116_v63, %v9112_v19 }
 0x792   :  { %v7800_v25 = vsel %vm7798_vm3, %v7763_v56, %v7797_v47 }
 0x793   :  { %7803 = vst.msk [vmem:[#allocation13 + $0x8] sm:$0xff] %vm7801_vm4, %v7800_v25 }
 0x794   :  { %9268 = shalt.err (!%p9265_p10)
}
 0x795   :  { %s9269_s12 = scalar_lea.hbm %s9763_s7, 256 }
 0x796   :  { %p9270_p11 = scmp.ne.s32.totalorder %s9763_s7, %s9269_s12  ;;  %p9273_p12 = scmp.lt.u32.totalorder %s9269_s12, %s9763_s7 }
 0x798   :  { %p9275_p13 = pnand %p9273_p12, %p9270_p11 }
 0x79a   :  { %9278 = shalt.err (!%p9275_p13)
}
 0x79b   :  { %s9302_s21 = smov 128   ;;  %s9303_s22 = smov 8  }
 0x79c   :  { %7815 = dma.vmem_to_hbm [thread:$0]  %s7810_s14, 256, %s9763_s7, [#allocation4], %s9302_s21, %s9302_s21, %s9303_s22  }
 0x79d   :  { %9287 = dma.done.wait [#allocation4], 256  }
 0x79e   :  { %9288 = vsyncadd [#allocation4], 4294967040 }
 0x79f   :  { %7819 = vsyncpa [#allocation3], 1 }
 0x7a0   :  { %7820 = vsyncpa [#allocation6], 1 }
 0x7a1   :  { %7821 = vsyncpa [#allocation9], 1 }
 0x7a2   :  { %7822 = vsyncpa [#allocation12], 1 }
 0x7a3   :  { %7823 = vsyncpa [#allocation4], 1 }

</bundles_post_ra>
